<compile_context>
chip_gen: v5e
topology: v5e:2x2
jax: 0.10.0
libtpu: 0.0.40
codegen_flags: <defaults>
</compile_context>

<pallas_src>
import math

import jax
import jax.numpy as jnp
import numpy as np
from jax.experimental import pallas as pl
from jax.experimental.pallas import tpu as pltpu

_LANES = 128


# ------------------------- phase decomposition (static) -----------------------

def _phase_taps(ker, scale):
    """For each output phase q in [0, scale): (input offset d0, conv tap indices).

    Per spatial dim:  out[y*scale + q] = sum_j wconv[ks[j]] * x[y + d0 + j],
    where wconv is the rot180 / in<->out swapped ConvTranspose2d weight and x is the
    un-upsampled input (zero outside [0, H)).  Valid for odd `ker` (padding=ker//2).
    """
    p = ker // 2
    taps = []
    for q in range(scale):
        k0 = (p - q) % scale
        ks = list(range(k0, ker, scale))
        d0 = (q + k0 - p) // scale if ks else 0
        taps.append((d0, ks))
    return taps


def _tconv_weight_flat(w_t):
    # PyTorch ConvTranspose2d weight (Cin, Cout, K, K) -> equivalent stride-1 conv
    # weight in (K, K, Cin, Cout) order (rot180 spatially, in/out swapped), flattened.
    return jnp.transpose(w_t[:, :, ::-1, ::-1], (2, 3, 0, 1)).reshape(-1).astype(jnp.float32)


# ------------------------------- Pallas kernel --------------------------------

def _make_fused_kernel(s, K, cin, cmid, cout, H, W, Ht, Wp, pad_lo, taps, R_in, R_out):
    L = _LANES

    def window(ref, c, off):
        # Flat (row-stride Wp) window at constant offset `off`, sliced directly from
        # the ref (no materialized shifted-frame copies): value[r, l] = flat[r*L+l+off].
        d, rem = divmod(off, L)
        if rem == 0:
            return ref[c, d:d + R_out, :].astype(jnp.float32)
        a = ref[c, d:d + R_out, rem:]
        b = ref[c, d + 1:d + 1 + R_out, :rem]
        return jnp.concatenate([a, b], axis=-1).astype(jnp.float32)

    def kernel(x_ref, m_ref, intr_ref, w1_ref, b1_ref, wh_ref, bh_ref,
               wl_ref, bl_ref, o_ref, xlow_ref):
        # x_ref   : (cin,  R_in,  128)   flat padded input tile (VMEM)
        # m_ref   : (s*s,  R_out, 128)   phase-major mask, flat layout (VMEM, bf16)
        # intr_ref: (R_in, 128)          interior indicator for the 1x1-conv bias
        # w*/b*   : flat f32 scalar tables (SMEM)
        # o_ref   : (s*s*cout, R_out, 128) phase-major output (VMEM)
        # xlow_ref: (cmid, R_in, 128)    VMEM scratch for the 1x1 low-branch result

        # ---- hoisted SMEM scalar reads (keep sld out of the unrolled FMA chain) ---
        w1v = [w1_ref[i] for i in range(cmid * cin)]
        b1v = [b1_ref[i] for i in range(cmid)]
        whv = [wh_ref[i] for i in range(K * K * cin * cout)]
        bhv = [bh_ref[i] for i in range(cout)]
        wlv = [wl_ref[i] for i in range(K * K * cmid * cout)]
        blv = [bl_ref[i] for i in range(cout)]

        # ---- fused 1x1 low-branch conv into VMEM scratch (flat layout) ------------
        # The halo / flat padding must stay exactly zero (it stands in for the zero
        # padding of the transposed conv), so the bias is gated by `interior`.
        interior = intr_ref[...].astype(jnp.float32)                 # (R_in, L)
        acc1 = [b1v[cm] * interior for cm in range(cmid)]
        for ci in range(cin):
            xc = x_ref[ci].astype(jnp.float32)
            for cm in range(cmid):
                acc1[cm] = acc1[cm] + w1v[cm * cin + ci] * xc
        for cm in range(cmid):
            xlow_ref[cm] = acc1[cm]

        # ---- sub-pixel phases of both transposed convs + masked blend -------------
        for qy in range(s):
            d0y, ksy = taps[qy]
            for qx in range(s):
                d0x, ksx = taps[qx]
                ph = qy * s + qx
                acc_h = [jnp.zeros((R_out, L), jnp.float32) for _ in range(cout)]
                acc_l = [jnp.zeros((R_out, L), jnp.float32) for _ in range(cout)]
                for jy, ky in enumerate(ksy):
                    for jx, kx in enumerate(ksx):
                        off = (pad_lo + d0y + jy) * Wp + (pad_lo + d0x + jx)
                        for ci in range(cin):
                            # load the window once, reuse for all cout FMAs
                            xw = window(x_ref, ci, off)
                            base = (ky * K + kx) * cin * cout + ci * cout
                            for co in range(cout):
                                acc_h[co] = acc_h[co] + whv[base + co] * xw
                        for cm in range(cmid):
                            lw = window(xlow_ref, cm, off)
                            base = (ky * K + kx) * cmid * cout + cm * cout
                            for co in range(cout):
                                acc_l[co] = acc_l[co] + wlv[base + co] * lw
                m = m_ref[ph].astype(jnp.float32)                    # (R_out, L)
                for co in range(cout):
                    hi = acc_h[co] + bhv[co]
                    lo = acc_l[co] + blv[co]
                    # x1*mask + x2*(1-mask)  ==  lo + m*(hi - lo)
                    o_ref[ph * cout + co] = (lo + m * (hi - lo)).astype(o_ref.dtype)

    return kernel


# ------------------------------ Pallas wrapper --------------------------------

def _pick_tile_h(H, Wp, cin, cmid, cout, s, in_bytes, mask_bytes, out_bytes,
                 budget_bytes=6 << 20):
    # Rough per-output-row VMEM footprint of one grid step (double-buffered
    # input/mask/output blocks + f32 accumulators + xlow scratch).  Conservative
    # enough to fit v5e's 16 MiB default scoped VMEM and v7x's 64 MiB physical.
    per_row = Wp * (2 * cin * in_bytes + 2 * s * s * mask_bytes
                    + 2 * s * s * cout * out_bytes
                    + (cmid + 2 * cout) * 4 + cin * 4)
    ht = max(8, budget_bytes // max(per_row, 1))
    return int(min(H, ht))


def tconv_block_forward(inx, mask, inv_mask, params, scale, ker, *,
                        mask_dtype=jnp.bfloat16, out_dtype=None, tile_h=None):
    """Forward of Tconv_block (train path).

    NOTE: `inv_mask` is accepted for interface parity but never transferred; the
    blend assumes inv_mask == 1 - mask, which is how ASFSR constructs its masks.
    The mask is transferred in `mask_dtype` (bf16 default; exact for binary masks).
    """
    del inv_mask
    B, cin, H, W = inx.shape
    s, K = scale, ker
    cmid = params["low_par1_w"].shape[0]
    cout = params["high_par_w"].shape[1]
    out_dtype = inx.dtype if out_dtype is None else jnp.dtype(out_dtype)
    L = _LANES

    taps = _phase_taps(K, s)
    pad_lo = max([0] + [-d0 for d0, ks in taps if ks])
    pad_hi = max([0] + [d0 + len(ks) - 1 for d0, ks in taps if ks])
    Wp = W + pad_lo + pad_hi

    if tile_h is None:
        tile_h = _pick_tile_h(H, Wp, cin, cmid, cout, s,
                              jnp.dtype(inx.dtype).itemsize,
                              jnp.dtype(mask_dtype).itemsize,
                              jnp.dtype(out_dtype).itemsize)
    Ht = int(min(tile_h, H))
    nT = -(-H // Ht)
    H_ext = nT * Ht
    Hin_t = Ht + pad_lo + pad_hi

    offs = [(pad_lo + d0y + jy) * Wp + (pad_lo + d0x + jx)
            for d0y, ksy in taps for jy in range(len(ksy))
            for d0x, ksx in taps for jx in range(len(ksx))]
    off_max = max(offs) if offs else 0
    R_out = -(-(Ht * Wp) // L)
    R_in = R_out + off_max // L + 1

    # ---- input: zero-pad, cut overlapping (halo'd) row tiles, flatten row-major
    #      with stride Wp, pad onto a lane-dense (R_in, 128) slab per channel -------
    xpad = jnp.pad(inx, ((0, 0), (0, 0),
                         (pad_lo, H_ext - H + pad_hi), (pad_lo, pad_hi)))
    xt = jnp.stack([xpad[:, :, t * Ht:t * Ht + Hin_t, :] for t in range(nT)], axis=1)
    xt = xt.reshape(B, nT, cin, Hin_t * Wp)
    xf = jnp.pad(xt, ((0, 0), (0, 0), (0, 0), (0, R_in * L - Hin_t * Wp))
                 ).reshape(B, nT, cin, R_in, L)

    # ---- mask: space-to-depth to phase-major, same flat per-tile layout, bf16 -----
    m_ph = (mask.reshape(B, H, s, W, s).transpose(0, 2, 4, 1, 3)
                .reshape(B, s * s, H, W))
    m_ph = jnp.pad(m_ph, ((0, 0), (0, 0), (0, H_ext - H), (0, Wp - W)))
    mt = jnp.stack([m_ph[:, :, t * Ht:(t + 1) * Ht, :] for t in range(nT)], axis=1)
    mt = mt.reshape(B, nT, s * s, Ht * Wp)
    mf = jnp.pad(mt, ((0, 0), (0, 0), (0, 0), (0, R_out * L - Ht * Wp))
                 ).reshape(B, nT, s * s, R_out, L).astype(mask_dtype)

    # ---- per-tile interior indicator (gates the 1x1-conv bias to the image) -------
    rows = np.arange(Hin_t)
    col_ok = (np.arange(Wp) >= pad_lo) & (np.arange(Wp) < pad_lo + W)
    intr_np = np.zeros((nT, Hin_t, Wp), np.float32)
    for t in range(nT):
        row_ok = (t * Ht + rows >= pad_lo) & (t * Ht + rows < pad_lo + H)
        intr_np[t] = np.outer(row_ok, col_ok)
    intr = jnp.asarray(intr_np).reshape(nT, Hin_t * Wp)
    intr = jnp.pad(intr, ((0, 0), (0, R_in * L - Hin_t * Wp))
                   ).reshape(nT, R_in, L).astype(mask_dtype)

    # ---- flat scalar tables (SMEM) -------------------------------------------------
    wh = _tconv_weight_flat(params["high_par_w"])
    wl = _tconv_weight_flat(params["low_par2_w"])
    w1 = params["low_par1_w"].reshape(-1).astype(jnp.float32)
    bh = params["high_par_b"].astype(jnp.float32)
    b1 = params["low_par1_b"].astype(jnp.float32)
    bl = params["low_par2_b"].astype(jnp.float32)

    kernel = _make_fused_kernel(s, K, cin, cmid, cout, H, W, Ht, Wp, pad_lo,
                                taps, R_in, R_out)
    smem_specs = [pl.BlockSpec(memory_space=pltpu.MemorySpace.SMEM) for _ in range(6)]
    out_flat = pl.pallas_call(
        kernel,
        out_shape=jax.ShapeDtypeStruct((B, nT, s * s * cout, R_out, L), out_dtype),
        grid=(B, nT),
        in_specs=[
            pl.BlockSpec((None, None, cin, R_in, L), lambda b, t: (b, t, 0, 0, 0)),
            pl.BlockSpec((None, None, s * s, R_out, L), lambda b, t: (b, t, 0, 0, 0)),
            pl.BlockSpec((None, R_in, L), lambda b, t: (t, 0, 0)),
        ] + smem_specs,
        out_specs=pl.BlockSpec((None, None, s * s * cout, R_out, L),
                               lambda b, t: (b, t, 0, 0, 0)),
        scratch_shapes=[pltpu.VMEM((cmid, R_in, L), jnp.float32)],
        compiler_params=pltpu.CompilerParams(
            dimension_semantics=("parallel", "parallel")),
    )(xf, mf, intr, w1, b1, wh, bh, wl, bl)

    # ---- wrapper-side layout glue: un-flatten, strip halo/garbage, pixel-shuffle ---
    y = out_flat.reshape(B, nT, s * s * cout, R_out * L)[..., :Ht * Wp]
    y = y.reshape(B, nT, s, s, cout, Ht, Wp)[..., :W]
    y = y.transpose(0, 4, 1, 5, 2, 6, 3).reshape(B, cout, H_ext * s, W * s)
    return y[:, :, :H * s, :]


# --------------------------- Pure-JAX reference -------------------------------

def _ref_conv_transpose2d(x, w_t, b, stride, padding, output_padding):
    K = w_t.shape[2]
    w = jnp.transpose(w_t[:, :, ::-1, ::-1], (1, 0, 2, 3))        # (Cout, Cin, K, K)
    lo = K - 1 - padding
    hi = K - 1 - padding + output_padding
    y = jax.lax.conv_general_dilated(
        x, w, window_strides=(1, 1), padding=[(lo, hi), (lo, hi)],
        lhs_dilation=(stride, stride), rhs_dilation=(1, 1),
        dimension_numbers=("NCHW", "OIHW", "NCHW"),
        precision=jax.lax.Precision.HIGHEST)
    return y + b.reshape(1, -1, 1, 1)


def _ref_conv1x1(x, w, b):
    y = jax.lax.conv_general_dilated(
        x, w, (1, 1), "VALID", dimension_numbers=("NCHW", "OIHW", "NCHW"),
        precision=jax.lax.Precision.HIGHEST)
    return y + b.reshape(1, -1, 1, 1)


def reference_forward(inx, mask, inv_mask, params, scale, ker):
    x1 = _ref_conv_transpose2d(inx, params["high_par_w"], params["high_par_b"],
                               scale, ker // 2, scale - 1) * mask
    x2 = _ref_conv1x1(inx, params["low_par1_w"], params["low_par1_b"])
    x2 = _ref_conv_transpose2d(x2, params["low_par2_w"], params["low_par2_b"],
                               scale, ker // 2, scale - 1) * inv_mask
    return x1 + x2


# ----------------------------------- Main -------------------------------------

if __name__ == "__main__":
    # (scale, cin, cout, ker, r, B, H, W) — first is the main shape; the others
    # exercise pad_lo > 0 (ker=5) and scale > 2 phase decompositions.
    configs = [
        (2, 4, 4, 3, 2, 2, 16, 16),
        (2, 4, 4, 5, 2, 1, 12, 12),
        (3, 4, 4, 3, 2, 1, 8, 8),
    ]
    key = jax.random.PRNGKey(0)
    for (scale, cin, cout, ker, r, B, H, W) in configs:
        cmid = cin // r
        Ho, Wo = H * scale, W * scale
        key, *ks = jax.random.split(key, 9)
        std1 = math.sqrt(2.0 / (cmid * 1))   # Conv2d init: sqrt(2 / (out_ch * kH*kW))
        params = {
            "high_par_w": 0.001 * jax.random.normal(ks[0], (cin, cout, ker, ker), jnp.float32),
            "high_par_b": 0.05 * jax.random.normal(ks[1], (cout,), jnp.float32),
            "low_par1_w": std1 * jax.random.normal(ks[2], (cmid, cin, 1, 1), jnp.float32),
            "low_par1_b": 0.05 * jax.random.normal(ks[3], (cmid,), jnp.float32),
            "low_par2_w": 0.001 * jax.random.normal(ks[4], (cmid, cout, ker, ker), jnp.float32),
            "low_par2_b": 0.05 * jax.random.normal(ks[5], (cout,), jnp.float32),
        }
        inx = jax.random.normal(ks[6], (B, cin, H, W), jnp.float32)
        mask = (jax.random.uniform(ks[7], (B, 1, Ho, Wo)) > 0.5).astype(jnp.float32)
        inv_mask = 1.0 - mask

        out = tconv_block_forward(inx, mask, inv_mask, params, scale, ker)
        out = jax.block_until_ready(out)

        ref = reference_forward(inx, mask, inv_mask, params, scale, ker)
        np.testing.assert_allclose(np.asarray(out), np.asarray(ref),
                                   rtol=1e-3, atol=1e-5)
    print("KERNEL_OK")
</pallas_src>

<mosaic_0001>
module attributes {stable_mosaic.version = 11 : i64} {
  func.func @kernel(%arg0: i32, %arg1: i32, %arg2: memref<1x1x4x4x128xf32, #tpu.memory_space<vmem>>, %arg3: memref<1x1x4x3x128xbf16, #tpu.memory_space<vmem>>, %arg4: memref<1x4x128xbf16, #tpu.memory_space<vmem>>, %arg5: memref<8xf32, #tpu.memory_space<smem>>, %arg6: memref<2xf32, #tpu.memory_space<smem>>, %arg7: memref<144xf32, #tpu.memory_space<smem>>, %arg8: memref<4xf32, #tpu.memory_space<smem>>, %arg9: memref<72xf32, #tpu.memory_space<smem>>, %arg10: memref<4xf32, #tpu.memory_space<smem>>, %arg11: memref<1x1x16x3x128xf32, #tpu.memory_space<vmem>>, %arg12: memref<2x4x128xf32, #tpu.memory_space<vmem>>) attributes {dimension_semantics = [#tpu.dimension_semantics<parallel>, #tpu.dimension_semantics<parallel>], iteration_bounds = array<i64: 2, 1>, scalar_prefetch = 0 : i64, scratch_operands = 1 : i64, tpu.core_type = #tpu.core_type<tc>, window_params = [{transform_indices = @transform_0, window_bounds = array<i64: 1, 1, 4, 4, 128>}, {transform_indices = @transform_1, window_bounds = array<i64: 1, 1, 4, 3, 128>}, {transform_indices = @transform_2, window_bounds = array<i64: 1, 4, 128>}, {transform_indices = @transform_3, window_bounds = array<i64: 8>}, {transform_indices = @transform_4, window_bounds = array<i64: 2>}, {transform_indices = @transform_5, window_bounds = array<i64: 144>}, {transform_indices = @transform_6, window_bounds = array<i64: 4>}, {transform_indices = @transform_7, window_bounds = array<i64: 72>}, {transform_indices = @transform_8, window_bounds = array<i64: 4>}, {transform_indices = @transform_9, window_bounds = array<i64: 1, 1, 16, 3, 128>}]} {
    %c0 = arith.constant 0 : index
    %0 = memref.load %arg5[%c0] : memref<8xf32, #tpu.memory_space<smem>>
    %c1 = arith.constant 1 : index
    %1 = memref.load %arg5[%c1] : memref<8xf32, #tpu.memory_space<smem>>
    %c2 = arith.constant 2 : index
    %2 = memref.load %arg5[%c2] : memref<8xf32, #tpu.memory_space<smem>>
    %c3 = arith.constant 3 : index
    %3 = memref.load %arg5[%c3] : memref<8xf32, #tpu.memory_space<smem>>
    %c4 = arith.constant 4 : index
    %4 = memref.load %arg5[%c4] : memref<8xf32, #tpu.memory_space<smem>>
    %c5 = arith.constant 5 : index
    %5 = memref.load %arg5[%c5] : memref<8xf32, #tpu.memory_space<smem>>
    %c6 = arith.constant 6 : index
    %6 = memref.load %arg5[%c6] : memref<8xf32, #tpu.memory_space<smem>>
    %c7 = arith.constant 7 : index
    %7 = memref.load %arg5[%c7] : memref<8xf32, #tpu.memory_space<smem>>
    %c0_0 = arith.constant 0 : index
    %8 = memref.load %arg6[%c0_0] : memref<2xf32, #tpu.memory_space<smem>>
    %c1_1 = arith.constant 1 : index
    %9 = memref.load %arg6[%c1_1] : memref<2xf32, #tpu.memory_space<smem>>
    %c0_2 = arith.constant 0 : index
    %10 = memref.load %arg7[%c0_2] : memref<144xf32, #tpu.memory_space<smem>>
    %c1_3 = arith.constant 1 : index
    %11 = memref.load %arg7[%c1_3] : memref<144xf32, #tpu.memory_space<smem>>
    %c2_4 = arith.constant 2 : index
    %12 = memref.load %arg7[%c2_4] : memref<144xf32, #tpu.memory_space<smem>>
    %c3_5 = arith.constant 3 : index
    %13 = memref.load %arg7[%c3_5] : memref<144xf32, #tpu.memory_space<smem>>
    %c4_6 = arith.constant 4 : index
    %14 = memref.load %arg7[%c4_6] : memref<144xf32, #tpu.memory_space<smem>>
    %c5_7 = arith.constant 5 : index
    %15 = memref.load %arg7[%c5_7] : memref<144xf32, #tpu.memory_space<smem>>
    %c6_8 = arith.constant 6 : index
    %16 = memref.load %arg7[%c6_8] : memref<144xf32, #tpu.memory_space<smem>>
    %c7_9 = arith.constant 7 : index
    %17 = memref.load %arg7[%c7_9] : memref<144xf32, #tpu.memory_space<smem>>
    %c8 = arith.constant 8 : index
    %18 = memref.load %arg7[%c8] : memref<144xf32, #tpu.memory_space<smem>>
    %c9 = arith.constant 9 : index
    %19 = memref.load %arg7[%c9] : memref<144xf32, #tpu.memory_space<smem>>
    %c10 = arith.constant 10 : index
    %20 = memref.load %arg7[%c10] : memref<144xf32, #tpu.memory_space<smem>>
    %c11 = arith.constant 11 : index
    %21 = memref.load %arg7[%c11] : memref<144xf32, #tpu.memory_space<smem>>
    %c12 = arith.constant 12 : index
    %22 = memref.load %arg7[%c12] : memref<144xf32, #tpu.memory_space<smem>>
    %c13 = arith.constant 13 : index
    %23 = memref.load %arg7[%c13] : memref<144xf32, #tpu.memory_space<smem>>
    %c14 = arith.constant 14 : index
    %24 = memref.load %arg7[%c14] : memref<144xf32, #tpu.memory_space<smem>>
    %c15 = arith.constant 15 : index
    %25 = memref.load %arg7[%c15] : memref<144xf32, #tpu.memory_space<smem>>
    %c16 = arith.constant 16 : index
    %26 = memref.load %arg7[%c16] : memref<144xf32, #tpu.memory_space<smem>>
    %c17 = arith.constant 17 : index
    %27 = memref.load %arg7[%c17] : memref<144xf32, #tpu.memory_space<smem>>
    %c18 = arith.constant 18 : index
    %28 = memref.load %arg7[%c18] : memref<144xf32, #tpu.memory_space<smem>>
    %c19 = arith.constant 19 : index
    %29 = memref.load %arg7[%c19] : memref<144xf32, #tpu.memory_space<smem>>
    %c20 = arith.constant 20 : index
    %30 = memref.load %arg7[%c20] : memref<144xf32, #tpu.memory_space<smem>>
    %c21 = arith.constant 21 : index
    %31 = memref.load %arg7[%c21] : memref<144xf32, #tpu.memory_space<smem>>
    %c22 = arith.constant 22 : index
    %32 = memref.load %arg7[%c22] : memref<144xf32, #tpu.memory_space<smem>>
    %c23 = arith.constant 23 : index
    %33 = memref.load %arg7[%c23] : memref<144xf32, #tpu.memory_space<smem>>
    %c24 = arith.constant 24 : index
    %34 = memref.load %arg7[%c24] : memref<144xf32, #tpu.memory_space<smem>>
    %c25 = arith.constant 25 : index
    %35 = memref.load %arg7[%c25] : memref<144xf32, #tpu.memory_space<smem>>
    %c26 = arith.constant 26 : index
    %36 = memref.load %arg7[%c26] : memref<144xf32, #tpu.memory_space<smem>>
    %c27 = arith.constant 27 : index
    %37 = memref.load %arg7[%c27] : memref<144xf32, #tpu.memory_space<smem>>
    %c28 = arith.constant 28 : index
    %38 = memref.load %arg7[%c28] : memref<144xf32, #tpu.memory_space<smem>>
    %c29 = arith.constant 29 : index
    %39 = memref.load %arg7[%c29] : memref<144xf32, #tpu.memory_space<smem>>
    %c30 = arith.constant 30 : index
    %40 = memref.load %arg7[%c30] : memref<144xf32, #tpu.memory_space<smem>>
    %c31 = arith.constant 31 : index
    %41 = memref.load %arg7[%c31] : memref<144xf32, #tpu.memory_space<smem>>
    %c32 = arith.constant 32 : index
    %42 = memref.load %arg7[%c32] : memref<144xf32, #tpu.memory_space<smem>>
    %c33 = arith.constant 33 : index
    %43 = memref.load %arg7[%c33] : memref<144xf32, #tpu.memory_space<smem>>
    %c34 = arith.constant 34 : index
    %44 = memref.load %arg7[%c34] : memref<144xf32, #tpu.memory_space<smem>>
    %c35 = arith.constant 35 : index
    %45 = memref.load %arg7[%c35] : memref<144xf32, #tpu.memory_space<smem>>
    %c36 = arith.constant 36 : index
    %46 = memref.load %arg7[%c36] : memref<144xf32, #tpu.memory_space<smem>>
    %c37 = arith.constant 37 : index
    %47 = memref.load %arg7[%c37] : memref<144xf32, #tpu.memory_space<smem>>
    %c38 = arith.constant 38 : index
    %48 = memref.load %arg7[%c38] : memref<144xf32, #tpu.memory_space<smem>>
    %c39 = arith.constant 39 : index
    %49 = memref.load %arg7[%c39] : memref<144xf32, #tpu.memory_space<smem>>
    %c40 = arith.constant 40 : index
    %50 = memref.load %arg7[%c40] : memref<144xf32, #tpu.memory_space<smem>>
    %c41 = arith.constant 41 : index
    %51 = memref.load %arg7[%c41] : memref<144xf32, #tpu.memory_space<smem>>
    %c42 = arith.constant 42 : index
    %52 = memref.load %arg7[%c42] : memref<144xf32, #tpu.memory_space<smem>>
    %c43 = arith.constant 43 : index
    %53 = memref.load %arg7[%c43] : memref<144xf32, #tpu.memory_space<smem>>
    %c44 = arith.constant 44 : index
    %54 = memref.load %arg7[%c44] : memref<144xf32, #tpu.memory_space<smem>>
    %c45 = arith.constant 45 : index
    %55 = memref.load %arg7[%c45] : memref<144xf32, #tpu.memory_space<smem>>
    %c46 = arith.constant 46 : index
    %56 = memref.load %arg7[%c46] : memref<144xf32, #tpu.memory_space<smem>>
    %c47 = arith.constant 47 : index
    %57 = memref.load %arg7[%c47] : memref<144xf32, #tpu.memory_space<smem>>
    %c48 = arith.constant 48 : index
    %58 = memref.load %arg7[%c48] : memref<144xf32, #tpu.memory_space<smem>>
    %c49 = arith.constant 49 : index
    %59 = memref.load %arg7[%c49] : memref<144xf32, #tpu.memory_space<smem>>
    %c50 = arith.constant 50 : index
    %60 = memref.load %arg7[%c50] : memref<144xf32, #tpu.memory_space<smem>>
    %c51 = arith.constant 51 : index
    %61 = memref.load %arg7[%c51] : memref<144xf32, #tpu.memory_space<smem>>
    %c52 = arith.constant 52 : index
    %62 = memref.load %arg7[%c52] : memref<144xf32, #tpu.memory_space<smem>>
    %c53 = arith.constant 53 : index
    %63 = memref.load %arg7[%c53] : memref<144xf32, #tpu.memory_space<smem>>
    %c54 = arith.constant 54 : index
    %64 = memref.load %arg7[%c54] : memref<144xf32, #tpu.memory_space<smem>>
    %c55 = arith.constant 55 : index
    %65 = memref.load %arg7[%c55] : memref<144xf32, #tpu.memory_space<smem>>
    %c56 = arith.constant 56 : index
    %66 = memref.load %arg7[%c56] : memref<144xf32, #tpu.memory_space<smem>>
    %c57 = arith.constant 57 : index
    %67 = memref.load %arg7[%c57] : memref<144xf32, #tpu.memory_space<smem>>
    %c58 = arith.constant 58 : index
    %68 = memref.load %arg7[%c58] : memref<144xf32, #tpu.memory_space<smem>>
    %c59 = arith.constant 59 : index
    %69 = memref.load %arg7[%c59] : memref<144xf32, #tpu.memory_space<smem>>
    %c60 = arith.constant 60 : index
    %70 = memref.load %arg7[%c60] : memref<144xf32, #tpu.memory_space<smem>>
    %c61 = arith.constant 61 : index
    %71 = memref.load %arg7[%c61] : memref<144xf32, #tpu.memory_space<smem>>
    %c62 = arith.constant 62 : index
    %72 = memref.load %arg7[%c62] : memref<144xf32, #tpu.memory_space<smem>>
    %c63 = arith.constant 63 : index
    %73 = memref.load %arg7[%c63] : memref<144xf32, #tpu.memory_space<smem>>
    %c64 = arith.constant 64 : index
    %74 = memref.load %arg7[%c64] : memref<144xf32, #tpu.memory_space<smem>>
    %c65 = arith.constant 65 : index
    %75 = memref.load %arg7[%c65] : memref<144xf32, #tpu.memory_space<smem>>
    %c66 = arith.constant 66 : index
    %76 = memref.load %arg7[%c66] : memref<144xf32, #tpu.memory_space<smem>>
    %c67 = arith.constant 67 : index
    %77 = memref.load %arg7[%c67] : memref<144xf32, #tpu.memory_space<smem>>
    %c68 = arith.constant 68 : index
    %78 = memref.load %arg7[%c68] : memref<144xf32, #tpu.memory_space<smem>>
    %c69 = arith.constant 69 : index
    %79 = memref.load %arg7[%c69] : memref<144xf32, #tpu.memory_space<smem>>
    %c70 = arith.constant 70 : index
    %80 = memref.load %arg7[%c70] : memref<144xf32, #tpu.memory_space<smem>>
    %c71 = arith.constant 71 : index
    %81 = memref.load %arg7[%c71] : memref<144xf32, #tpu.memory_space<smem>>
    %c72 = arith.constant 72 : index
    %82 = memref.load %arg7[%c72] : memref<144xf32, #tpu.memory_space<smem>>
    %c73 = arith.constant 73 : index
    %83 = memref.load %arg7[%c73] : memref<144xf32, #tpu.memory_space<smem>>
    %c74 = arith.constant 74 : index
    %84 = memref.load %arg7[%c74] : memref<144xf32, #tpu.memory_space<smem>>
    %c75 = arith.constant 75 : index
    %85 = memref.load %arg7[%c75] : memref<144xf32, #tpu.memory_space<smem>>
    %c76 = arith.constant 76 : index
    %86 = memref.load %arg7[%c76] : memref<144xf32, #tpu.memory_space<smem>>
    %c77 = arith.constant 77 : index
    %87 = memref.load %arg7[%c77] : memref<144xf32, #tpu.memory_space<smem>>
    %c78 = arith.constant 78 : index
    %88 = memref.load %arg7[%c78] : memref<144xf32, #tpu.memory_space<smem>>
    %c79 = arith.constant 79 : index
    %89 = memref.load %arg7[%c79] : memref<144xf32, #tpu.memory_space<smem>>
    %c80 = arith.constant 80 : index
    %90 = memref.load %arg7[%c80] : memref<144xf32, #tpu.memory_space<smem>>
    %c81 = arith.constant 81 : index
    %91 = memref.load %arg7[%c81] : memref<144xf32, #tpu.memory_space<smem>>
    %c82 = arith.constant 82 : index
    %92 = memref.load %arg7[%c82] : memref<144xf32, #tpu.memory_space<smem>>
    %c83 = arith.constant 83 : index
    %93 = memref.load %arg7[%c83] : memref<144xf32, #tpu.memory_space<smem>>
    %c84 = arith.constant 84 : index
    %94 = memref.load %arg7[%c84] : memref<144xf32, #tpu.memory_space<smem>>
    %c85 = arith.constant 85 : index
    %95 = memref.load %arg7[%c85] : memref<144xf32, #tpu.memory_space<smem>>
    %c86 = arith.constant 86 : index
    %96 = memref.load %arg7[%c86] : memref<144xf32, #tpu.memory_space<smem>>
    %c87 = arith.constant 87 : index
    %97 = memref.load %arg7[%c87] : memref<144xf32, #tpu.memory_space<smem>>
    %c88 = arith.constant 88 : index
    %98 = memref.load %arg7[%c88] : memref<144xf32, #tpu.memory_space<smem>>
    %c89 = arith.constant 89 : index
    %99 = memref.load %arg7[%c89] : memref<144xf32, #tpu.memory_space<smem>>
    %c90 = arith.constant 90 : index
    %100 = memref.load %arg7[%c90] : memref<144xf32, #tpu.memory_space<smem>>
    %c91 = arith.constant 91 : index
    %101 = memref.load %arg7[%c91] : memref<144xf32, #tpu.memory_space<smem>>
    %c92 = arith.constant 92 : index
    %102 = memref.load %arg7[%c92] : memref<144xf32, #tpu.memory_space<smem>>
    %c93 = arith.constant 93 : index
    %103 = memref.load %arg7[%c93] : memref<144xf32, #tpu.memory_space<smem>>
    %c94 = arith.constant 94 : index
    %104 = memref.load %arg7[%c94] : memref<144xf32, #tpu.memory_space<smem>>
    %c95 = arith.constant 95 : index
    %105 = memref.load %arg7[%c95] : memref<144xf32, #tpu.memory_space<smem>>
    %c96 = arith.constant 96 : index
    %106 = memref.load %arg7[%c96] : memref<144xf32, #tpu.memory_space<smem>>
    %c97 = arith.constant 97 : index
    %107 = memref.load %arg7[%c97] : memref<144xf32, #tpu.memory_space<smem>>
    %c98 = arith.constant 98 : index
    %108 = memref.load %arg7[%c98] : memref<144xf32, #tpu.memory_space<smem>>
    %c99 = arith.constant 99 : index
    %109 = memref.load %arg7[%c99] : memref<144xf32, #tpu.memory_space<smem>>
    %c100 = arith.constant 100 : index
    %110 = memref.load %arg7[%c100] : memref<144xf32, #tpu.memory_space<smem>>
    %c101 = arith.constant 101 : index
    %111 = memref.load %arg7[%c101] : memref<144xf32, #tpu.memory_space<smem>>
    %c102 = arith.constant 102 : index
    %112 = memref.load %arg7[%c102] : memref<144xf32, #tpu.memory_space<smem>>
    %c103 = arith.constant 103 : index
    %113 = memref.load %arg7[%c103] : memref<144xf32, #tpu.memory_space<smem>>
    %c104 = arith.constant 104 : index
    %114 = memref.load %arg7[%c104] : memref<144xf32, #tpu.memory_space<smem>>
    %c105 = arith.constant 105 : index
    %115 = memref.load %arg7[%c105] : memref<144xf32, #tpu.memory_space<smem>>
    %c106 = arith.constant 106 : index
    %116 = memref.load %arg7[%c106] : memref<144xf32, #tpu.memory_space<smem>>
    %c107 = arith.constant 107 : index
    %117 = memref.load %arg7[%c107] : memref<144xf32, #tpu.memory_space<smem>>
    %c108 = arith.constant 108 : index
    %118 = memref.load %arg7[%c108] : memref<144xf32, #tpu.memory_space<smem>>
    %c109 = arith.constant 109 : index
    %119 = memref.load %arg7[%c109] : memref<144xf32, #tpu.memory_space<smem>>
    %c110 = arith.constant 110 : index
    %120 = memref.load %arg7[%c110] : memref<144xf32, #tpu.memory_space<smem>>
    %c111 = arith.constant 111 : index
    %121 = memref.load %arg7[%c111] : memref<144xf32, #tpu.memory_space<smem>>
    %c112 = arith.constant 112 : index
    %122 = memref.load %arg7[%c112] : memref<144xf32, #tpu.memory_space<smem>>
    %c113 = arith.constant 113 : index
    %123 = memref.load %arg7[%c113] : memref<144xf32, #tpu.memory_space<smem>>
    %c114 = arith.constant 114 : index
    %124 = memref.load %arg7[%c114] : memref<144xf32, #tpu.memory_space<smem>>
    %c115 = arith.constant 115 : index
    %125 = memref.load %arg7[%c115] : memref<144xf32, #tpu.memory_space<smem>>
    %c116 = arith.constant 116 : index
    %126 = memref.load %arg7[%c116] : memref<144xf32, #tpu.memory_space<smem>>
    %c117 = arith.constant 117 : index
    %127 = memref.load %arg7[%c117] : memref<144xf32, #tpu.memory_space<smem>>
    %c118 = arith.constant 118 : index
    %128 = memref.load %arg7[%c118] : memref<144xf32, #tpu.memory_space<smem>>
    %c119 = arith.constant 119 : index
    %129 = memref.load %arg7[%c119] : memref<144xf32, #tpu.memory_space<smem>>
    %c120 = arith.constant 120 : index
    %130 = memref.load %arg7[%c120] : memref<144xf32, #tpu.memory_space<smem>>
    %c121 = arith.constant 121 : index
    %131 = memref.load %arg7[%c121] : memref<144xf32, #tpu.memory_space<smem>>
    %c122 = arith.constant 122 : index
    %132 = memref.load %arg7[%c122] : memref<144xf32, #tpu.memory_space<smem>>
    %c123 = arith.constant 123 : index
    %133 = memref.load %arg7[%c123] : memref<144xf32, #tpu.memory_space<smem>>
    %c124 = arith.constant 124 : index
    %134 = memref.load %arg7[%c124] : memref<144xf32, #tpu.memory_space<smem>>
    %c125 = arith.constant 125 : index
    %135 = memref.load %arg7[%c125] : memref<144xf32, #tpu.memory_space<smem>>
    %c126 = arith.constant 126 : index
    %136 = memref.load %arg7[%c126] : memref<144xf32, #tpu.memory_space<smem>>
    %c127 = arith.constant 127 : index
    %137 = memref.load %arg7[%c127] : memref<144xf32, #tpu.memory_space<smem>>
    %c128 = arith.constant 128 : index
    %138 = memref.load %arg7[%c128] : memref<144xf32, #tpu.memory_space<smem>>
    %c129 = arith.constant 129 : index
    %139 = memref.load %arg7[%c129] : memref<144xf32, #tpu.memory_space<smem>>
    %c130 = arith.constant 130 : index
    %140 = memref.load %arg7[%c130] : memref<144xf32, #tpu.memory_space<smem>>
    %c131 = arith.constant 131 : index
    %141 = memref.load %arg7[%c131] : memref<144xf32, #tpu.memory_space<smem>>
    %c132 = arith.constant 132 : index
    %142 = memref.load %arg7[%c132] : memref<144xf32, #tpu.memory_space<smem>>
    %c133 = arith.constant 133 : index
    %143 = memref.load %arg7[%c133] : memref<144xf32, #tpu.memory_space<smem>>
    %c134 = arith.constant 134 : index
    %144 = memref.load %arg7[%c134] : memref<144xf32, #tpu.memory_space<smem>>
    %c135 = arith.constant 135 : index
    %145 = memref.load %arg7[%c135] : memref<144xf32, #tpu.memory_space<smem>>
    %c136 = arith.constant 136 : index
    %146 = memref.load %arg7[%c136] : memref<144xf32, #tpu.memory_space<smem>>
    %c137 = arith.constant 137 : index
    %147 = memref.load %arg7[%c137] : memref<144xf32, #tpu.memory_space<smem>>
    %c138 = arith.constant 138 : index
    %148 = memref.load %arg7[%c138] : memref<144xf32, #tpu.memory_space<smem>>
    %c139 = arith.constant 139 : index
    %149 = memref.load %arg7[%c139] : memref<144xf32, #tpu.memory_space<smem>>
    %c140 = arith.constant 140 : index
    %150 = memref.load %arg7[%c140] : memref<144xf32, #tpu.memory_space<smem>>
    %c141 = arith.constant 141 : index
    %151 = memref.load %arg7[%c141] : memref<144xf32, #tpu.memory_space<smem>>
    %c142 = arith.constant 142 : index
    %152 = memref.load %arg7[%c142] : memref<144xf32, #tpu.memory_space<smem>>
    %c143 = arith.constant 143 : index
    %153 = memref.load %arg7[%c143] : memref<144xf32, #tpu.memory_space<smem>>
    %c0_10 = arith.constant 0 : index
    %154 = memref.load %arg8[%c0_10] : memref<4xf32, #tpu.memory_space<smem>>
    %c1_11 = arith.constant 1 : index
    %155 = memref.load %arg8[%c1_11] : memref<4xf32, #tpu.memory_space<smem>>
    %c2_12 = arith.constant 2 : index
    %156 = memref.load %arg8[%c2_12] : memref<4xf32, #tpu.memory_space<smem>>
    %c3_13 = arith.constant 3 : index
    %157 = memref.load %arg8[%c3_13] : memref<4xf32, #tpu.memory_space<smem>>
    %c0_14 = arith.constant 0 : index
    %158 = memref.load %arg9[%c0_14] : memref<72xf32, #tpu.memory_space<smem>>
    %c1_15 = arith.constant 1 : index
    %159 = memref.load %arg9[%c1_15] : memref<72xf32, #tpu.memory_space<smem>>
    %c2_16 = arith.constant 2 : index
    %160 = memref.load %arg9[%c2_16] : memref<72xf32, #tpu.memory_space<smem>>
    %c3_17 = arith.constant 3 : index
    %161 = memref.load %arg9[%c3_17] : memref<72xf32, #tpu.memory_space<smem>>
    %c4_18 = arith.constant 4 : index
    %162 = memref.load %arg9[%c4_18] : memref<72xf32, #tpu.memory_space<smem>>
    %c5_19 = arith.constant 5 : index
    %163 = memref.load %arg9[%c5_19] : memref<72xf32, #tpu.memory_space<smem>>
    %c6_20 = arith.constant 6 : index
    %164 = memref.load %arg9[%c6_20] : memref<72xf32, #tpu.memory_space<smem>>
    %c7_21 = arith.constant 7 : index
    %165 = memref.load %arg9[%c7_21] : memref<72xf32, #tpu.memory_space<smem>>
    %c8_22 = arith.constant 8 : index
    %166 = memref.load %arg9[%c8_22] : memref<72xf32, #tpu.memory_space<smem>>
    %c9_23 = arith.constant 9 : index
    %167 = memref.load %arg9[%c9_23] : memref<72xf32, #tpu.memory_space<smem>>
    %c10_24 = arith.constant 10 : index
    %168 = memref.load %arg9[%c10_24] : memref<72xf32, #tpu.memory_space<smem>>
    %c11_25 = arith.constant 11 : index
    %169 = memref.load %arg9[%c11_25] : memref<72xf32, #tpu.memory_space<smem>>
    %c12_26 = arith.constant 12 : index
    %170 = memref.load %arg9[%c12_26] : memref<72xf32, #tpu.memory_space<smem>>
    %c13_27 = arith.constant 13 : index
    %171 = memref.load %arg9[%c13_27] : memref<72xf32, #tpu.memory_space<smem>>
    %c14_28 = arith.constant 14 : index
    %172 = memref.load %arg9[%c14_28] : memref<72xf32, #tpu.memory_space<smem>>
    %c15_29 = arith.constant 15 : index
    %173 = memref.load %arg9[%c15_29] : memref<72xf32, #tpu.memory_space<smem>>
    %c16_30 = arith.constant 16 : index
    %174 = memref.load %arg9[%c16_30] : memref<72xf32, #tpu.memory_space<smem>>
    %c17_31 = arith.constant 17 : index
    %175 = memref.load %arg9[%c17_31] : memref<72xf32, #tpu.memory_space<smem>>
    %c18_32 = arith.constant 18 : index
    %176 = memref.load %arg9[%c18_32] : memref<72xf32, #tpu.memory_space<smem>>
    %c19_33 = arith.constant 19 : index
    %177 = memref.load %arg9[%c19_33] : memref<72xf32, #tpu.memory_space<smem>>
    %c20_34 = arith.constant 20 : index
    %178 = memref.load %arg9[%c20_34] : memref<72xf32, #tpu.memory_space<smem>>
    %c21_35 = arith.constant 21 : index
    %179 = memref.load %arg9[%c21_35] : memref<72xf32, #tpu.memory_space<smem>>
    %c22_36 = arith.constant 22 : index
    %180 = memref.load %arg9[%c22_36] : memref<72xf32, #tpu.memory_space<smem>>
    %c23_37 = arith.constant 23 : index
    %181 = memref.load %arg9[%c23_37] : memref<72xf32, #tpu.memory_space<smem>>
    %c24_38 = arith.constant 24 : index
    %182 = memref.load %arg9[%c24_38] : memref<72xf32, #tpu.memory_space<smem>>
    %c25_39 = arith.constant 25 : index
    %183 = memref.load %arg9[%c25_39] : memref<72xf32, #tpu.memory_space<smem>>
    %c26_40 = arith.constant 26 : index
    %184 = memref.load %arg9[%c26_40] : memref<72xf32, #tpu.memory_space<smem>>
    %c27_41 = arith.constant 27 : index
    %185 = memref.load %arg9[%c27_41] : memref<72xf32, #tpu.memory_space<smem>>
    %c28_42 = arith.constant 28 : index
    %186 = memref.load %arg9[%c28_42] : memref<72xf32, #tpu.memory_space<smem>>
    %c29_43 = arith.constant 29 : index
    %187 = memref.load %arg9[%c29_43] : memref<72xf32, #tpu.memory_space<smem>>
    %c30_44 = arith.constant 30 : index
    %188 = memref.load %arg9[%c30_44] : memref<72xf32, #tpu.memory_space<smem>>
    %c31_45 = arith.constant 31 : index
    %189 = memref.load %arg9[%c31_45] : memref<72xf32, #tpu.memory_space<smem>>
    %c32_46 = arith.constant 32 : index
    %190 = memref.load %arg9[%c32_46] : memref<72xf32, #tpu.memory_space<smem>>
    %c33_47 = arith.constant 33 : index
    %191 = memref.load %arg9[%c33_47] : memref<72xf32, #tpu.memory_space<smem>>
    %c34_48 = arith.constant 34 : index
    %192 = memref.load %arg9[%c34_48] : memref<72xf32, #tpu.memory_space<smem>>
    %c35_49 = arith.constant 35 : index
    %193 = memref.load %arg9[%c35_49] : memref<72xf32, #tpu.memory_space<smem>>
    %c36_50 = arith.constant 36 : index
    %194 = memref.load %arg9[%c36_50] : memref<72xf32, #tpu.memory_space<smem>>
    %c37_51 = arith.constant 37 : index
    %195 = memref.load %arg9[%c37_51] : memref<72xf32, #tpu.memory_space<smem>>
    %c38_52 = arith.constant 38 : index
    %196 = memref.load %arg9[%c38_52] : memref<72xf32, #tpu.memory_space<smem>>
    %c39_53 = arith.constant 39 : index
    %197 = memref.load %arg9[%c39_53] : memref<72xf32, #tpu.memory_space<smem>>
    %c40_54 = arith.constant 40 : index
    %198 = memref.load %arg9[%c40_54] : memref<72xf32, #tpu.memory_space<smem>>
    %c41_55 = arith.constant 41 : index
    %199 = memref.load %arg9[%c41_55] : memref<72xf32, #tpu.memory_space<smem>>
    %c42_56 = arith.constant 42 : index
    %200 = memref.load %arg9[%c42_56] : memref<72xf32, #tpu.memory_space<smem>>
    %c43_57 = arith.constant 43 : index
    %201 = memref.load %arg9[%c43_57] : memref<72xf32, #tpu.memory_space<smem>>
    %c44_58 = arith.constant 44 : index
    %202 = memref.load %arg9[%c44_58] : memref<72xf32, #tpu.memory_space<smem>>
    %c45_59 = arith.constant 45 : index
    %203 = memref.load %arg9[%c45_59] : memref<72xf32, #tpu.memory_space<smem>>
    %c46_60 = arith.constant 46 : index
    %204 = memref.load %arg9[%c46_60] : memref<72xf32, #tpu.memory_space<smem>>
    %c47_61 = arith.constant 47 : index
    %205 = memref.load %arg9[%c47_61] : memref<72xf32, #tpu.memory_space<smem>>
    %c48_62 = arith.constant 48 : index
    %206 = memref.load %arg9[%c48_62] : memref<72xf32, #tpu.memory_space<smem>>
    %c49_63 = arith.constant 49 : index
    %207 = memref.load %arg9[%c49_63] : memref<72xf32, #tpu.memory_space<smem>>
    %c50_64 = arith.constant 50 : index
    %208 = memref.load %arg9[%c50_64] : memref<72xf32, #tpu.memory_space<smem>>
    %c51_65 = arith.constant 51 : index
    %209 = memref.load %arg9[%c51_65] : memref<72xf32, #tpu.memory_space<smem>>
    %c52_66 = arith.constant 52 : index
    %210 = memref.load %arg9[%c52_66] : memref<72xf32, #tpu.memory_space<smem>>
    %c53_67 = arith.constant 53 : index
    %211 = memref.load %arg9[%c53_67] : memref<72xf32, #tpu.memory_space<smem>>
    %c54_68 = arith.constant 54 : index
    %212 = memref.load %arg9[%c54_68] : memref<72xf32, #tpu.memory_space<smem>>
    %c55_69 = arith.constant 55 : index
    %213 = memref.load %arg9[%c55_69] : memref<72xf32, #tpu.memory_space<smem>>
    %c56_70 = arith.constant 56 : index
    %214 = memref.load %arg9[%c56_70] : memref<72xf32, #tpu.memory_space<smem>>
    %c57_71 = arith.constant 57 : index
    %215 = memref.load %arg9[%c57_71] : memref<72xf32, #tpu.memory_space<smem>>
    %c58_72 = arith.constant 58 : index
    %216 = memref.load %arg9[%c58_72] : memref<72xf32, #tpu.memory_space<smem>>
    %c59_73 = arith.constant 59 : index
    %217 = memref.load %arg9[%c59_73] : memref<72xf32, #tpu.memory_space<smem>>
    %c60_74 = arith.constant 60 : index
    %218 = memref.load %arg9[%c60_74] : memref<72xf32, #tpu.memory_space<smem>>
    %c61_75 = arith.constant 61 : index
    %219 = memref.load %arg9[%c61_75] : memref<72xf32, #tpu.memory_space<smem>>
    %c62_76 = arith.constant 62 : index
    %220 = memref.load %arg9[%c62_76] : memref<72xf32, #tpu.memory_space<smem>>
    %c63_77 = arith.constant 63 : index
    %221 = memref.load %arg9[%c63_77] : memref<72xf32, #tpu.memory_space<smem>>
    %c64_78 = arith.constant 64 : index
    %222 = memref.load %arg9[%c64_78] : memref<72xf32, #tpu.memory_space<smem>>
    %c65_79 = arith.constant 65 : index
    %223 = memref.load %arg9[%c65_79] : memref<72xf32, #tpu.memory_space<smem>>
    %c66_80 = arith.constant 66 : index
    %224 = memref.load %arg9[%c66_80] : memref<72xf32, #tpu.memory_space<smem>>
    %c67_81 = arith.constant 67 : index
    %225 = memref.load %arg9[%c67_81] : memref<72xf32, #tpu.memory_space<smem>>
    %c68_82 = arith.constant 68 : index
    %226 = memref.load %arg9[%c68_82] : memref<72xf32, #tpu.memory_space<smem>>
    %c69_83 = arith.constant 69 : index
    %227 = memref.load %arg9[%c69_83] : memref<72xf32, #tpu.memory_space<smem>>
    %c70_84 = arith.constant 70 : index
    %228 = memref.load %arg9[%c70_84] : memref<72xf32, #tpu.memory_space<smem>>
    %c71_85 = arith.constant 71 : index
    %229 = memref.load %arg9[%c71_85] : memref<72xf32, #tpu.memory_space<smem>>
    %c0_86 = arith.constant 0 : index
    %230 = memref.load %arg10[%c0_86] : memref<4xf32, #tpu.memory_space<smem>>
    %c1_87 = arith.constant 1 : index
    %231 = memref.load %arg10[%c1_87] : memref<4xf32, #tpu.memory_space<smem>>
    %c2_88 = arith.constant 2 : index
    %232 = memref.load %arg10[%c2_88] : memref<4xf32, #tpu.memory_space<smem>>
    %c3_89 = arith.constant 3 : index
    %233 = memref.load %arg10[%c3_89] : memref<4xf32, #tpu.memory_space<smem>>
    %c0_90 = arith.constant 0 : index
    %c0_91 = arith.constant 0 : index
    %c0_92 = arith.constant 0 : index
    %234 = vector.load %arg4[%c0_90, %c0_91, %c0_92] : memref<1x4x128xbf16, #tpu.memory_space<vmem>>, vector<1x4x128xbf16>
    %235 = vector.shape_cast %234 : vector<1x4x128xbf16> to vector<4x128xbf16>
    %236 = arith.extf %235 : vector<4x128xbf16> to vector<4x128xf32>
    %237 = vector.broadcast %8 : f32 to vector<4x128xf32>
    %238 = arith.mulf %237, %236 : vector<4x128xf32>
    %239 = vector.broadcast %9 : f32 to vector<4x128xf32>
    %240 = arith.mulf %239, %236 : vector<4x128xf32>
    %c0_93 = arith.constant 0 : index
    %c0_94 = arith.constant 0 : index
    %c0_95 = arith.constant 0 : index
    %c0_96 = arith.constant 0 : index
    %c0_97 = arith.constant 0 : index
    %241 = vector.load %arg2[%c0_93, %c0_94, %c0_95, %c0_96, %c0_97] : memref<1x1x4x4x128xf32, #tpu.memory_space<vmem>>, vector<1x1x1x4x128xf32>
    %242 = vector.shape_cast %241 : vector<1x1x1x4x128xf32> to vector<4x128xf32>
    %243 = vector.broadcast %0 : f32 to vector<4x128xf32>
    %244 = arith.mulf %243, %242 : vector<4x128xf32>
    %245 = arith.addf %238, %244 : vector<4x128xf32>
    %246 = vector.broadcast %4 : f32 to vector<4x128xf32>
    %247 = arith.mulf %246, %242 : vector<4x128xf32>
    %248 = arith.addf %240, %247 : vector<4x128xf32>
    %c0_98 = arith.constant 0 : index
    %c0_99 = arith.constant 0 : index
    %c1_100 = arith.constant 1 : index
    %c0_101 = arith.constant 0 : index
    %c0_102 = arith.constant 0 : index
    %249 = vector.load %arg2[%c0_98, %c0_99, %c1_100, %c0_101, %c0_102] : memref<1x1x4x4x128xf32, #tpu.memory_space<vmem>>, vector<1x1x1x4x128xf32>
    %250 = vector.shape_cast %249 : vector<1x1x1x4x128xf32> to vector<4x128xf32>
    %251 = vector.broadcast %1 : f32 to vector<4x128xf32>
    %252 = arith.mulf %251, %250 : vector<4x128xf32>
    %253 = arith.addf %245, %252 : vector<4x128xf32>
    %254 = vector.broadcast %5 : f32 to vector<4x128xf32>
    %255 = arith.mulf %254, %250 : vector<4x128xf32>
    %256 = arith.addf %248, %255 : vector<4x128xf32>
    %c0_103 = arith.constant 0 : index
    %c0_104 = arith.constant 0 : index
    %c2_105 = arith.constant 2 : index
    %c0_106 = arith.constant 0 : index
    %c0_107 = arith.constant 0 : index
    %257 = vector.load %arg2[%c0_103, %c0_104, %c2_105, %c0_106, %c0_107] : memref<1x1x4x4x128xf32, #tpu.memory_space<vmem>>, vector<1x1x1x4x128xf32>
    %258 = vector.shape_cast %257 : vector<1x1x1x4x128xf32> to vector<4x128xf32>
    %259 = vector.broadcast %2 : f32 to vector<4x128xf32>
    %260 = arith.mulf %259, %258 : vector<4x128xf32>
    %261 = arith.addf %253, %260 : vector<4x128xf32>
    %262 = vector.broadcast %6 : f32 to vector<4x128xf32>
    %263 = arith.mulf %262, %258 : vector<4x128xf32>
    %264 = arith.addf %256, %263 : vector<4x128xf32>
    %c0_108 = arith.constant 0 : index
    %c0_109 = arith.constant 0 : index
    %c3_110 = arith.constant 3 : index
    %c0_111 = arith.constant 0 : index
    %c0_112 = arith.constant 0 : index
    %265 = vector.load %arg2[%c0_108, %c0_109, %c3_110, %c0_111, %c0_112] : memref<1x1x4x4x128xf32, #tpu.memory_space<vmem>>, vector<1x1x1x4x128xf32>
    %266 = vector.shape_cast %265 : vector<1x1x1x4x128xf32> to vector<4x128xf32>
    %267 = vector.broadcast %3 : f32 to vector<4x128xf32>
    %268 = arith.mulf %267, %266 : vector<4x128xf32>
    %269 = arith.addf %261, %268 : vector<4x128xf32>
    %270 = vector.broadcast %7 : f32 to vector<4x128xf32>
    %271 = arith.mulf %270, %266 : vector<4x128xf32>
    %272 = arith.addf %264, %271 : vector<4x128xf32>
    %c0_113 = arith.constant 0 : index
    %c0_114 = arith.constant 0 : index
    %c0_115 = arith.constant 0 : index
    %273 = vector.load %arg12[%c0_113, %c0_114, %c0_115] : memref<2x4x128xf32, #tpu.memory_space<vmem>>, vector<1x4x128xf32>
    %274 = vector.shape_cast %273 : vector<1x4x128xf32> to vector<4x128xf32>
    %275 = vector.shape_cast %269 : vector<4x128xf32> to vector<1x4x128xf32>
    tpu.vector_store %arg12[%c0_113, %c0_114, %c0_115], %275 {strides = array<i32>} : memref<2x4x128xf32, #tpu.memory_space<vmem>>, vector<1x4x128xf32>,
    %c1_116 = arith.constant 1 : index
    %c0_117 = arith.constant 0 : index
    %c0_118 = arith.constant 0 : index
    %276 = vector.load %arg12[%c1_116, %c0_117, %c0_118] : memref<2x4x128xf32, #tpu.memory_space<vmem>>, vector<1x4x128xf32>
    %277 = vector.shape_cast %276 : vector<1x4x128xf32> to vector<4x128xf32>
    %278 = vector.shape_cast %272 : vector<4x128xf32> to vector<1x4x128xf32>
    tpu.vector_store %arg12[%c1_116, %c0_117, %c0_118], %278 {strides = array<i32>} : memref<2x4x128xf32, #tpu.memory_space<vmem>>, vector<1x4x128xf32>,
    %cst = arith.constant 0.000000e+00 : f32
    %279 = vector.broadcast %cst : f32 to vector<3x128xf32>
    %cst_119 = arith.constant 0.000000e+00 : f32
    %280 = vector.broadcast %cst_119 : f32 to vector<3x128xf32>
    %cst_120 = arith.constant 0.000000e+00 : f32
    %281 = vector.broadcast %cst_120 : f32 to vector<3x128xf32>
    %cst_121 = arith.constant 0.000000e+00 : f32
    %282 = vector.broadcast %cst_121 : f32 to vector<3x128xf32>
    %cst_122 = arith.constant 0.000000e+00 : f32
    %283 = vector.broadcast %cst_122 : f32 to vector<3x128xf32>
    %cst_123 = arith.constant 0.000000e+00 : f32
    %284 = vector.broadcast %cst_123 : f32 to vector<3x128xf32>
    %cst_124 = arith.constant 0.000000e+00 : f32
    %285 = vector.broadcast %cst_124 : f32 to vector<3x128xf32>
    %cst_125 = arith.constant 0.000000e+00 : f32
    %286 = vector.broadcast %cst_125 : f32 to vector<3x128xf32>
    %c0_126 = arith.constant 0 : index
    %c0_127 = arith.constant 0 : index
    %c0_128 = arith.constant 0 : index
    %c0_129 = arith.constant 0 : index
    %c0_130 = arith.constant 0 : index
    %287 = vector.load %arg2[%c0_126, %c0_127, %c0_128, %c0_129, %c0_130] : memref<1x1x4x4x128xf32, #tpu.memory_space<vmem>>, vector<1x1x1x3x128xf32>
    %288 = vector.shape_cast %287 : vector<1x1x1x3x128xf32> to vector<3x128xf32>
    %289 = vector.broadcast %74 : f32 to vector<3x128xf32>
    %290 = arith.mulf %289, %288 : vector<3x128xf32>
    %291 = arith.addf %279, %290 : vector<3x128xf32>
    %292 = vector.broadcast %75 : f32 to vector<3x128xf32>
    %293 = arith.mulf %292, %288 : vector<3x128xf32>
    %294 = arith.addf %280, %293 : vector<3x128xf32>
    %295 = vector.broadcast %76 : f32 to vector<3x128xf32>
    %296 = arith.mulf %295, %288 : vector<3x128xf32>
    %297 = arith.addf %281, %296 : vector<3x128xf32>
    %298 = vector.broadcast %77 : f32 to vector<3x128xf32>
    %299 = arith.mulf %298, %288 : vector<3x128xf32>
    %300 = arith.addf %282, %299 : vector<3x128xf32>
    %c0_131 = arith.constant 0 : index
    %c0_132 = arith.constant 0 : index
    %c1_133 = arith.constant 1 : index
    %c0_134 = arith.constant 0 : index
    %c0_135 = arith.constant 0 : index
    %301 = vector.load %arg2[%c0_131, %c0_132, %c1_133, %c0_134, %c0_135] : memref<1x1x4x4x128xf32, #tpu.memory_space<vmem>>, vector<1x1x1x3x128xf32>
    %302 = vector.shape_cast %301 : vector<1x1x1x3x128xf32> to vector<3x128xf32>
    %303 = vector.broadcast %78 : f32 to vector<3x128xf32>
    %304 = arith.mulf %303, %302 : vector<3x128xf32>
    %305 = arith.addf %291, %304 : vector<3x128xf32>
    %306 = vector.broadcast %79 : f32 to vector<3x128xf32>
    %307 = arith.mulf %306, %302 : vector<3x128xf32>
    %308 = arith.addf %294, %307 : vector<3x128xf32>
    %309 = vector.broadcast %80 : f32 to vector<3x128xf32>
    %310 = arith.mulf %309, %302 : vector<3x128xf32>
    %311 = arith.addf %297, %310 : vector<3x128xf32>
    %312 = vector.broadcast %81 : f32 to vector<3x128xf32>
    %313 = arith.mulf %312, %302 : vector<3x128xf32>
    %314 = arith.addf %300, %313 : vector<3x128xf32>
    %c0_136 = arith.constant 0 : index
    %c0_137 = arith.constant 0 : index
    %c2_138 = arith.constant 2 : index
    %c0_139 = arith.constant 0 : index
    %c0_140 = arith.constant 0 : index
    %315 = vector.load %arg2[%c0_136, %c0_137, %c2_138, %c0_139, %c0_140] : memref<1x1x4x4x128xf32, #tpu.memory_space<vmem>>, vector<1x1x1x3x128xf32>
    %316 = vector.shape_cast %315 : vector<1x1x1x3x128xf32> to vector<3x128xf32>
    %317 = vector.broadcast %82 : f32 to vector<3x128xf32>
    %318 = arith.mulf %317, %316 : vector<3x128xf32>
    %319 = arith.addf %305, %318 : vector<3x128xf32>
    %320 = vector.broadcast %83 : f32 to vector<3x128xf32>
    %321 = arith.mulf %320, %316 : vector<3x128xf32>
    %322 = arith.addf %308, %321 : vector<3x128xf32>
    %323 = vector.broadcast %84 : f32 to vector<3x128xf32>
    %324 = arith.mulf %323, %316 : vector<3x128xf32>
    %325 = arith.addf %311, %324 : vector<3x128xf32>
    %326 = vector.broadcast %85 : f32 to vector<3x128xf32>
    %327 = arith.mulf %326, %316 : vector<3x128xf32>
    %328 = arith.addf %314, %327 : vector<3x128xf32>
    %c0_141 = arith.constant 0 : index
    %c0_142 = arith.constant 0 : index
    %c3_143 = arith.constant 3 : index
    %c0_144 = arith.constant 0 : index
    %c0_145 = arith.constant 0 : index
    %329 = vector.load %arg2[%c0_141, %c0_142, %c3_143, %c0_144, %c0_145] : memref<1x1x4x4x128xf32, #tpu.memory_space<vmem>>, vector<1x1x1x3x128xf32>
    %330 = vector.shape_cast %329 : vector<1x1x1x3x128xf32> to vector<3x128xf32>
    %331 = vector.broadcast %86 : f32 to vector<3x128xf32>
    %332 = arith.mulf %331, %330 : vector<3x128xf32>
    %333 = arith.addf %319, %332 : vector<3x128xf32>
    %334 = vector.broadcast %87 : f32 to vector<3x128xf32>
    %335 = arith.mulf %334, %330 : vector<3x128xf32>
    %336 = arith.addf %322, %335 : vector<3x128xf32>
    %337 = vector.broadcast %88 : f32 to vector<3x128xf32>
    %338 = arith.mulf %337, %330 : vector<3x128xf32>
    %339 = arith.addf %325, %338 : vector<3x128xf32>
    %340 = vector.broadcast %89 : f32 to vector<3x128xf32>
    %341 = arith.mulf %340, %330 : vector<3x128xf32>
    %342 = arith.addf %328, %341 : vector<3x128xf32>
    %c0_146 = arith.constant 0 : index
    %c0_147 = arith.constant 0 : index
    %c0_148 = arith.constant 0 : index
    %343 = vector.load %arg12[%c0_146, %c0_147, %c0_148] : memref<2x4x128xf32, #tpu.memory_space<vmem>>, vector<1x3x128xf32>
    %344 = vector.shape_cast %343 : vector<1x3x128xf32> to vector<3x128xf32>
    %345 = vector.broadcast %190 : f32 to vector<3x128xf32>
    %346 = arith.mulf %345, %344 : vector<3x128xf32>
    %347 = arith.addf %283, %346 : vector<3x128xf32>
    %348 = vector.broadcast %191 : f32 to vector<3x128xf32>
    %349 = arith.mulf %348, %344 : vector<3x128xf32>
    %350 = arith.addf %284, %349 : vector<3x128xf32>
    %351 = vector.broadcast %192 : f32 to vector<3x128xf32>
    %352 = arith.mulf %351, %344 : vector<3x128xf32>
    %353 = arith.addf %285, %352 : vector<3x128xf32>
    %354 = vector.broadcast %193 : f32 to vector<3x128xf32>
    %355 = arith.mulf %354, %344 : vector<3x128xf32>
    %356 = arith.addf %286, %355 : vector<3x128xf32>
    %c1_149 = arith.constant 1 : index
    %c0_150 = arith.constant 0 : index
    %c0_151 = arith.constant 0 : index
    %357 = vector.load %arg12[%c1_149, %c0_150, %c0_151] : memref<2x4x128xf32, #tpu.memory_space<vmem>>, vector<1x3x128xf32>
    %358 = vector.shape_cast %357 : vector<1x3x128xf32> to vector<3x128xf32>
    %359 = vector.broadcast %194 : f32 to vector<3x128xf32>
    %360 = arith.mulf %359, %358 : vector<3x128xf32>
    %361 = arith.addf %347, %360 : vector<3x128xf32>
    %362 = vector.broadcast %195 : f32 to vector<3x128xf32>
    %363 = arith.mulf %362, %358 : vector<3x128xf32>
    %364 = arith.addf %350, %363 : vector<3x128xf32>
    %365 = vector.broadcast %196 : f32 to vector<3x128xf32>
    %366 = arith.mulf %365, %358 : vector<3x128xf32>
    %367 = arith.addf %353, %366 : vector<3x128xf32>
    %368 = vector.broadcast %197 : f32 to vector<3x128xf32>
    %369 = arith.mulf %368, %358 : vector<3x128xf32>
    %370 = arith.addf %356, %369 : vector<3x128xf32>
    %c0_152 = arith.constant 0 : index
    %c0_153 = arith.constant 0 : index
    %c0_154 = arith.constant 0 : index
    %c0_155 = arith.constant 0 : index
    %c0_156 = arith.constant 0 : index
    %371 = vector.load %arg3[%c0_152, %c0_153, %c0_154, %c0_155, %c0_156] : memref<1x1x4x3x128xbf16, #tpu.memory_space<vmem>>, vector<1x1x1x3x128xbf16>
    %372 = vector.shape_cast %371 : vector<1x1x1x3x128xbf16> to vector<3x128xbf16>
    %373 = arith.extf %372 : vector<3x128xbf16> to vector<3x128xf32>
    %374 = vector.broadcast %154 : f32 to vector<3x128xf32>
    %375 = arith.addf %333, %374 : vector<3x128xf32>
    %376 = vector.broadcast %230 : f32 to vector<3x128xf32>
    %377 = arith.addf %361, %376 : vector<3x128xf32>
    %378 = arith.subf %375, %377 : vector<3x128xf32>
    %379 = arith.mulf %373, %378 : vector<3x128xf32>
    %380 = arith.addf %377, %379 : vector<3x128xf32>
    %c0_157 = arith.constant 0 : index
    %c0_158 = arith.constant 0 : index
    %c0_159 = arith.constant 0 : index
    %c0_160 = arith.constant 0 : index
    %c0_161 = arith.constant 0 : index
    %381 = vector.load %arg11[%c0_157, %c0_158, %c0_159, %c0_160, %c0_161] : memref<1x1x16x3x128xf32, #tpu.memory_space<vmem>>, vector<1x1x1x3x128xf32>
    %382 = vector.shape_cast %381 : vector<1x1x1x3x128xf32> to vector<3x128xf32>
    %383 = vector.shape_cast %380 : vector<3x128xf32> to vector<1x1x1x3x128xf32>
    tpu.vector_store %arg11[%c0_157, %c0_158, %c0_159, %c0_160, %c0_161], %383 {strides = array<i32>} : memref<1x1x16x3x128xf32, #tpu.memory_space<vmem>>, vector<1x1x1x3x128xf32>,
    %384 = vector.broadcast %155 : f32 to vector<3x128xf32>
    %385 = arith.addf %336, %384 : vector<3x128xf32>
    %386 = vector.broadcast %231 : f32 to vector<3x128xf32>
    %387 = arith.addf %364, %386 : vector<3x128xf32>
    %388 = arith.subf %385, %387 : vector<3x128xf32>
    %389 = arith.mulf %373, %388 : vector<3x128xf32>
    %390 = arith.addf %387, %389 : vector<3x128xf32>
    %c0_162 = arith.constant 0 : index
    %c0_163 = arith.constant 0 : index
    %c1_164 = arith.constant 1 : index
    %c0_165 = arith.constant 0 : index
    %c0_166 = arith.constant 0 : index
    %391 = vector.load %arg11[%c0_162, %c0_163, %c1_164, %c0_165, %c0_166] : memref<1x1x16x3x128xf32, #tpu.memory_space<vmem>>, vector<1x1x1x3x128xf32>
    %392 = vector.shape_cast %391 : vector<1x1x1x3x128xf32> to vector<3x128xf32>
    %393 = vector.shape_cast %390 : vector<3x128xf32> to vector<1x1x1x3x128xf32>
    tpu.vector_store %arg11[%c0_162, %c0_163, %c1_164, %c0_165, %c0_166], %393 {strides = array<i32>} : memref<1x1x16x3x128xf32, #tpu.memory_space<vmem>>, vector<1x1x1x3x128xf32>,
    %394 = vector.broadcast %156 : f32 to vector<3x128xf32>
    %395 = arith.addf %339, %394 : vector<3x128xf32>
    %396 = vector.broadcast %232 : f32 to vector<3x128xf32>
    %397 = arith.addf %367, %396 : vector<3x128xf32>
    %398 = arith.subf %395, %397 : vector<3x128xf32>
    %399 = arith.mulf %373, %398 : vector<3x128xf32>
    %400 = arith.addf %397, %399 : vector<3x128xf32>
    %c0_167 = arith.constant 0 : index
    %c0_168 = arith.constant 0 : index
    %c2_169 = arith.constant 2 : index
    %c0_170 = arith.constant 0 : index
    %c0_171 = arith.constant 0 : index
    %401 = vector.load %arg11[%c0_167, %c0_168, %c2_169, %c0_170, %c0_171] : memref<1x1x16x3x128xf32, #tpu.memory_space<vmem>>, vector<1x1x1x3x128xf32>
    %402 = vector.shape_cast %401 : vector<1x1x1x3x128xf32> to vector<3x128xf32>
    %403 = vector.shape_cast %400 : vector<3x128xf32> to vector<1x1x1x3x128xf32>
    tpu.vector_store %arg11[%c0_167, %c0_168, %c2_169, %c0_170, %c0_171], %403 {strides = array<i32>} : memref<1x1x16x3x128xf32, #tpu.memory_space<vmem>>, vector<1x1x1x3x128xf32>,
    %404 = vector.broadcast %157 : f32 to vector<3x128xf32>
    %405 = arith.addf %342, %404 : vector<3x128xf32>
    %406 = vector.broadcast %233 : f32 to vector<3x128xf32>
    %407 = arith.addf %370, %406 : vector<3x128xf32>
    %408 = arith.subf %405, %407 : vector<3x128xf32>
    %409 = arith.mulf %373, %408 : vector<3x128xf32>
    %410 = arith.addf %407, %409 : vector<3x128xf32>
    %c0_172 = arith.constant 0 : index
    %c0_173 = arith.constant 0 : index
    %c3_174 = arith.constant 3 : index
    %c0_175 = arith.constant 0 : index
    %c0_176 = arith.constant 0 : index
    %411 = vector.load %arg11[%c0_172, %c0_173, %c3_174, %c0_175, %c0_176] : memref<1x1x16x3x128xf32, #tpu.memory_space<vmem>>, vector<1x1x1x3x128xf32>
    %412 = vector.shape_cast %411 : vector<1x1x1x3x128xf32> to vector<3x128xf32>
    %413 = vector.shape_cast %410 : vector<3x128xf32> to vector<1x1x1x3x128xf32>
    tpu.vector_store %arg11[%c0_172, %c0_173, %c3_174, %c0_175, %c0_176], %413 {strides = array<i32>} : memref<1x1x16x3x128xf32, #tpu.memory_space<vmem>>, vector<1x1x1x3x128xf32>,
    %cst_177 = arith.constant 0.000000e+00 : f32
    %414 = vector.broadcast %cst_177 : f32 to vector<3x128xf32>
    %cst_178 = arith.constant 0.000000e+00 : f32
    %415 = vector.broadcast %cst_178 : f32 to vector<3x128xf32>
    %cst_179 = arith.constant 0.000000e+00 : f32
    %416 = vector.broadcast %cst_179 : f32 to vector<3x128xf32>
    %cst_180 = arith.constant 0.000000e+00 : f32
    %417 = vector.broadcast %cst_180 : f32 to vector<3x128xf32>
    %cst_181 = arith.constant 0.000000e+00 : f32
    %418 = vector.broadcast %cst_181 : f32 to vector<3x128xf32>
    %cst_182 = arith.constant 0.000000e+00 : f32
    %419 = vector.broadcast %cst_182 : f32 to vector<3x128xf32>
    %cst_183 = arith.constant 0.000000e+00 : f32
    %420 = vector.broadcast %cst_183 : f32 to vector<3x128xf32>
    %cst_184 = arith.constant 0.000000e+00 : f32
    %421 = vector.broadcast %cst_184 : f32 to vector<3x128xf32>
    %c0_185 = arith.constant 0 : index
    %c0_186 = arith.constant 0 : index
    %c0_187 = arith.constant 0 : index
    %c0_188 = arith.constant 0 : index
    %c0_189 = arith.constant 0 : index
    %422 = vector.load %arg2[%c0_185, %c0_186, %c0_187, %c0_188, %c0_189] : memref<1x1x4x4x128xf32, #tpu.memory_space<vmem>>, vector<1x1x1x3x128xf32>
    %423 = vector.shape_cast %422 : vector<1x1x1x3x128xf32> to vector<3x128xf32>
    %424 = vector.broadcast %58 : f32 to vector<3x128xf32>
    %425 = arith.mulf %424, %423 : vector<3x128xf32>
    %426 = arith.addf %414, %425 : vector<3x128xf32>
    %427 = vector.broadcast %59 : f32 to vector<3x128xf32>
    %428 = arith.mulf %427, %423 : vector<3x128xf32>
    %429 = arith.addf %415, %428 : vector<3x128xf32>
    %430 = vector.broadcast %60 : f32 to vector<3x128xf32>
    %431 = arith.mulf %430, %423 : vector<3x128xf32>
    %432 = arith.addf %416, %431 : vector<3x128xf32>
    %433 = vector.broadcast %61 : f32 to vector<3x128xf32>
    %434 = arith.mulf %433, %423 : vector<3x128xf32>
    %435 = arith.addf %417, %434 : vector<3x128xf32>
    %c0_190 = arith.constant 0 : index
    %c0_191 = arith.constant 0 : index
    %c1_192 = arith.constant 1 : index
    %c0_193 = arith.constant 0 : index
    %c0_194 = arith.constant 0 : index
    %436 = vector.load %arg2[%c0_190, %c0_191, %c1_192, %c0_193, %c0_194] : memref<1x1x4x4x128xf32, #tpu.memory_space<vmem>>, vector<1x1x1x3x128xf32>
    %437 = vector.shape_cast %436 : vector<1x1x1x3x128xf32> to vector<3x128xf32>
    %438 = vector.broadcast %62 : f32 to vector<3x128xf32>
    %439 = arith.mulf %438, %437 : vector<3x128xf32>
    %440 = arith.addf %426, %439 : vector<3x128xf32>
    %441 = vector.broadcast %63 : f32 to vector<3x128xf32>
    %442 = arith.mulf %441, %437 : vector<3x128xf32>
    %443 = arith.addf %429, %442 : vector<3x128xf32>
    %444 = vector.broadcast %64 : f32 to vector<3x128xf32>
    %445 = arith.mulf %444, %437 : vector<3x128xf32>
    %446 = arith.addf %432, %445 : vector<3x128xf32>
    %447 = vector.broadcast %65 : f32 to vector<3x128xf32>
    %448 = arith.mulf %447, %437 : vector<3x128xf32>
    %449 = arith.addf %435, %448 : vector<3x128xf32>
    %c0_195 = arith.constant 0 : index
    %c0_196 = arith.constant 0 : index
    %c2_197 = arith.constant 2 : index
    %c0_198 = arith.constant 0 : index
    %c0_199 = arith.constant 0 : index
    %450 = vector.load %arg2[%c0_195, %c0_196, %c2_197, %c0_198, %c0_199] : memref<1x1x4x4x128xf32, #tpu.memory_space<vmem>>, vector<1x1x1x3x128xf32>
    %451 = vector.shape_cast %450 : vector<1x1x1x3x128xf32> to vector<3x128xf32>
    %452 = vector.broadcast %66 : f32 to vector<3x128xf32>
    %453 = arith.mulf %452, %451 : vector<3x128xf32>
    %454 = arith.addf %440, %453 : vector<3x128xf32>
    %455 = vector.broadcast %67 : f32 to vector<3x128xf32>
    %456 = arith.mulf %455, %451 : vector<3x128xf32>
    %457 = arith.addf %443, %456 : vector<3x128xf32>
    %458 = vector.broadcast %68 : f32 to vector<3x128xf32>
    %459 = arith.mulf %458, %451 : vector<3x128xf32>
    %460 = arith.addf %446, %459 : vector<3x128xf32>
    %461 = vector.broadcast %69 : f32 to vector<3x128xf32>
    %462 = arith.mulf %461, %451 : vector<3x128xf32>
    %463 = arith.addf %449, %462 : vector<3x128xf32>
    %c0_200 = arith.constant 0 : index
    %c0_201 = arith.constant 0 : index
    %c3_202 = arith.constant 3 : index
    %c0_203 = arith.constant 0 : index
    %c0_204 = arith.constant 0 : index
    %464 = vector.load %arg2[%c0_200, %c0_201, %c3_202, %c0_203, %c0_204] : memref<1x1x4x4x128xf32, #tpu.memory_space<vmem>>, vector<1x1x1x3x128xf32>
    %465 = vector.shape_cast %464 : vector<1x1x1x3x128xf32> to vector<3x128xf32>
    %466 = vector.broadcast %70 : f32 to vector<3x128xf32>
    %467 = arith.mulf %466, %465 : vector<3x128xf32>
    %468 = arith.addf %454, %467 : vector<3x128xf32>
    %469 = vector.broadcast %71 : f32 to vector<3x128xf32>
    %470 = arith.mulf %469, %465 : vector<3x128xf32>
    %471 = arith.addf %457, %470 : vector<3x128xf32>
    %472 = vector.broadcast %72 : f32 to vector<3x128xf32>
    %473 = arith.mulf %472, %465 : vector<3x128xf32>
    %474 = arith.addf %460, %473 : vector<3x128xf32>
    %475 = vector.broadcast %73 : f32 to vector<3x128xf32>
    %476 = arith.mulf %475, %465 : vector<3x128xf32>
    %477 = arith.addf %463, %476 : vector<3x128xf32>
    %c0_205 = arith.constant 0 : index
    %c0_206 = arith.constant 0 : index
    %c0_207 = arith.constant 0 : index
    %478 = vector.load %arg12[%c0_205, %c0_206, %c0_207] : memref<2x4x128xf32, #tpu.memory_space<vmem>>, vector<1x3x128xf32>
    %479 = vector.shape_cast %478 : vector<1x3x128xf32> to vector<3x128xf32>
    %480 = vector.broadcast %182 : f32 to vector<3x128xf32>
    %481 = arith.mulf %480, %479 : vector<3x128xf32>
    %482 = arith.addf %418, %481 : vector<3x128xf32>
    %483 = vector.broadcast %183 : f32 to vector<3x128xf32>
    %484 = arith.mulf %483, %479 : vector<3x128xf32>
    %485 = arith.addf %419, %484 : vector<3x128xf32>
    %486 = vector.broadcast %184 : f32 to vector<3x128xf32>
    %487 = arith.mulf %486, %479 : vector<3x128xf32>
    %488 = arith.addf %420, %487 : vector<3x128xf32>
    %489 = vector.broadcast %185 : f32 to vector<3x128xf32>
    %490 = arith.mulf %489, %479 : vector<3x128xf32>
    %491 = arith.addf %421, %490 : vector<3x128xf32>
    %c1_208 = arith.constant 1 : index
    %c0_209 = arith.constant 0 : index
    %c0_210 = arith.constant 0 : index
    %492 = vector.load %arg12[%c1_208, %c0_209, %c0_210] : memref<2x4x128xf32, #tpu.memory_space<vmem>>, vector<1x3x128xf32>
    %493 = vector.shape_cast %492 : vector<1x3x128xf32> to vector<3x128xf32>
    %494 = vector.broadcast %186 : f32 to vector<3x128xf32>
    %495 = arith.mulf %494, %493 : vector<3x128xf32>
    %496 = arith.addf %482, %495 : vector<3x128xf32>
    %497 = vector.broadcast %187 : f32 to vector<3x128xf32>
    %498 = arith.mulf %497, %493 : vector<3x128xf32>
    %499 = arith.addf %485, %498 : vector<3x128xf32>
    %500 = vector.broadcast %188 : f32 to vector<3x128xf32>
    %501 = arith.mulf %500, %493 : vector<3x128xf32>
    %502 = arith.addf %488, %501 : vector<3x128xf32>
    %503 = vector.broadcast %189 : f32 to vector<3x128xf32>
    %504 = arith.mulf %503, %493 : vector<3x128xf32>
    %505 = arith.addf %491, %504 : vector<3x128xf32>
    %c0_211 = arith.constant 0 : index
    %c0_212 = arith.constant 0 : index
    %c0_213 = arith.constant 0 : index
    %c0_214 = arith.constant 0 : index
    %c1_215 = arith.constant 1 : index
    %506 = vector.load %arg2[%c0_211, %c0_212, %c0_213, %c0_214, %c1_215] : memref<1x1x4x4x128xf32, #tpu.memory_space<vmem>>, vector<1x1x1x3x127xf32>
    %507 = vector.shape_cast %506 : vector<1x1x1x3x127xf32> to vector<3x127xf32>
    %c0_216 = arith.constant 0 : index
    %c0_217 = arith.constant 0 : index
    %c0_218 = arith.constant 0 : index
    %c1_219 = arith.constant 1 : index
    %c0_220 = arith.constant 0 : index
    %508 = vector.load %arg2[%c0_216, %c0_217, %c0_218, %c1_219, %c0_220] : memref<1x1x4x4x128xf32, #tpu.memory_space<vmem>>, vector<1x1x1x3x1xf32>
    %509 = vector.shape_cast %508 : vector<1x1x1x3x1xf32> to vector<3x1xf32>
    %510 = tpu.concatenate %507, %509 in 1 : vector<3x127xf32>, vector<3x1xf32> -> vector<3x128xf32>
    %511 = vector.broadcast %90 : f32 to vector<3x128xf32>
    %512 = arith.mulf %511, %510 : vector<3x128xf32>
    %513 = arith.addf %468, %512 : vector<3x128xf32>
    %514 = vector.broadcast %91 : f32 to vector<3x128xf32>
    %515 = arith.mulf %514, %510 : vector<3x128xf32>
    %516 = arith.addf %471, %515 : vector<3x128xf32>
    %517 = vector.broadcast %92 : f32 to vector<3x128xf32>
    %518 = arith.mulf %517, %510 : vector<3x128xf32>
    %519 = arith.addf %474, %518 : vector<3x128xf32>
    %520 = vector.broadcast %93 : f32 to vector<3x128xf32>
    %521 = arith.mulf %520, %510 : vector<3x128xf32>
    %522 = arith.addf %477, %521 : vector<3x128xf32>
    %c0_221 = arith.constant 0 : index
    %c0_222 = arith.constant 0 : index
    %c1_223 = arith.constant 1 : index
    %c0_224 = arith.constant 0 : index
    %c1_225 = arith.constant 1 : index
    %523 = vector.load %arg2[%c0_221, %c0_222, %c1_223, %c0_224, %c1_225] : memref<1x1x4x4x128xf32, #tpu.memory_space<vmem>>, vector<1x1x1x3x127xf32>
    %524 = vector.shape_cast %523 : vector<1x1x1x3x127xf32> to vector<3x127xf32>
    %c0_226 = arith.constant 0 : index
    %c0_227 = arith.constant 0 : index
    %c1_228 = arith.constant 1 : index
    %c1_229 = arith.constant 1 : index
    %c0_230 = arith.constant 0 : index
    %525 = vector.load %arg2[%c0_226, %c0_227, %c1_228, %c1_229, %c0_230] : memref<1x1x4x4x128xf32, #tpu.memory_space<vmem>>, vector<1x1x1x3x1xf32>
    %526 = vector.shape_cast %525 : vector<1x1x1x3x1xf32> to vector<3x1xf32>
    %527 = tpu.concatenate %524, %526 in 1 : vector<3x127xf32>, vector<3x1xf32> -> vector<3x128xf32>
    %528 = vector.broadcast %94 : f32 to vector<3x128xf32>
    %529 = arith.mulf %528, %527 : vector<3x128xf32>
    %530 = arith.addf %513, %529 : vector<3x128xf32>
    %531 = vector.broadcast %95 : f32 to vector<3x128xf32>
    %532 = arith.mulf %531, %527 : vector<3x128xf32>
    %533 = arith.addf %516, %532 : vector<3x128xf32>
    %534 = vector.broadcast %96 : f32 to vector<3x128xf32>
    %535 = arith.mulf %534, %527 : vector<3x128xf32>
    %536 = arith.addf %519, %535 : vector<3x128xf32>
    %537 = vector.broadcast %97 : f32 to vector<3x128xf32>
    %538 = arith.mulf %537, %527 : vector<3x128xf32>
    %539 = arith.addf %522, %538 : vector<3x128xf32>
    %c0_231 = arith.constant 0 : index
    %c0_232 = arith.constant 0 : index
    %c2_233 = arith.constant 2 : index
    %c0_234 = arith.constant 0 : index
    %c1_235 = arith.constant 1 : index
    %540 = vector.load %arg2[%c0_231, %c0_232, %c2_233, %c0_234, %c1_235] : memref<1x1x4x4x128xf32, #tpu.memory_space<vmem>>, vector<1x1x1x3x127xf32>
    %541 = vector.shape_cast %540 : vector<1x1x1x3x127xf32> to vector<3x127xf32>
    %c0_236 = arith.constant 0 : index
    %c0_237 = arith.constant 0 : index
    %c2_238 = arith.constant 2 : index
    %c1_239 = arith.constant 1 : index
    %c0_240 = arith.constant 0 : index
    %542 = vector.load %arg2[%c0_236, %c0_237, %c2_238, %c1_239, %c0_240] : memref<1x1x4x4x128xf32, #tpu.memory_space<vmem>>, vector<1x1x1x3x1xf32>
    %543 = vector.shape_cast %542 : vector<1x1x1x3x1xf32> to vector<3x1xf32>
    %544 = tpu.concatenate %541, %543 in 1 : vector<3x127xf32>, vector<3x1xf32> -> vector<3x128xf32>
    %545 = vector.broadcast %98 : f32 to vector<3x128xf32>
    %546 = arith.mulf %545, %544 : vector<3x128xf32>
    %547 = arith.addf %530, %546 : vector<3x128xf32>
    %548 = vector.broadcast %99 : f32 to vector<3x128xf32>
    %549 = arith.mulf %548, %544 : vector<3x128xf32>
    %550 = arith.addf %533, %549 : vector<3x128xf32>
    %551 = vector.broadcast %100 : f32 to vector<3x128xf32>
    %552 = arith.mulf %551, %544 : vector<3x128xf32>
    %553 = arith.addf %536, %552 : vector<3x128xf32>
    %554 = vector.broadcast %101 : f32 to vector<3x128xf32>
    %555 = arith.mulf %554, %544 : vector<3x128xf32>
    %556 = arith.addf %539, %555 : vector<3x128xf32>
    %c0_241 = arith.constant 0 : index
    %c0_242 = arith.constant 0 : index
    %c3_243 = arith.constant 3 : index
    %c0_244 = arith.constant 0 : index
    %c1_245 = arith.constant 1 : index
    %557 = vector.load %arg2[%c0_241, %c0_242, %c3_243, %c0_244, %c1_245] : memref<1x1x4x4x128xf32, #tpu.memory_space<vmem>>, vector<1x1x1x3x127xf32>
    %558 = vector.shape_cast %557 : vector<1x1x1x3x127xf32> to vector<3x127xf32>
    %c0_246 = arith.constant 0 : index
    %c0_247 = arith.constant 0 : index
    %c3_248 = arith.constant 3 : index
    %c1_249 = arith.constant 1 : index
    %c0_250 = arith.constant 0 : index
    %559 = vector.load %arg2[%c0_246, %c0_247, %c3_248, %c1_249, %c0_250] : memref<1x1x4x4x128xf32, #tpu.memory_space<vmem>>, vector<1x1x1x3x1xf32>
    %560 = vector.shape_cast %559 : vector<1x1x1x3x1xf32> to vector<3x1xf32>
    %561 = tpu.concatenate %558, %560 in 1 : vector<3x127xf32>, vector<3x1xf32> -> vector<3x128xf32>
    %562 = vector.broadcast %102 : f32 to vector<3x128xf32>
    %563 = arith.mulf %562, %561 : vector<3x128xf32>
    %564 = arith.addf %547, %563 : vector<3x128xf32>
    %565 = vector.broadcast %103 : f32 to vector<3x128xf32>
    %566 = arith.mulf %565, %561 : vector<3x128xf32>
    %567 = arith.addf %550, %566 : vector<3x128xf32>
    %568 = vector.broadcast %104 : f32 to vector<3x128xf32>
    %569 = arith.mulf %568, %561 : vector<3x128xf32>
    %570 = arith.addf %553, %569 : vector<3x128xf32>
    %571 = vector.broadcast %105 : f32 to vector<3x128xf32>
    %572 = arith.mulf %571, %561 : vector<3x128xf32>
    %573 = arith.addf %556, %572 : vector<3x128xf32>
    %c0_251 = arith.constant 0 : index
    %c0_252 = arith.constant 0 : index
    %c1_253 = arith.constant 1 : index
    %574 = vector.load %arg12[%c0_251, %c0_252, %c1_253] : memref<2x4x128xf32, #tpu.memory_space<vmem>>, vector<1x3x127xf32>
    %575 = vector.shape_cast %574 : vector<1x3x127xf32> to vector<3x127xf32>
    %c0_254 = arith.constant 0 : index
    %c1_255 = arith.constant 1 : index
    %c0_256 = arith.constant 0 : index
    %576 = vector.load %arg12[%c0_254, %c1_255, %c0_256] : memref<2x4x128xf32, #tpu.memory_space<vmem>>, vector<1x3x1xf32>
    %577 = vector.shape_cast %576 : vector<1x3x1xf32> to vector<3x1xf32>
    %578 = tpu.concatenate %575, %577 in 1 : vector<3x127xf32>, vector<3x1xf32> -> vector<3x128xf32>
    %579 = vector.broadcast %198 : f32 to vector<3x128xf32>
    %580 = arith.mulf %579, %578 : vector<3x128xf32>
    %581 = arith.addf %496, %580 : vector<3x128xf32>
    %582 = vector.broadcast %199 : f32 to vector<3x128xf32>
    %583 = arith.mulf %582, %578 : vector<3x128xf32>
    %584 = arith.addf %499, %583 : vector<3x128xf32>
    %585 = vector.broadcast %200 : f32 to vector<3x128xf32>
    %586 = arith.mulf %585, %578 : vector<3x128xf32>
    %587 = arith.addf %502, %586 : vector<3x128xf32>
    %588 = vector.broadcast %201 : f32 to vector<3x128xf32>
    %589 = arith.mulf %588, %578 : vector<3x128xf32>
    %590 = arith.addf %505, %589 : vector<3x128xf32>
    %c1_257 = arith.constant 1 : index
    %c0_258 = arith.constant 0 : index
    %c1_259 = arith.constant 1 : index
    %591 = vector.load %arg12[%c1_257, %c0_258, %c1_259] : memref<2x4x128xf32, #tpu.memory_space<vmem>>, vector<1x3x127xf32>
    %592 = vector.shape_cast %591 : vector<1x3x127xf32> to vector<3x127xf32>
    %c1_260 = arith.constant 1 : index
    %c1_261 = arith.constant 1 : index
    %c0_262 = arith.constant 0 : index
    %593 = vector.load %arg12[%c1_260, %c1_261, %c0_262] : memref<2x4x128xf32, #tpu.memory_space<vmem>>, vector<1x3x1xf32>
    %594 = vector.shape_cast %593 : vector<1x3x1xf32> to vector<3x1xf32>
    %595 = tpu.concatenate %592, %594 in 1 : vector<3x127xf32>, vector<3x1xf32> -> vector<3x128xf32>
    %596 = vector.broadcast %202 : f32 to vector<3x128xf32>
    %597 = arith.mulf %596, %595 : vector<3x128xf32>
    %598 = arith.addf %581, %597 : vector<3x128xf32>
    %599 = vector.broadcast %203 : f32 to vector<3x128xf32>
    %600 = arith.mulf %599, %595 : vector<3x128xf32>
    %601 = arith.addf %584, %600 : vector<3x128xf32>
    %602 = vector.broadcast %204 : f32 to vector<3x128xf32>
    %603 = arith.mulf %602, %595 : vector<3x128xf32>
    %604 = arith.addf %587, %603 : vector<3x128xf32>
    %605 = vector.broadcast %205 : f32 to vector<3x128xf32>
    %606 = arith.mulf %605, %595 : vector<3x128xf32>
    %607 = arith.addf %590, %606 : vector<3x128xf32>
    %c0_263 = arith.constant 0 : index
    %c0_264 = arith.constant 0 : index
    %c1_265 = arith.constant 1 : index
    %c0_266 = arith.constant 0 : index
    %c0_267 = arith.constant 0 : index
    %608 = vector.load %arg3[%c0_263, %c0_264, %c1_265, %c0_266, %c0_267] : memref<1x1x4x3x128xbf16, #tpu.memory_space<vmem>>, vector<1x1x1x3x128xbf16>
    %609 = vector.shape_cast %608 : vector<1x1x1x3x128xbf16> to vector<3x128xbf16>
    %610 = arith.extf %609 : vector<3x128xbf16> to vector<3x128xf32>
    %611 = vector.broadcast %154 : f32 to vector<3x128xf32>
    %612 = arith.addf %564, %611 : vector<3x128xf32>
    %613 = vector.broadcast %230 : f32 to vector<3x128xf32>
    %614 = arith.addf %598, %613 : vector<3x128xf32>
    %615 = arith.subf %612, %614 : vector<3x128xf32>
    %616 = arith.mulf %610, %615 : vector<3x128xf32>
    %617 = arith.addf %614, %616 : vector<3x128xf32>
    %c0_268 = arith.constant 0 : index
    %c0_269 = arith.constant 0 : index
    %c4_270 = arith.constant 4 : index
    %c0_271 = arith.constant 0 : index
    %c0_272 = arith.constant 0 : index
    %618 = vector.load %arg11[%c0_268, %c0_269, %c4_270, %c0_271, %c0_272] : memref<1x1x16x3x128xf32, #tpu.memory_space<vmem>>, vector<1x1x1x3x128xf32>
    %619 = vector.shape_cast %618 : vector<1x1x1x3x128xf32> to vector<3x128xf32>
    %620 = vector.shape_cast %617 : vector<3x128xf32> to vector<1x1x1x3x128xf32>
    tpu.vector_store %arg11[%c0_268, %c0_269, %c4_270, %c0_271, %c0_272], %620 {strides = array<i32>} : memref<1x1x16x3x128xf32, #tpu.memory_space<vmem>>, vector<1x1x1x3x128xf32>,
    %621 = vector.broadcast %155 : f32 to vector<3x128xf32>
    %622 = arith.addf %567, %621 : vector<3x128xf32>
    %623 = vector.broadcast %231 : f32 to vector<3x128xf32>
    %624 = arith.addf %601, %623 : vector<3x128xf32>
    %625 = arith.subf %622, %624 : vector<3x128xf32>
    %626 = arith.mulf %610, %625 : vector<3x128xf32>
    %627 = arith.addf %624, %626 : vector<3x128xf32>
    %c0_273 = arith.constant 0 : index
    %c0_274 = arith.constant 0 : index
    %c5_275 = arith.constant 5 : index
    %c0_276 = arith.constant 0 : index
    %c0_277 = arith.constant 0 : index
    %628 = vector.load %arg11[%c0_273, %c0_274, %c5_275, %c0_276, %c0_277] : memref<1x1x16x3x128xf32, #tpu.memory_space<vmem>>, vector<1x1x1x3x128xf32>
    %629 = vector.shape_cast %628 : vector<1x1x1x3x128xf32> to vector<3x128xf32>
    %630 = vector.shape_cast %627 : vector<3x128xf32> to vector<1x1x1x3x128xf32>
    tpu.vector_store %arg11[%c0_273, %c0_274, %c5_275, %c0_276, %c0_277], %630 {strides = array<i32>} : memref<1x1x16x3x128xf32, #tpu.memory_space<vmem>>, vector<1x1x1x3x128xf32>,
    %631 = vector.broadcast %156 : f32 to vector<3x128xf32>
    %632 = arith.addf %570, %631 : vector<3x128xf32>
    %633 = vector.broadcast %232 : f32 to vector<3x128xf32>
    %634 = arith.addf %604, %633 : vector<3x128xf32>
    %635 = arith.subf %632, %634 : vector<3x128xf32>
    %636 = arith.mulf %610, %635 : vector<3x128xf32>
    %637 = arith.addf %634, %636 : vector<3x128xf32>
    %c0_278 = arith.constant 0 : index
    %c0_279 = arith.constant 0 : index
    %c6_280 = arith.constant 6 : index
    %c0_281 = arith.constant 0 : index
    %c0_282 = arith.constant 0 : index
    %638 = vector.load %arg11[%c0_278, %c0_279, %c6_280, %c0_281, %c0_282] : memref<1x1x16x3x128xf32, #tpu.memory_space<vmem>>, vector<1x1x1x3x128xf32>
    %639 = vector.shape_cast %638 : vector<1x1x1x3x128xf32> to vector<3x128xf32>
    %640 = vector.shape_cast %637 : vector<3x128xf32> to vector<1x1x1x3x128xf32>
    tpu.vector_store %arg11[%c0_278, %c0_279, %c6_280, %c0_281, %c0_282], %640 {strides = array<i32>} : memref<1x1x16x3x128xf32, #tpu.memory_space<vmem>>, vector<1x1x1x3x128xf32>,
    %641 = vector.broadcast %157 : f32 to vector<3x128xf32>
    %642 = arith.addf %573, %641 : vector<3x128xf32>
    %643 = vector.broadcast %233 : f32 to vector<3x128xf32>
    %644 = arith.addf %607, %643 : vector<3x128xf32>
    %645 = arith.subf %642, %644 : vector<3x128xf32>
    %646 = arith.mulf %610, %645 : vector<3x128xf32>
    %647 = arith.addf %644, %646 : vector<3x128xf32>
    %c0_283 = arith.constant 0 : index
    %c0_284 = arith.constant 0 : index
    %c7_285 = arith.constant 7 : index
    %c0_286 = arith.constant 0 : index
    %c0_287 = arith.constant 0 : index
    %648 = vector.load %arg11[%c0_283, %c0_284, %c7_285, %c0_286, %c0_287] : memref<1x1x16x3x128xf32, #tpu.memory_space<vmem>>, vector<1x1x1x3x128xf32>
    %649 = vector.shape_cast %648 : vector<1x1x1x3x128xf32> to vector<3x128xf32>
    %650 = vector.shape_cast %647 : vector<3x128xf32> to vector<1x1x1x3x128xf32>
    tpu.vector_store %arg11[%c0_283, %c0_284, %c7_285, %c0_286, %c0_287], %650 {strides = array<i32>} : memref<1x1x16x3x128xf32, #tpu.memory_space<vmem>>, vector<1x1x1x3x128xf32>,
    %cst_288 = arith.constant 0.000000e+00 : f32
    %651 = vector.broadcast %cst_288 : f32 to vector<3x128xf32>
    %cst_289 = arith.constant 0.000000e+00 : f32
    %652 = vector.broadcast %cst_289 : f32 to vector<3x128xf32>
    %cst_290 = arith.constant 0.000000e+00 : f32
    %653 = vector.broadcast %cst_290 : f32 to vector<3x128xf32>
    %cst_291 = arith.constant 0.000000e+00 : f32
    %654 = vector.broadcast %cst_291 : f32 to vector<3x128xf32>
    %cst_292 = arith.constant 0.000000e+00 : f32
    %655 = vector.broadcast %cst_292 : f32 to vector<3x128xf32>
    %cst_293 = arith.constant 0.000000e+00 : f32
    %656 = vector.broadcast %cst_293 : f32 to vector<3x128xf32>
    %cst_294 = arith.constant 0.000000e+00 : f32
    %657 = vector.broadcast %cst_294 : f32 to vector<3x128xf32>
    %cst_295 = arith.constant 0.000000e+00 : f32
    %658 = vector.broadcast %cst_295 : f32 to vector<3x128xf32>
    %c0_296 = arith.constant 0 : index
    %c0_297 = arith.constant 0 : index
    %c0_298 = arith.constant 0 : index
    %c0_299 = arith.constant 0 : index
    %c0_300 = arith.constant 0 : index
    %659 = vector.load %arg2[%c0_296, %c0_297, %c0_298, %c0_299, %c0_300] : memref<1x1x4x4x128xf32, #tpu.memory_space<vmem>>, vector<1x1x1x3x128xf32>
    %660 = vector.shape_cast %659 : vector<1x1x1x3x128xf32> to vector<3x128xf32>
    %661 = vector.broadcast %26 : f32 to vector<3x128xf32>
    %662 = arith.mulf %661, %660 : vector<3x128xf32>
    %663 = arith.addf %651, %662 : vector<3x128xf32>
    %664 = vector.broadcast %27 : f32 to vector<3x128xf32>
    %665 = arith.mulf %664, %660 : vector<3x128xf32>
    %666 = arith.addf %652, %665 : vector<3x128xf32>
    %667 = vector.broadcast %28 : f32 to vector<3x128xf32>
    %668 = arith.mulf %667, %660 : vector<3x128xf32>
    %669 = arith.addf %653, %668 : vector<3x128xf32>
    %670 = vector.broadcast %29 : f32 to vector<3x128xf32>
    %671 = arith.mulf %670, %660 : vector<3x128xf32>
    %672 = arith.addf %654, %671 : vector<3x128xf32>
    %c0_301 = arith.constant 0 : index
    %c0_302 = arith.constant 0 : index
    %c1_303 = arith.constant 1 : index
    %c0_304 = arith.constant 0 : index
    %c0_305 = arith.constant 0 : index
    %673 = vector.load %arg2[%c0_301, %c0_302, %c1_303, %c0_304, %c0_305] : memref<1x1x4x4x128xf32, #tpu.memory_space<vmem>>, vector<1x1x1x3x128xf32>
    %674 = vector.shape_cast %673 : vector<1x1x1x3x128xf32> to vector<3x128xf32>
    %675 = vector.broadcast %30 : f32 to vector<3x128xf32>
    %676 = arith.mulf %675, %674 : vector<3x128xf32>
    %677 = arith.addf %663, %676 : vector<3x128xf32>
    %678 = vector.broadcast %31 : f32 to vector<3x128xf32>
    %679 = arith.mulf %678, %674 : vector<3x128xf32>
    %680 = arith.addf %666, %679 : vector<3x128xf32>
    %681 = vector.broadcast %32 : f32 to vector<3x128xf32>
    %682 = arith.mulf %681, %674 : vector<3x128xf32>
    %683 = arith.addf %669, %682 : vector<3x128xf32>
    %684 = vector.broadcast %33 : f32 to vector<3x128xf32>
    %685 = arith.mulf %684, %674 : vector<3x128xf32>
    %686 = arith.addf %672, %685 : vector<3x128xf32>
    %c0_306 = arith.constant 0 : index
    %c0_307 = arith.constant 0 : index
    %c2_308 = arith.constant 2 : index
    %c0_309 = arith.constant 0 : index
    %c0_310 = arith.constant 0 : index
    %687 = vector.load %arg2[%c0_306, %c0_307, %c2_308, %c0_309, %c0_310] : memref<1x1x4x4x128xf32, #tpu.memory_space<vmem>>, vector<1x1x1x3x128xf32>
    %688 = vector.shape_cast %687 : vector<1x1x1x3x128xf32> to vector<3x128xf32>
    %689 = vector.broadcast %34 : f32 to vector<3x128xf32>
    %690 = arith.mulf %689, %688 : vector<3x128xf32>
    %691 = arith.addf %677, %690 : vector<3x128xf32>
    %692 = vector.broadcast %35 : f32 to vector<3x128xf32>
    %693 = arith.mulf %692, %688 : vector<3x128xf32>
    %694 = arith.addf %680, %693 : vector<3x128xf32>
    %695 = vector.broadcast %36 : f32 to vector<3x128xf32>
    %696 = arith.mulf %695, %688 : vector<3x128xf32>
    %697 = arith.addf %683, %696 : vector<3x128xf32>
    %698 = vector.broadcast %37 : f32 to vector<3x128xf32>
    %699 = arith.mulf %698, %688 : vector<3x128xf32>
    %700 = arith.addf %686, %699 : vector<3x128xf32>
    %c0_311 = arith.constant 0 : index
    %c0_312 = arith.constant 0 : index
    %c3_313 = arith.constant 3 : index
    %c0_314 = arith.constant 0 : index
    %c0_315 = arith.constant 0 : index
    %701 = vector.load %arg2[%c0_311, %c0_312, %c3_313, %c0_314, %c0_315] : memref<1x1x4x4x128xf32, #tpu.memory_space<vmem>>, vector<1x1x1x3x128xf32>
    %702 = vector.shape_cast %701 : vector<1x1x1x3x128xf32> to vector<3x128xf32>
    %703 = vector.broadcast %38 : f32 to vector<3x128xf32>
    %704 = arith.mulf %703, %702 : vector<3x128xf32>
    %705 = arith.addf %691, %704 : vector<3x128xf32>
    %706 = vector.broadcast %39 : f32 to vector<3x128xf32>
    %707 = arith.mulf %706, %702 : vector<3x128xf32>
    %708 = arith.addf %694, %707 : vector<3x128xf32>
    %709 = vector.broadcast %40 : f32 to vector<3x128xf32>
    %710 = arith.mulf %709, %702 : vector<3x128xf32>
    %711 = arith.addf %697, %710 : vector<3x128xf32>
    %712 = vector.broadcast %41 : f32 to vector<3x128xf32>
    %713 = arith.mulf %712, %702 : vector<3x128xf32>
    %714 = arith.addf %700, %713 : vector<3x128xf32>
    %c0_316 = arith.constant 0 : index
    %c0_317 = arith.constant 0 : index
    %c0_318 = arith.constant 0 : index
    %715 = vector.load %arg12[%c0_316, %c0_317, %c0_318] : memref<2x4x128xf32, #tpu.memory_space<vmem>>, vector<1x3x128xf32>
    %716 = vector.shape_cast %715 : vector<1x3x128xf32> to vector<3x128xf32>
    %717 = vector.broadcast %166 : f32 to vector<3x128xf32>
    %718 = arith.mulf %717, %716 : vector<3x128xf32>
    %719 = arith.addf %655, %718 : vector<3x128xf32>
    %720 = vector.broadcast %167 : f32 to vector<3x128xf32>
    %721 = arith.mulf %720, %716 : vector<3x128xf32>
    %722 = arith.addf %656, %721 : vector<3x128xf32>
    %723 = vector.broadcast %168 : f32 to vector<3x128xf32>
    %724 = arith.mulf %723, %716 : vector<3x128xf32>
    %725 = arith.addf %657, %724 : vector<3x128xf32>
    %726 = vector.broadcast %169 : f32 to vector<3x128xf32>
    %727 = arith.mulf %726, %716 : vector<3x128xf32>
    %728 = arith.addf %658, %727 : vector<3x128xf32>
    %c1_319 = arith.constant 1 : index
    %c0_320 = arith.constant 0 : index
    %c0_321 = arith.constant 0 : index
    %729 = vector.load %arg12[%c1_319, %c0_320, %c0_321] : memref<2x4x128xf32, #tpu.memory_space<vmem>>, vector<1x3x128xf32>
    %730 = vector.shape_cast %729 : vector<1x3x128xf32> to vector<3x128xf32>
    %731 = vector.broadcast %170 : f32 to vector<3x128xf32>
    %732 = arith.mulf %731, %730 : vector<3x128xf32>
    %733 = arith.addf %719, %732 : vector<3x128xf32>
    %734 = vector.broadcast %171 : f32 to vector<3x128xf32>
    %735 = arith.mulf %734, %730 : vector<3x128xf32>
    %736 = arith.addf %722, %735 : vector<3x128xf32>
    %737 = vector.broadcast %172 : f32 to vector<3x128xf32>
    %738 = arith.mulf %737, %730 : vector<3x128xf32>
    %739 = arith.addf %725, %738 : vector<3x128xf32>
    %740 = vector.broadcast %173 : f32 to vector<3x128xf32>
    %741 = arith.mulf %740, %730 : vector<3x128xf32>
    %742 = arith.addf %728, %741 : vector<3x128xf32>
    %c0_322 = arith.constant 0 : index
    %c0_323 = arith.constant 0 : index
    %c0_324 = arith.constant 0 : index
    %c0_325 = arith.constant 0 : index
    %c17_326 = arith.constant 17 : index
    %743 = vector.load %arg2[%c0_322, %c0_323, %c0_324, %c0_325, %c17_326] : memref<1x1x4x4x128xf32, #tpu.memory_space<vmem>>, vector<1x1x1x3x111xf32>
    %744 = vector.shape_cast %743 : vector<1x1x1x3x111xf32> to vector<3x111xf32>
    %c0_327 = arith.constant 0 : index
    %c0_328 = arith.constant 0 : index
    %c0_329 = arith.constant 0 : index
    %c1_330 = arith.constant 1 : index
    %c0_331 = arith.constant 0 : index
    %745 = vector.load %arg2[%c0_327, %c0_328, %c0_329, %c1_330, %c0_331] : memref<1x1x4x4x128xf32, #tpu.memory_space<vmem>>, vector<1x1x1x3x17xf32>
    %746 = vector.shape_cast %745 : vector<1x1x1x3x17xf32> to vector<3x17xf32>
    %747 = tpu.concatenate %744, %746 in 1 : vector<3x111xf32>, vector<3x17xf32> -> vector<3x128xf32>
    %748 = vector.broadcast %122 : f32 to vector<3x128xf32>
    %749 = arith.mulf %748, %747 : vector<3x128xf32>
    %750 = arith.addf %705, %749 : vector<3x128xf32>
    %751 = vector.broadcast %123 : f32 to vector<3x128xf32>
    %752 = arith.mulf %751, %747 : vector<3x128xf32>
    %753 = arith.addf %708, %752 : vector<3x128xf32>
    %754 = vector.broadcast %124 : f32 to vector<3x128xf32>
    %755 = arith.mulf %754, %747 : vector<3x128xf32>
    %756 = arith.addf %711, %755 : vector<3x128xf32>
    %757 = vector.broadcast %125 : f32 to vector<3x128xf32>
    %758 = arith.mulf %757, %747 : vector<3x128xf32>
    %759 = arith.addf %714, %758 : vector<3x128xf32>
    %c0_332 = arith.constant 0 : index
    %c0_333 = arith.constant 0 : index
    %c1_334 = arith.constant 1 : index
    %c0_335 = arith.constant 0 : index
    %c17_336 = arith.constant 17 : index
    %760 = vector.load %arg2[%c0_332, %c0_333, %c1_334, %c0_335, %c17_336] : memref<1x1x4x4x128xf32, #tpu.memory_space<vmem>>, vector<1x1x1x3x111xf32>
    %761 = vector.shape_cast %760 : vector<1x1x1x3x111xf32> to vector<3x111xf32>
    %c0_337 = arith.constant 0 : index
    %c0_338 = arith.constant 0 : index
    %c1_339 = arith.constant 1 : index
    %c1_340 = arith.constant 1 : index
    %c0_341 = arith.constant 0 : index
    %762 = vector.load %arg2[%c0_337, %c0_338, %c1_339, %c1_340, %c0_341] : memref<1x1x4x4x128xf32, #tpu.memory_space<vmem>>, vector<1x1x1x3x17xf32>
    %763 = vector.shape_cast %762 : vector<1x1x1x3x17xf32> to vector<3x17xf32>
    %764 = tpu.concatenate %761, %763 in 1 : vector<3x111xf32>, vector<3x17xf32> -> vector<3x128xf32>
    %765 = vector.broadcast %126 : f32 to vector<3x128xf32>
    %766 = arith.mulf %765, %764 : vector<3x128xf32>
    %767 = arith.addf %750, %766 : vector<3x128xf32>
    %768 = vector.broadcast %127 : f32 to vector<3x128xf32>
    %769 = arith.mulf %768, %764 : vector<3x128xf32>
    %770 = arith.addf %753, %769 : vector<3x128xf32>
    %771 = vector.broadcast %128 : f32 to vector<3x128xf32>
    %772 = arith.mulf %771, %764 : vector<3x128xf32>
    %773 = arith.addf %756, %772 : vector<3x128xf32>
    %774 = vector.broadcast %129 : f32 to vector<3x128xf32>
    %775 = arith.mulf %774, %764 : vector<3x128xf32>
    %776 = arith.addf %759, %775 : vector<3x128xf32>
    %c0_342 = arith.constant 0 : index
    %c0_343 = arith.constant 0 : index
    %c2_344 = arith.constant 2 : index
    %c0_345 = arith.constant 0 : index
    %c17_346 = arith.constant 17 : index
    %777 = vector.load %arg2[%c0_342, %c0_343, %c2_344, %c0_345, %c17_346] : memref<1x1x4x4x128xf32, #tpu.memory_space<vmem>>, vector<1x1x1x3x111xf32>
    %778 = vector.shape_cast %777 : vector<1x1x1x3x111xf32> to vector<3x111xf32>
    %c0_347 = arith.constant 0 : index
    %c0_348 = arith.constant 0 : index
    %c2_349 = arith.constant 2 : index
    %c1_350 = arith.constant 1 : index
    %c0_351 = arith.constant 0 : index
    %779 = vector.load %arg2[%c0_347, %c0_348, %c2_349, %c1_350, %c0_351] : memref<1x1x4x4x128xf32, #tpu.memory_space<vmem>>, vector<1x1x1x3x17xf32>
    %780 = vector.shape_cast %779 : vector<1x1x1x3x17xf32> to vector<3x17xf32>
    %781 = tpu.concatenate %778, %780 in 1 : vector<3x111xf32>, vector<3x17xf32> -> vector<3x128xf32>
    %782 = vector.broadcast %130 : f32 to vector<3x128xf32>
    %783 = arith.mulf %782, %781 : vector<3x128xf32>
    %784 = arith.addf %767, %783 : vector<3x128xf32>
    %785 = vector.broadcast %131 : f32 to vector<3x128xf32>
    %786 = arith.mulf %785, %781 : vector<3x128xf32>
    %787 = arith.addf %770, %786 : vector<3x128xf32>
    %788 = vector.broadcast %132 : f32 to vector<3x128xf32>
    %789 = arith.mulf %788, %781 : vector<3x128xf32>
    %790 = arith.addf %773, %789 : vector<3x128xf32>
    %791 = vector.broadcast %133 : f32 to vector<3x128xf32>
    %792 = arith.mulf %791, %781 : vector<3x128xf32>
    %793 = arith.addf %776, %792 : vector<3x128xf32>
    %c0_352 = arith.constant 0 : index
    %c0_353 = arith.constant 0 : index
    %c3_354 = arith.constant 3 : index
    %c0_355 = arith.constant 0 : index
    %c17_356 = arith.constant 17 : index
    %794 = vector.load %arg2[%c0_352, %c0_353, %c3_354, %c0_355, %c17_356] : memref<1x1x4x4x128xf32, #tpu.memory_space<vmem>>, vector<1x1x1x3x111xf32>
    %795 = vector.shape_cast %794 : vector<1x1x1x3x111xf32> to vector<3x111xf32>
    %c0_357 = arith.constant 0 : index
    %c0_358 = arith.constant 0 : index
    %c3_359 = arith.constant 3 : index
    %c1_360 = arith.constant 1 : index
    %c0_361 = arith.constant 0 : index
    %796 = vector.load %arg2[%c0_357, %c0_358, %c3_359, %c1_360, %c0_361] : memref<1x1x4x4x128xf32, #tpu.memory_space<vmem>>, vector<1x1x1x3x17xf32>
    %797 = vector.shape_cast %796 : vector<1x1x1x3x17xf32> to vector<3x17xf32>
    %798 = tpu.concatenate %795, %797 in 1 : vector<3x111xf32>, vector<3x17xf32> -> vector<3x128xf32>
    %799 = vector.broadcast %134 : f32 to vector<3x128xf32>
    %800 = arith.mulf %799, %798 : vector<3x128xf32>
    %801 = arith.addf %784, %800 : vector<3x128xf32>
    %802 = vector.broadcast %135 : f32 to vector<3x128xf32>
    %803 = arith.mulf %802, %798 : vector<3x128xf32>
    %804 = arith.addf %787, %803 : vector<3x128xf32>
    %805 = vector.broadcast %136 : f32 to vector<3x128xf32>
    %806 = arith.mulf %805, %798 : vector<3x128xf32>
    %807 = arith.addf %790, %806 : vector<3x128xf32>
    %808 = vector.broadcast %137 : f32 to vector<3x128xf32>
    %809 = arith.mulf %808, %798 : vector<3x128xf32>
    %810 = arith.addf %793, %809 : vector<3x128xf32>
    %c0_362 = arith.constant 0 : index
    %c0_363 = arith.constant 0 : index
    %c17_364 = arith.constant 17 : index
    %811 = vector.load %arg12[%c0_362, %c0_363, %c17_364] : memref<2x4x128xf32, #tpu.memory_space<vmem>>, vector<1x3x111xf32>
    %812 = vector.shape_cast %811 : vector<1x3x111xf32> to vector<3x111xf32>
    %c0_365 = arith.constant 0 : index
    %c1_366 = arith.constant 1 : index
    %c0_367 = arith.constant 0 : index
    %813 = vector.load %arg12[%c0_365, %c1_366, %c0_367] : memref<2x4x128xf32, #tpu.memory_space<vmem>>, vector<1x3x17xf32>
    %814 = vector.shape_cast %813 : vector<1x3x17xf32> to vector<3x17xf32>
    %815 = tpu.concatenate %812, %814 in 1 : vector<3x111xf32>, vector<3x17xf32> -> vector<3x128xf32>
    %816 = vector.broadcast %214 : f32 to vector<3x128xf32>
    %817 = arith.mulf %816, %815 : vector<3x128xf32>
    %818 = arith.addf %733, %817 : vector<3x128xf32>
    %819 = vector.broadcast %215 : f32 to vector<3x128xf32>
    %820 = arith.mulf %819, %815 : vector<3x128xf32>
    %821 = arith.addf %736, %820 : vector<3x128xf32>
    %822 = vector.broadcast %216 : f32 to vector<3x128xf32>
    %823 = arith.mulf %822, %815 : vector<3x128xf32>
    %824 = arith.addf %739, %823 : vector<3x128xf32>
    %825 = vector.broadcast %217 : f32 to vector<3x128xf32>
    %826 = arith.mulf %825, %815 : vector<3x128xf32>
    %827 = arith.addf %742, %826 : vector<3x128xf32>
    %c1_368 = arith.constant 1 : index
    %c0_369 = arith.constant 0 : index
    %c17_370 = arith.constant 17 : index
    %828 = vector.load %arg12[%c1_368, %c0_369, %c17_370] : memref<2x4x128xf32, #tpu.memory_space<vmem>>, vector<1x3x111xf32>
    %829 = vector.shape_cast %828 : vector<1x3x111xf32> to vector<3x111xf32>
    %c1_371 = arith.constant 1 : index
    %c1_372 = arith.constant 1 : index
    %c0_373 = arith.constant 0 : index
    %830 = vector.load %arg12[%c1_371, %c1_372, %c0_373] : memref<2x4x128xf32, #tpu.memory_space<vmem>>, vector<1x3x17xf32>
    %831 = vector.shape_cast %830 : vector<1x3x17xf32> to vector<3x17xf32>
    %832 = tpu.concatenate %829, %831 in 1 : vector<3x111xf32>, vector<3x17xf32> -> vector<3x128xf32>
    %833 = vector.broadcast %218 : f32 to vector<3x128xf32>
    %834 = arith.mulf %833, %832 : vector<3x128xf32>
    %835 = arith.addf %818, %834 : vector<3x128xf32>
    %836 = vector.broadcast %219 : f32 to vector<3x128xf32>
    %837 = arith.mulf %836, %832 : vector<3x128xf32>
    %838 = arith.addf %821, %837 : vector<3x128xf32>
    %839 = vector.broadcast %220 : f32 to vector<3x128xf32>
    %840 = arith.mulf %839, %832 : vector<3x128xf32>
    %841 = arith.addf %824, %840 : vector<3x128xf32>
    %842 = vector.broadcast %221 : f32 to vector<3x128xf32>
    %843 = arith.mulf %842, %832 : vector<3x128xf32>
    %844 = arith.addf %827, %843 : vector<3x128xf32>
    %c0_374 = arith.constant 0 : index
    %c0_375 = arith.constant 0 : index
    %c2_376 = arith.constant 2 : index
    %c0_377 = arith.constant 0 : index
    %c0_378 = arith.constant 0 : index
    %845 = vector.load %arg3[%c0_374, %c0_375, %c2_376, %c0_377, %c0_378] : memref<1x1x4x3x128xbf16, #tpu.memory_space<vmem>>, vector<1x1x1x3x128xbf16>
    %846 = vector.shape_cast %845 : vector<1x1x1x3x128xbf16> to vector<3x128xbf16>
    %847 = arith.extf %846 : vector<3x128xbf16> to vector<3x128xf32>
    %848 = vector.broadcast %154 : f32 to vector<3x128xf32>
    %849 = arith.addf %801, %848 : vector<3x128xf32>
    %850 = vector.broadcast %230 : f32 to vector<3x128xf32>
    %851 = arith.addf %835, %850 : vector<3x128xf32>
    %852 = arith.subf %849, %851 : vector<3x128xf32>
    %853 = arith.mulf %847, %852 : vector<3x128xf32>
    %854 = arith.addf %851, %853 : vector<3x128xf32>
    %c0_379 = arith.constant 0 : index
    %c0_380 = arith.constant 0 : index
    %c8_381 = arith.constant 8 : index
    %c0_382 = arith.constant 0 : index
    %c0_383 = arith.constant 0 : index
    %855 = vector.load %arg11[%c0_379, %c0_380, %c8_381, %c0_382, %c0_383] : memref<1x1x16x3x128xf32, #tpu.memory_space<vmem>>, vector<1x1x1x3x128xf32>
    %856 = vector.shape_cast %855 : vector<1x1x1x3x128xf32> to vector<3x128xf32>
    %857 = vector.shape_cast %854 : vector<3x128xf32> to vector<1x1x1x3x128xf32>
    tpu.vector_store %arg11[%c0_379, %c0_380, %c8_381, %c0_382, %c0_383], %857 {strides = array<i32>} : memref<1x1x16x3x128xf32, #tpu.memory_space<vmem>>, vector<1x1x1x3x128xf32>,
    %858 = vector.broadcast %155 : f32 to vector<3x128xf32>
    %859 = arith.addf %804, %858 : vector<3x128xf32>
    %860 = vector.broadcast %231 : f32 to vector<3x128xf32>
    %861 = arith.addf %838, %860 : vector<3x128xf32>
    %862 = arith.subf %859, %861 : vector<3x128xf32>
    %863 = arith.mulf %847, %862 : vector<3x128xf32>
    %864 = arith.addf %861, %863 : vector<3x128xf32>
    %c0_384 = arith.constant 0 : index
    %c0_385 = arith.constant 0 : index
    %c9_386 = arith.constant 9 : index
    %c0_387 = arith.constant 0 : index
    %c0_388 = arith.constant 0 : index
    %865 = vector.load %arg11[%c0_384, %c0_385, %c9_386, %c0_387, %c0_388] : memref<1x1x16x3x128xf32, #tpu.memory_space<vmem>>, vector<1x1x1x3x128xf32>
    %866 = vector.shape_cast %865 : vector<1x1x1x3x128xf32> to vector<3x128xf32>
    %867 = vector.shape_cast %864 : vector<3x128xf32> to vector<1x1x1x3x128xf32>
    tpu.vector_store %arg11[%c0_384, %c0_385, %c9_386, %c0_387, %c0_388], %867 {strides = array<i32>} : memref<1x1x16x3x128xf32, #tpu.memory_space<vmem>>, vector<1x1x1x3x128xf32>,
    %868 = vector.broadcast %156 : f32 to vector<3x128xf32>
    %869 = arith.addf %807, %868 : vector<3x128xf32>
    %870 = vector.broadcast %232 : f32 to vector<3x128xf32>
    %871 = arith.addf %841, %870 : vector<3x128xf32>
    %872 = arith.subf %869, %871 : vector<3x128xf32>
    %873 = arith.mulf %847, %872 : vector<3x128xf32>
    %874 = arith.addf %871, %873 : vector<3x128xf32>
    %c0_389 = arith.constant 0 : index
    %c0_390 = arith.constant 0 : index
    %c10_391 = arith.constant 10 : index
    %c0_392 = arith.constant 0 : index
    %c0_393 = arith.constant 0 : index
    %875 = vector.load %arg11[%c0_389, %c0_390, %c10_391, %c0_392, %c0_393] : memref<1x1x16x3x128xf32, #tpu.memory_space<vmem>>, vector<1x1x1x3x128xf32>
    %876 = vector.shape_cast %875 : vector<1x1x1x3x128xf32> to vector<3x128xf32>
    %877 = vector.shape_cast %874 : vector<3x128xf32> to vector<1x1x1x3x128xf32>
    tpu.vector_store %arg11[%c0_389, %c0_390, %c10_391, %c0_392, %c0_393], %877 {strides = array<i32>} : memref<1x1x16x3x128xf32, #tpu.memory_space<vmem>>, vector<1x1x1x3x128xf32>,
    %878 = vector.broadcast %157 : f32 to vector<3x128xf32>
    %879 = arith.addf %810, %878 : vector<3x128xf32>
    %880 = vector.broadcast %233 : f32 to vector<3x128xf32>
    %881 = arith.addf %844, %880 : vector<3x128xf32>
    %882 = arith.subf %879, %881 : vector<3x128xf32>
    %883 = arith.mulf %847, %882 : vector<3x128xf32>
    %884 = arith.addf %881, %883 : vector<3x128xf32>
    %c0_394 = arith.constant 0 : index
    %c0_395 = arith.constant 0 : index
    %c11_396 = arith.constant 11 : index
    %c0_397 = arith.constant 0 : index
    %c0_398 = arith.constant 0 : index
    %885 = vector.load %arg11[%c0_394, %c0_395, %c11_396, %c0_397, %c0_398] : memref<1x1x16x3x128xf32, #tpu.memory_space<vmem>>, vector<1x1x1x3x128xf32>
    %886 = vector.shape_cast %885 : vector<1x1x1x3x128xf32> to vector<3x128xf32>
    %887 = vector.shape_cast %884 : vector<3x128xf32> to vector<1x1x1x3x128xf32>
    tpu.vector_store %arg11[%c0_394, %c0_395, %c11_396, %c0_397, %c0_398], %887 {strides = array<i32>} : memref<1x1x16x3x128xf32, #tpu.memory_space<vmem>>, vector<1x1x1x3x128xf32>,
    %cst_399 = arith.constant 0.000000e+00 : f32
    %888 = vector.broadcast %cst_399 : f32 to vector<3x128xf32>
    %cst_400 = arith.constant 0.000000e+00 : f32
    %889 = vector.broadcast %cst_400 : f32 to vector<3x128xf32>
    %cst_401 = arith.constant 0.000000e+00 : f32
    %890 = vector.broadcast %cst_401 : f32 to vector<3x128xf32>
    %cst_402 = arith.constant 0.000000e+00 : f32
    %891 = vector.broadcast %cst_402 : f32 to vector<3x128xf32>
    %cst_403 = arith.constant 0.000000e+00 : f32
    %892 = vector.broadcast %cst_403 : f32 to vector<3x128xf32>
    %cst_404 = arith.constant 0.000000e+00 : f32
    %893 = vector.broadcast %cst_404 : f32 to vector<3x128xf32>
    %cst_405 = arith.constant 0.000000e+00 : f32
    %894 = vector.broadcast %cst_405 : f32 to vector<3x128xf32>
    %cst_406 = arith.constant 0.000000e+00 : f32
    %895 = vector.broadcast %cst_406 : f32 to vector<3x128xf32>
    %c0_407 = arith.constant 0 : index
    %c0_408 = arith.constant 0 : index
    %c0_409 = arith.constant 0 : index
    %c0_410 = arith.constant 0 : index
    %c0_411 = arith.constant 0 : index
    %896 = vector.load %arg2[%c0_407, %c0_408, %c0_409, %c0_410, %c0_411] : memref<1x1x4x4x128xf32, #tpu.memory_space<vmem>>, vector<1x1x1x3x128xf32>
    %897 = vector.shape_cast %896 : vector<1x1x1x3x128xf32> to vector<3x128xf32>
    %898 = vector.broadcast %10 : f32 to vector<3x128xf32>
    %899 = arith.mulf %898, %897 : vector<3x128xf32>
    %900 = arith.addf %888, %899 : vector<3x128xf32>
    %901 = vector.broadcast %11 : f32 to vector<3x128xf32>
    %902 = arith.mulf %901, %897 : vector<3x128xf32>
    %903 = arith.addf %889, %902 : vector<3x128xf32>
    %904 = vector.broadcast %12 : f32 to vector<3x128xf32>
    %905 = arith.mulf %904, %897 : vector<3x128xf32>
    %906 = arith.addf %890, %905 : vector<3x128xf32>
    %907 = vector.broadcast %13 : f32 to vector<3x128xf32>
    %908 = arith.mulf %907, %897 : vector<3x128xf32>
    %909 = arith.addf %891, %908 : vector<3x128xf32>
    %c0_412 = arith.constant 0 : index
    %c0_413 = arith.constant 0 : index
    %c1_414 = arith.constant 1 : index
    %c0_415 = arith.constant 0 : index
    %c0_416 = arith.constant 0 : index
    %910 = vector.load %arg2[%c0_412, %c0_413, %c1_414, %c0_415, %c0_416] : memref<1x1x4x4x128xf32, #tpu.memory_space<vmem>>, vector<1x1x1x3x128xf32>
    %911 = vector.shape_cast %910 : vector<1x1x1x3x128xf32> to vector<3x128xf32>
    %912 = vector.broadcast %14 : f32 to vector<3x128xf32>
    %913 = arith.mulf %912, %911 : vector<3x128xf32>
    %914 = arith.addf %900, %913 : vector<3x128xf32>
    %915 = vector.broadcast %15 : f32 to vector<3x128xf32>
    %916 = arith.mulf %915, %911 : vector<3x128xf32>
    %917 = arith.addf %903, %916 : vector<3x128xf32>
    %918 = vector.broadcast %16 : f32 to vector<3x128xf32>
    %919 = arith.mulf %918, %911 : vector<3x128xf32>
    %920 = arith.addf %906, %919 : vector<3x128xf32>
    %921 = vector.broadcast %17 : f32 to vector<3x128xf32>
    %922 = arith.mulf %921, %911 : vector<3x128xf32>
    %923 = arith.addf %909, %922 : vector<3x128xf32>
    %c0_417 = arith.constant 0 : index
    %c0_418 = arith.constant 0 : index
    %c2_419 = arith.constant 2 : index
    %c0_420 = arith.constant 0 : index
    %c0_421 = arith.constant 0 : index
    %924 = vector.load %arg2[%c0_417, %c0_418, %c2_419, %c0_420, %c0_421] : memref<1x1x4x4x128xf32, #tpu.memory_space<vmem>>, vector<1x1x1x3x128xf32>
    %925 = vector.shape_cast %924 : vector<1x1x1x3x128xf32> to vector<3x128xf32>
    %926 = vector.broadcast %18 : f32 to vector<3x128xf32>
    %927 = arith.mulf %926, %925 : vector<3x128xf32>
    %928 = arith.addf %914, %927 : vector<3x128xf32>
    %929 = vector.broadcast %19 : f32 to vector<3x128xf32>
    %930 = arith.mulf %929, %925 : vector<3x128xf32>
    %931 = arith.addf %917, %930 : vector<3x128xf32>
    %932 = vector.broadcast %20 : f32 to vector<3x128xf32>
    %933 = arith.mulf %932, %925 : vector<3x128xf32>
    %934 = arith.addf %920, %933 : vector<3x128xf32>
    %935 = vector.broadcast %21 : f32 to vector<3x128xf32>
    %936 = arith.mulf %935, %925 : vector<3x128xf32>
    %937 = arith.addf %923, %936 : vector<3x128xf32>
    %c0_422 = arith.constant 0 : index
    %c0_423 = arith.constant 0 : index
    %c3_424 = arith.constant 3 : index
    %c0_425 = arith.constant 0 : index
    %c0_426 = arith.constant 0 : index
    %938 = vector.load %arg2[%c0_422, %c0_423, %c3_424, %c0_425, %c0_426] : memref<1x1x4x4x128xf32, #tpu.memory_space<vmem>>, vector<1x1x1x3x128xf32>
    %939 = vector.shape_cast %938 : vector<1x1x1x3x128xf32> to vector<3x128xf32>
    %940 = vector.broadcast %22 : f32 to vector<3x128xf32>
    %941 = arith.mulf %940, %939 : vector<3x128xf32>
    %942 = arith.addf %928, %941 : vector<3x128xf32>
    %943 = vector.broadcast %23 : f32 to vector<3x128xf32>
    %944 = arith.mulf %943, %939 : vector<3x128xf32>
    %945 = arith.addf %931, %944 : vector<3x128xf32>
    %946 = vector.broadcast %24 : f32 to vector<3x128xf32>
    %947 = arith.mulf %946, %939 : vector<3x128xf32>
    %948 = arith.addf %934, %947 : vector<3x128xf32>
    %949 = vector.broadcast %25 : f32 to vector<3x128xf32>
    %950 = arith.mulf %949, %939 : vector<3x128xf32>
    %951 = arith.addf %937, %950 : vector<3x128xf32>
    %c0_427 = arith.constant 0 : index
    %c0_428 = arith.constant 0 : index
    %c0_429 = arith.constant 0 : index
    %952 = vector.load %arg12[%c0_427, %c0_428, %c0_429] : memref<2x4x128xf32, #tpu.memory_space<vmem>>, vector<1x3x128xf32>
    %953 = vector.shape_cast %952 : vector<1x3x128xf32> to vector<3x128xf32>
    %954 = vector.broadcast %158 : f32 to vector<3x128xf32>
    %955 = arith.mulf %954, %953 : vector<3x128xf32>
    %956 = arith.addf %892, %955 : vector<3x128xf32>
    %957 = vector.broadcast %159 : f32 to vector<3x128xf32>
    %958 = arith.mulf %957, %953 : vector<3x128xf32>
    %959 = arith.addf %893, %958 : vector<3x128xf32>
    %960 = vector.broadcast %160 : f32 to vector<3x128xf32>
    %961 = arith.mulf %960, %953 : vector<3x128xf32>
    %962 = arith.addf %894, %961 : vector<3x128xf32>
    %963 = vector.broadcast %161 : f32 to vector<3x128xf32>
    %964 = arith.mulf %963, %953 : vector<3x128xf32>
    %965 = arith.addf %895, %964 : vector<3x128xf32>
    %c1_430 = arith.constant 1 : index
    %c0_431 = arith.constant 0 : index
    %c0_432 = arith.constant 0 : index
    %966 = vector.load %arg12[%c1_430, %c0_431, %c0_432] : memref<2x4x128xf32, #tpu.memory_space<vmem>>, vector<1x3x128xf32>
    %967 = vector.shape_cast %966 : vector<1x3x128xf32> to vector<3x128xf32>
    %968 = vector.broadcast %162 : f32 to vector<3x128xf32>
    %969 = arith.mulf %968, %967 : vector<3x128xf32>
    %970 = arith.addf %956, %969 : vector<3x128xf32>
    %971 = vector.broadcast %163 : f32 to vector<3x128xf32>
    %972 = arith.mulf %971, %967 : vector<3x128xf32>
    %973 = arith.addf %959, %972 : vector<3x128xf32>
    %974 = vector.broadcast %164 : f32 to vector<3x128xf32>
    %975 = arith.mulf %974, %967 : vector<3x128xf32>
    %976 = arith.addf %962, %975 : vector<3x128xf32>
    %977 = vector.broadcast %165 : f32 to vector<3x128xf32>
    %978 = arith.mulf %977, %967 : vector<3x128xf32>
    %979 = arith.addf %965, %978 : vector<3x128xf32>
    %c0_433 = arith.constant 0 : index
    %c0_434 = arith.constant 0 : index
    %c0_435 = arith.constant 0 : index
    %c0_436 = arith.constant 0 : index
    %c1_437 = arith.constant 1 : index
    %980 = vector.load %arg2[%c0_433, %c0_434, %c0_435, %c0_436, %c1_437] : memref<1x1x4x4x128xf32, #tpu.memory_space<vmem>>, vector<1x1x1x3x127xf32>
    %981 = vector.shape_cast %980 : vector<1x1x1x3x127xf32> to vector<3x127xf32>
    %c0_438 = arith.constant 0 : index
    %c0_439 = arith.constant 0 : index
    %c0_440 = arith.constant 0 : index
    %c1_441 = arith.constant 1 : index
    %c0_442 = arith.constant 0 : index
    %982 = vector.load %arg2[%c0_438, %c0_439, %c0_440, %c1_441, %c0_442] : memref<1x1x4x4x128xf32, #tpu.memory_space<vmem>>, vector<1x1x1x3x1xf32>
    %983 = vector.shape_cast %982 : vector<1x1x1x3x1xf32> to vector<3x1xf32>
    %984 = tpu.concatenate %981, %983 in 1 : vector<3x127xf32>, vector<3x1xf32> -> vector<3x128xf32>
    %985 = vector.broadcast %42 : f32 to vector<3x128xf32>
    %986 = arith.mulf %985, %984 : vector<3x128xf32>
    %987 = arith.addf %942, %986 : vector<3x128xf32>
    %988 = vector.broadcast %43 : f32 to vector<3x128xf32>
    %989 = arith.mulf %988, %984 : vector<3x128xf32>
    %990 = arith.addf %945, %989 : vector<3x128xf32>
    %991 = vector.broadcast %44 : f32 to vector<3x128xf32>
    %992 = arith.mulf %991, %984 : vector<3x128xf32>
    %993 = arith.addf %948, %992 : vector<3x128xf32>
    %994 = vector.broadcast %45 : f32 to vector<3x128xf32>
    %995 = arith.mulf %994, %984 : vector<3x128xf32>
    %996 = arith.addf %951, %995 : vector<3x128xf32>
    %c0_443 = arith.constant 0 : index
    %c0_444 = arith.constant 0 : index
    %c1_445 = arith.constant 1 : index
    %c0_446 = arith.constant 0 : index
    %c1_447 = arith.constant 1 : index
    %997 = vector.load %arg2[%c0_443, %c0_444, %c1_445, %c0_446, %c1_447] : memref<1x1x4x4x128xf32, #tpu.memory_space<vmem>>, vector<1x1x1x3x127xf32>
    %998 = vector.shape_cast %997 : vector<1x1x1x3x127xf32> to vector<3x127xf32>
    %c0_448 = arith.constant 0 : index
    %c0_449 = arith.constant 0 : index
    %c1_450 = arith.constant 1 : index
    %c1_451 = arith.constant 1 : index
    %c0_452 = arith.constant 0 : index
    %999 = vector.load %arg2[%c0_448, %c0_449, %c1_450, %c1_451, %c0_452] : memref<1x1x4x4x128xf32, #tpu.memory_space<vmem>>, vector<1x1x1x3x1xf32>
    %1000 = vector.shape_cast %999 : vector<1x1x1x3x1xf32> to vector<3x1xf32>
    %1001 = tpu.concatenate %998, %1000 in 1 : vector<3x127xf32>, vector<3x1xf32> -> vector<3x128xf32>
    %1002 = vector.broadcast %46 : f32 to vector<3x128xf32>
    %1003 = arith.mulf %1002, %1001 : vector<3x128xf32>
    %1004 = arith.addf %987, %1003 : vector<3x128xf32>
    %1005 = vector.broadcast %47 : f32 to vector<3x128xf32>
    %1006 = arith.mulf %1005, %1001 : vector<3x128xf32>
    %1007 = arith.addf %990, %1006 : vector<3x128xf32>
    %1008 = vector.broadcast %48 : f32 to vector<3x128xf32>
    %1009 = arith.mulf %1008, %1001 : vector<3x128xf32>
    %1010 = arith.addf %993, %1009 : vector<3x128xf32>
    %1011 = vector.broadcast %49 : f32 to vector<3x128xf32>
    %1012 = arith.mulf %1011, %1001 : vector<3x128xf32>
    %1013 = arith.addf %996, %1012 : vector<3x128xf32>
    %c0_453 = arith.constant 0 : index
    %c0_454 = arith.constant 0 : index
    %c2_455 = arith.constant 2 : index
    %c0_456 = arith.constant 0 : index
    %c1_457 = arith.constant 1 : index
    %1014 = vector.load %arg2[%c0_453, %c0_454, %c2_455, %c0_456, %c1_457] : memref<1x1x4x4x128xf32, #tpu.memory_space<vmem>>, vector<1x1x1x3x127xf32>
    %1015 = vector.shape_cast %1014 : vector<1x1x1x3x127xf32> to vector<3x127xf32>
    %c0_458 = arith.constant 0 : index
    %c0_459 = arith.constant 0 : index
    %c2_460 = arith.constant 2 : index
    %c1_461 = arith.constant 1 : index
    %c0_462 = arith.constant 0 : index
    %1016 = vector.load %arg2[%c0_458, %c0_459, %c2_460, %c1_461, %c0_462] : memref<1x1x4x4x128xf32, #tpu.memory_space<vmem>>, vector<1x1x1x3x1xf32>
    %1017 = vector.shape_cast %1016 : vector<1x1x1x3x1xf32> to vector<3x1xf32>
    %1018 = tpu.concatenate %1015, %1017 in 1 : vector<3x127xf32>, vector<3x1xf32> -> vector<3x128xf32>
    %1019 = vector.broadcast %50 : f32 to vector<3x128xf32>
    %1020 = arith.mulf %1019, %1018 : vector<3x128xf32>
    %1021 = arith.addf %1004, %1020 : vector<3x128xf32>
    %1022 = vector.broadcast %51 : f32 to vector<3x128xf32>
    %1023 = arith.mulf %1022, %1018 : vector<3x128xf32>
    %1024 = arith.addf %1007, %1023 : vector<3x128xf32>
    %1025 = vector.broadcast %52 : f32 to vector<3x128xf32>
    %1026 = arith.mulf %1025, %1018 : vector<3x128xf32>
    %1027 = arith.addf %1010, %1026 : vector<3x128xf32>
    %1028 = vector.broadcast %53 : f32 to vector<3x128xf32>
    %1029 = arith.mulf %1028, %1018 : vector<3x128xf32>
    %1030 = arith.addf %1013, %1029 : vector<3x128xf32>
    %c0_463 = arith.constant 0 : index
    %c0_464 = arith.constant 0 : index
    %c3_465 = arith.constant 3 : index
    %c0_466 = arith.constant 0 : index
    %c1_467 = arith.constant 1 : index
    %1031 = vector.load %arg2[%c0_463, %c0_464, %c3_465, %c0_466, %c1_467] : memref<1x1x4x4x128xf32, #tpu.memory_space<vmem>>, vector<1x1x1x3x127xf32>
    %1032 = vector.shape_cast %1031 : vector<1x1x1x3x127xf32> to vector<3x127xf32>
    %c0_468 = arith.constant 0 : index
    %c0_469 = arith.constant 0 : index
    %c3_470 = arith.constant 3 : index
    %c1_471 = arith.constant 1 : index
    %c0_472 = arith.constant 0 : index
    %1033 = vector.load %arg2[%c0_468, %c0_469, %c3_470, %c1_471, %c0_472] : memref<1x1x4x4x128xf32, #tpu.memory_space<vmem>>, vector<1x1x1x3x1xf32>
    %1034 = vector.shape_cast %1033 : vector<1x1x1x3x1xf32> to vector<3x1xf32>
    %1035 = tpu.concatenate %1032, %1034 in 1 : vector<3x127xf32>, vector<3x1xf32> -> vector<3x128xf32>
    %1036 = vector.broadcast %54 : f32 to vector<3x128xf32>
    %1037 = arith.mulf %1036, %1035 : vector<3x128xf32>
    %1038 = arith.addf %1021, %1037 : vector<3x128xf32>
    %1039 = vector.broadcast %55 : f32 to vector<3x128xf32>
    %1040 = arith.mulf %1039, %1035 : vector<3x128xf32>
    %1041 = arith.addf %1024, %1040 : vector<3x128xf32>
    %1042 = vector.broadcast %56 : f32 to vector<3x128xf32>
    %1043 = arith.mulf %1042, %1035 : vector<3x128xf32>
    %1044 = arith.addf %1027, %1043 : vector<3x128xf32>
    %1045 = vector.broadcast %57 : f32 to vector<3x128xf32>
    %1046 = arith.mulf %1045, %1035 : vector<3x128xf32>
    %1047 = arith.addf %1030, %1046 : vector<3x128xf32>
    %c0_473 = arith.constant 0 : index
    %c0_474 = arith.constant 0 : index
    %c1_475 = arith.constant 1 : index
    %1048 = vector.load %arg12[%c0_473, %c0_474, %c1_475] : memref<2x4x128xf32, #tpu.memory_space<vmem>>, vector<1x3x127xf32>
    %1049 = vector.shape_cast %1048 : vector<1x3x127xf32> to vector<3x127xf32>
    %c0_476 = arith.constant 0 : index
    %c1_477 = arith.constant 1 : index
    %c0_478 = arith.constant 0 : index
    %1050 = vector.load %arg12[%c0_476, %c1_477, %c0_478] : memref<2x4x128xf32, #tpu.memory_space<vmem>>, vector<1x3x1xf32>
    %1051 = vector.shape_cast %1050 : vector<1x3x1xf32> to vector<3x1xf32>
    %1052 = tpu.concatenate %1049, %1051 in 1 : vector<3x127xf32>, vector<3x1xf32> -> vector<3x128xf32>
    %1053 = vector.broadcast %174 : f32 to vector<3x128xf32>
    %1054 = arith.mulf %1053, %1052 : vector<3x128xf32>
    %1055 = arith.addf %970, %1054 : vector<3x128xf32>
    %1056 = vector.broadcast %175 : f32 to vector<3x128xf32>
    %1057 = arith.mulf %1056, %1052 : vector<3x128xf32>
    %1058 = arith.addf %973, %1057 : vector<3x128xf32>
    %1059 = vector.broadcast %176 : f32 to vector<3x128xf32>
    %1060 = arith.mulf %1059, %1052 : vector<3x128xf32>
    %1061 = arith.addf %976, %1060 : vector<3x128xf32>
    %1062 = vector.broadcast %177 : f32 to vector<3x128xf32>
    %1063 = arith.mulf %1062, %1052 : vector<3x128xf32>
    %1064 = arith.addf %979, %1063 : vector<3x128xf32>
    %c1_479 = arith.constant 1 : index
    %c0_480 = arith.constant 0 : index
    %c1_481 = arith.constant 1 : index
    %1065 = vector.load %arg12[%c1_479, %c0_480, %c1_481] : memref<2x4x128xf32, #tpu.memory_space<vmem>>, vector<1x3x127xf32>
    %1066 = vector.shape_cast %1065 : vector<1x3x127xf32> to vector<3x127xf32>
    %c1_482 = arith.constant 1 : index
    %c1_483 = arith.constant 1 : index
    %c0_484 = arith.constant 0 : index
    %1067 = vector.load %arg12[%c1_482, %c1_483, %c0_484] : memref<2x4x128xf32, #tpu.memory_space<vmem>>, vector<1x3x1xf32>
    %1068 = vector.shape_cast %1067 : vector<1x3x1xf32> to vector<3x1xf32>
    %1069 = tpu.concatenate %1066, %1068 in 1 : vector<3x127xf32>, vector<3x1xf32> -> vector<3x128xf32>
    %1070 = vector.broadcast %178 : f32 to vector<3x128xf32>
    %1071 = arith.mulf %1070, %1069 : vector<3x128xf32>
    %1072 = arith.addf %1055, %1071 : vector<3x128xf32>
    %1073 = vector.broadcast %179 : f32 to vector<3x128xf32>
    %1074 = arith.mulf %1073, %1069 : vector<3x128xf32>
    %1075 = arith.addf %1058, %1074 : vector<3x128xf32>
    %1076 = vector.broadcast %180 : f32 to vector<3x128xf32>
    %1077 = arith.mulf %1076, %1069 : vector<3x128xf32>
    %1078 = arith.addf %1061, %1077 : vector<3x128xf32>
    %1079 = vector.broadcast %181 : f32 to vector<3x128xf32>
    %1080 = arith.mulf %1079, %1069 : vector<3x128xf32>
    %1081 = arith.addf %1064, %1080 : vector<3x128xf32>
    %c0_485 = arith.constant 0 : index
    %c0_486 = arith.constant 0 : index
    %c0_487 = arith.constant 0 : index
    %c0_488 = arith.constant 0 : index
    %c17_489 = arith.constant 17 : index
    %1082 = vector.load %arg2[%c0_485, %c0_486, %c0_487, %c0_488, %c17_489] : memref<1x1x4x4x128xf32, #tpu.memory_space<vmem>>, vector<1x1x1x3x111xf32>
    %1083 = vector.shape_cast %1082 : vector<1x1x1x3x111xf32> to vector<3x111xf32>
    %c0_490 = arith.constant 0 : index
    %c0_491 = arith.constant 0 : index
    %c0_492 = arith.constant 0 : index
    %c1_493 = arith.constant 1 : index
    %c0_494 = arith.constant 0 : index
    %1084 = vector.load %arg2[%c0_490, %c0_491, %c0_492, %c1_493, %c0_494] : memref<1x1x4x4x128xf32, #tpu.memory_space<vmem>>, vector<1x1x1x3x17xf32>
    %1085 = vector.shape_cast %1084 : vector<1x1x1x3x17xf32> to vector<3x17xf32>
    %1086 = tpu.concatenate %1083, %1085 in 1 : vector<3x111xf32>, vector<3x17xf32> -> vector<3x128xf32>
    %1087 = vector.broadcast %106 : f32 to vector<3x128xf32>
    %1088 = arith.mulf %1087, %1086 : vector<3x128xf32>
    %1089 = arith.addf %1038, %1088 : vector<3x128xf32>
    %1090 = vector.broadcast %107 : f32 to vector<3x128xf32>
    %1091 = arith.mulf %1090, %1086 : vector<3x128xf32>
    %1092 = arith.addf %1041, %1091 : vector<3x128xf32>
    %1093 = vector.broadcast %108 : f32 to vector<3x128xf32>
    %1094 = arith.mulf %1093, %1086 : vector<3x128xf32>
    %1095 = arith.addf %1044, %1094 : vector<3x128xf32>
    %1096 = vector.broadcast %109 : f32 to vector<3x128xf32>
    %1097 = arith.mulf %1096, %1086 : vector<3x128xf32>
    %1098 = arith.addf %1047, %1097 : vector<3x128xf32>
    %c0_495 = arith.constant 0 : index
    %c0_496 = arith.constant 0 : index
    %c1_497 = arith.constant 1 : index
    %c0_498 = arith.constant 0 : index
    %c17_499 = arith.constant 17 : index
    %1099 = vector.load %arg2[%c0_495, %c0_496, %c1_497, %c0_498, %c17_499] : memref<1x1x4x4x128xf32, #tpu.memory_space<vmem>>, vector<1x1x1x3x111xf32>
    %1100 = vector.shape_cast %1099 : vector<1x1x1x3x111xf32> to vector<3x111xf32>
    %c0_500 = arith.constant 0 : index
    %c0_501 = arith.constant 0 : index
    %c1_502 = arith.constant 1 : index
    %c1_503 = arith.constant 1 : index
    %c0_504 = arith.constant 0 : index
    %1101 = vector.load %arg2[%c0_500, %c0_501, %c1_502, %c1_503, %c0_504] : memref<1x1x4x4x128xf32, #tpu.memory_space<vmem>>, vector<1x1x1x3x17xf32>
    %1102 = vector.shape_cast %1101 : vector<1x1x1x3x17xf32> to vector<3x17xf32>
    %1103 = tpu.concatenate %1100, %1102 in 1 : vector<3x111xf32>, vector<3x17xf32> -> vector<3x128xf32>
    %1104 = vector.broadcast %110 : f32 to vector<3x128xf32>
    %1105 = arith.mulf %1104, %1103 : vector<3x128xf32>
    %1106 = arith.addf %1089, %1105 : vector<3x128xf32>
    %1107 = vector.broadcast %111 : f32 to vector<3x128xf32>
    %1108 = arith.mulf %1107, %1103 : vector<3x128xf32>
    %1109 = arith.addf %1092, %1108 : vector<3x128xf32>
    %1110 = vector.broadcast %112 : f32 to vector<3x128xf32>
    %1111 = arith.mulf %1110, %1103 : vector<3x128xf32>
    %1112 = arith.addf %1095, %1111 : vector<3x128xf32>
    %1113 = vector.broadcast %113 : f32 to vector<3x128xf32>
    %1114 = arith.mulf %1113, %1103 : vector<3x128xf32>
    %1115 = arith.addf %1098, %1114 : vector<3x128xf32>
    %c0_505 = arith.constant 0 : index
    %c0_506 = arith.constant 0 : index
    %c2_507 = arith.constant 2 : index
    %c0_508 = arith.constant 0 : index
    %c17_509 = arith.constant 17 : index
    %1116 = vector.load %arg2[%c0_505, %c0_506, %c2_507, %c0_508, %c17_509] : memref<1x1x4x4x128xf32, #tpu.memory_space<vmem>>, vector<1x1x1x3x111xf32>
    %1117 = vector.shape_cast %1116 : vector<1x1x1x3x111xf32> to vector<3x111xf32>
    %c0_510 = arith.constant 0 : index
    %c0_511 = arith.constant 0 : index
    %c2_512 = arith.constant 2 : index
    %c1_513 = arith.constant 1 : index
    %c0_514 = arith.constant 0 : index
    %1118 = vector.load %arg2[%c0_510, %c0_511, %c2_512, %c1_513, %c0_514] : memref<1x1x4x4x128xf32, #tpu.memory_space<vmem>>, vector<1x1x1x3x17xf32>
    %1119 = vector.shape_cast %1118 : vector<1x1x1x3x17xf32> to vector<3x17xf32>
    %1120 = tpu.concatenate %1117, %1119 in 1 : vector<3x111xf32>, vector<3x17xf32> -> vector<3x128xf32>
    %1121 = vector.broadcast %114 : f32 to vector<3x128xf32>
    %1122 = arith.mulf %1121, %1120 : vector<3x128xf32>
    %1123 = arith.addf %1106, %1122 : vector<3x128xf32>
    %1124 = vector.broadcast %115 : f32 to vector<3x128xf32>
    %1125 = arith.mulf %1124, %1120 : vector<3x128xf32>
    %1126 = arith.addf %1109, %1125 : vector<3x128xf32>
    %1127 = vector.broadcast %116 : f32 to vector<3x128xf32>
    %1128 = arith.mulf %1127, %1120 : vector<3x128xf32>
    %1129 = arith.addf %1112, %1128 : vector<3x128xf32>
    %1130 = vector.broadcast %117 : f32 to vector<3x128xf32>
    %1131 = arith.mulf %1130, %1120 : vector<3x128xf32>
    %1132 = arith.addf %1115, %1131 : vector<3x128xf32>
    %c0_515 = arith.constant 0 : index
    %c0_516 = arith.constant 0 : index
    %c3_517 = arith.constant 3 : index
    %c0_518 = arith.constant 0 : index
    %c17_519 = arith.constant 17 : index
    %1133 = vector.load %arg2[%c0_515, %c0_516, %c3_517, %c0_518, %c17_519] : memref<1x1x4x4x128xf32, #tpu.memory_space<vmem>>, vector<1x1x1x3x111xf32>
    %1134 = vector.shape_cast %1133 : vector<1x1x1x3x111xf32> to vector<3x111xf32>
    %c0_520 = arith.constant 0 : index
    %c0_521 = arith.constant 0 : index
    %c3_522 = arith.constant 3 : index
    %c1_523 = arith.constant 1 : index
    %c0_524 = arith.constant 0 : index
    %1135 = vector.load %arg2[%c0_520, %c0_521, %c3_522, %c1_523, %c0_524] : memref<1x1x4x4x128xf32, #tpu.memory_space<vmem>>, vector<1x1x1x3x17xf32>
    %1136 = vector.shape_cast %1135 : vector<1x1x1x3x17xf32> to vector<3x17xf32>
    %1137 = tpu.concatenate %1134, %1136 in 1 : vector<3x111xf32>, vector<3x17xf32> -> vector<3x128xf32>
    %1138 = vector.broadcast %118 : f32 to vector<3x128xf32>
    %1139 = arith.mulf %1138, %1137 : vector<3x128xf32>
    %1140 = arith.addf %1123, %1139 : vector<3x128xf32>
    %1141 = vector.broadcast %119 : f32 to vector<3x128xf32>
    %1142 = arith.mulf %1141, %1137 : vector<3x128xf32>
    %1143 = arith.addf %1126, %1142 : vector<3x128xf32>
    %1144 = vector.broadcast %120 : f32 to vector<3x128xf32>
    %1145 = arith.mulf %1144, %1137 : vector<3x128xf32>
    %1146 = arith.addf %1129, %1145 : vector<3x128xf32>
    %1147 = vector.broadcast %121 : f32 to vector<3x128xf32>
    %1148 = arith.mulf %1147, %1137 : vector<3x128xf32>
    %1149 = arith.addf %1132, %1148 : vector<3x128xf32>
    %c0_525 = arith.constant 0 : index
    %c0_526 = arith.constant 0 : index
    %c17_527 = arith.constant 17 : index
    %1150 = vector.load %arg12[%c0_525, %c0_526, %c17_527] : memref<2x4x128xf32, #tpu.memory_space<vmem>>, vector<1x3x111xf32>
    %1151 = vector.shape_cast %1150 : vector<1x3x111xf32> to vector<3x111xf32>
    %c0_528 = arith.constant 0 : index
    %c1_529 = arith.constant 1 : index
    %c0_530 = arith.constant 0 : index
    %1152 = vector.load %arg12[%c0_528, %c1_529, %c0_530] : memref<2x4x128xf32, #tpu.memory_space<vmem>>, vector<1x3x17xf32>
    %1153 = vector.shape_cast %1152 : vector<1x3x17xf32> to vector<3x17xf32>
    %1154 = tpu.concatenate %1151, %1153 in 1 : vector<3x111xf32>, vector<3x17xf32> -> vector<3x128xf32>
    %1155 = vector.broadcast %206 : f32 to vector<3x128xf32>
    %1156 = arith.mulf %1155, %1154 : vector<3x128xf32>
    %1157 = arith.addf %1072, %1156 : vector<3x128xf32>
    %1158 = vector.broadcast %207 : f32 to vector<3x128xf32>
    %1159 = arith.mulf %1158, %1154 : vector<3x128xf32>
    %1160 = arith.addf %1075, %1159 : vector<3x128xf32>
    %1161 = vector.broadcast %208 : f32 to vector<3x128xf32>
    %1162 = arith.mulf %1161, %1154 : vector<3x128xf32>
    %1163 = arith.addf %1078, %1162 : vector<3x128xf32>
    %1164 = vector.broadcast %209 : f32 to vector<3x128xf32>
    %1165 = arith.mulf %1164, %1154 : vector<3x128xf32>
    %1166 = arith.addf %1081, %1165 : vector<3x128xf32>
    %c1_531 = arith.constant 1 : index
    %c0_532 = arith.constant 0 : index
    %c17_533 = arith.constant 17 : index
    %1167 = vector.load %arg12[%c1_531, %c0_532, %c17_533] : memref<2x4x128xf32, #tpu.memory_space<vmem>>, vector<1x3x111xf32>
    %1168 = vector.shape_cast %1167 : vector<1x3x111xf32> to vector<3x111xf32>
    %c1_534 = arith.constant 1 : index
    %c1_535 = arith.constant 1 : index
    %c0_536 = arith.constant 0 : index
    %1169 = vector.load %arg12[%c1_534, %c1_535, %c0_536] : memref<2x4x128xf32, #tpu.memory_space<vmem>>, vector<1x3x17xf32>
    %1170 = vector.shape_cast %1169 : vector<1x3x17xf32> to vector<3x17xf32>
    %1171 = tpu.concatenate %1168, %1170 in 1 : vector<3x111xf32>, vector<3x17xf32> -> vector<3x128xf32>
    %1172 = vector.broadcast %210 : f32 to vector<3x128xf32>
    %1173 = arith.mulf %1172, %1171 : vector<3x128xf32>
    %1174 = arith.addf %1157, %1173 : vector<3x128xf32>
    %1175 = vector.broadcast %211 : f32 to vector<3x128xf32>
    %1176 = arith.mulf %1175, %1171 : vector<3x128xf32>
    %1177 = arith.addf %1160, %1176 : vector<3x128xf32>
    %1178 = vector.broadcast %212 : f32 to vector<3x128xf32>
    %1179 = arith.mulf %1178, %1171 : vector<3x128xf32>
    %1180 = arith.addf %1163, %1179 : vector<3x128xf32>
    %1181 = vector.broadcast %213 : f32 to vector<3x128xf32>
    %1182 = arith.mulf %1181, %1171 : vector<3x128xf32>
    %1183 = arith.addf %1166, %1182 : vector<3x128xf32>
    %c0_537 = arith.constant 0 : index
    %c0_538 = arith.constant 0 : index
    %c0_539 = arith.constant 0 : index
    %c0_540 = arith.constant 0 : index
    %c18_541 = arith.constant 18 : index
    %1184 = vector.load %arg2[%c0_537, %c0_538, %c0_539, %c0_540, %c18_541] : memref<1x1x4x4x128xf32, #tpu.memory_space<vmem>>, vector<1x1x1x3x110xf32>
    %1185 = vector.shape_cast %1184 : vector<1x1x1x3x110xf32> to vector<3x110xf32>
    %c0_542 = arith.constant 0 : index
    %c0_543 = arith.constant 0 : index
    %c0_544 = arith.constant 0 : index
    %c1_545 = arith.constant 1 : index
    %c0_546 = arith.constant 0 : index
    %1186 = vector.load %arg2[%c0_542, %c0_543, %c0_544, %c1_545, %c0_546] : memref<1x1x4x4x128xf32, #tpu.memory_space<vmem>>, vector<1x1x1x3x18xf32>
    %1187 = vector.shape_cast %1186 : vector<1x1x1x3x18xf32> to vector<3x18xf32>
    %1188 = tpu.concatenate %1185, %1187 in 1 : vector<3x110xf32>, vector<3x18xf32> -> vector<3x128xf32>
    %1189 = vector.broadcast %138 : f32 to vector<3x128xf32>
    %1190 = arith.mulf %1189, %1188 : vector<3x128xf32>
    %1191 = arith.addf %1140, %1190 : vector<3x128xf32>
    %1192 = vector.broadcast %139 : f32 to vector<3x128xf32>
    %1193 = arith.mulf %1192, %1188 : vector<3x128xf32>
    %1194 = arith.addf %1143, %1193 : vector<3x128xf32>
    %1195 = vector.broadcast %140 : f32 to vector<3x128xf32>
    %1196 = arith.mulf %1195, %1188 : vector<3x128xf32>
    %1197 = arith.addf %1146, %1196 : vector<3x128xf32>
    %1198 = vector.broadcast %141 : f32 to vector<3x128xf32>
    %1199 = arith.mulf %1198, %1188 : vector<3x128xf32>
    %1200 = arith.addf %1149, %1199 : vector<3x128xf32>
    %c0_547 = arith.constant 0 : index
    %c0_548 = arith.constant 0 : index
    %c1_549 = arith.constant 1 : index
    %c0_550 = arith.constant 0 : index
    %c18_551 = arith.constant 18 : index
    %1201 = vector.load %arg2[%c0_547, %c0_548, %c1_549, %c0_550, %c18_551] : memref<1x1x4x4x128xf32, #tpu.memory_space<vmem>>, vector<1x1x1x3x110xf32>
    %1202 = vector.shape_cast %1201 : vector<1x1x1x3x110xf32> to vector<3x110xf32>
    %c0_552 = arith.constant 0 : index
    %c0_553 = arith.constant 0 : index
    %c1_554 = arith.constant 1 : index
    %c1_555 = arith.constant 1 : index
    %c0_556 = arith.constant 0 : index
    %1203 = vector.load %arg2[%c0_552, %c0_553, %c1_554, %c1_555, %c0_556] : memref<1x1x4x4x128xf32, #tpu.memory_space<vmem>>, vector<1x1x1x3x18xf32>
    %1204 = vector.shape_cast %1203 : vector<1x1x1x3x18xf32> to vector<3x18xf32>
    %1205 = tpu.concatenate %1202, %1204 in 1 : vector<3x110xf32>, vector<3x18xf32> -> vector<3x128xf32>
    %1206 = vector.broadcast %142 : f32 to vector<3x128xf32>
    %1207 = arith.mulf %1206, %1205 : vector<3x128xf32>
    %1208 = arith.addf %1191, %1207 : vector<3x128xf32>
    %1209 = vector.broadcast %143 : f32 to vector<3x128xf32>
    %1210 = arith.mulf %1209, %1205 : vector<3x128xf32>
    %1211 = arith.addf %1194, %1210 : vector<3x128xf32>
    %1212 = vector.broadcast %144 : f32 to vector<3x128xf32>
    %1213 = arith.mulf %1212, %1205 : vector<3x128xf32>
    %1214 = arith.addf %1197, %1213 : vector<3x128xf32>
    %1215 = vector.broadcast %145 : f32 to vector<3x128xf32>
    %1216 = arith.mulf %1215, %1205 : vector<3x128xf32>
    %1217 = arith.addf %1200, %1216 : vector<3x128xf32>
    %c0_557 = arith.constant 0 : index
    %c0_558 = arith.constant 0 : index
    %c2_559 = arith.constant 2 : index
    %c0_560 = arith.constant 0 : index
    %c18_561 = arith.constant 18 : index
    %1218 = vector.load %arg2[%c0_557, %c0_558, %c2_559, %c0_560, %c18_561] : memref<1x1x4x4x128xf32, #tpu.memory_space<vmem>>, vector<1x1x1x3x110xf32>
    %1219 = vector.shape_cast %1218 : vector<1x1x1x3x110xf32> to vector<3x110xf32>
    %c0_562 = arith.constant 0 : index
    %c0_563 = arith.constant 0 : index
    %c2_564 = arith.constant 2 : index
    %c1_565 = arith.constant 1 : index
    %c0_566 = arith.constant 0 : index
    %1220 = vector.load %arg2[%c0_562, %c0_563, %c2_564, %c1_565, %c0_566] : memref<1x1x4x4x128xf32, #tpu.memory_space<vmem>>, vector<1x1x1x3x18xf32>
    %1221 = vector.shape_cast %1220 : vector<1x1x1x3x18xf32> to vector<3x18xf32>
    %1222 = tpu.concatenate %1219, %1221 in 1 : vector<3x110xf32>, vector<3x18xf32> -> vector<3x128xf32>
    %1223 = vector.broadcast %146 : f32 to vector<3x128xf32>
    %1224 = arith.mulf %1223, %1222 : vector<3x128xf32>
    %1225 = arith.addf %1208, %1224 : vector<3x128xf32>
    %1226 = vector.broadcast %147 : f32 to vector<3x128xf32>
    %1227 = arith.mulf %1226, %1222 : vector<3x128xf32>
    %1228 = arith.addf %1211, %1227 : vector<3x128xf32>
    %1229 = vector.broadcast %148 : f32 to vector<3x128xf32>
    %1230 = arith.mulf %1229, %1222 : vector<3x128xf32>
    %1231 = arith.addf %1214, %1230 : vector<3x128xf32>
    %1232 = vector.broadcast %149 : f32 to vector<3x128xf32>
    %1233 = arith.mulf %1232, %1222 : vector<3x128xf32>
    %1234 = arith.addf %1217, %1233 : vector<3x128xf32>
    %c0_567 = arith.constant 0 : index
    %c0_568 = arith.constant 0 : index
    %c3_569 = arith.constant 3 : index
    %c0_570 = arith.constant 0 : index
    %c18_571 = arith.constant 18 : index
    %1235 = vector.load %arg2[%c0_567, %c0_568, %c3_569, %c0_570, %c18_571] : memref<1x1x4x4x128xf32, #tpu.memory_space<vmem>>, vector<1x1x1x3x110xf32>
    %1236 = vector.shape_cast %1235 : vector<1x1x1x3x110xf32> to vector<3x110xf32>
    %c0_572 = arith.constant 0 : index
    %c0_573 = arith.constant 0 : index
    %c3_574 = arith.constant 3 : index
    %c1_575 = arith.constant 1 : index
    %c0_576 = arith.constant 0 : index
    %1237 = vector.load %arg2[%c0_572, %c0_573, %c3_574, %c1_575, %c0_576] : memref<1x1x4x4x128xf32, #tpu.memory_space<vmem>>, vector<1x1x1x3x18xf32>
    %1238 = vector.shape_cast %1237 : vector<1x1x1x3x18xf32> to vector<3x18xf32>
    %1239 = tpu.concatenate %1236, %1238 in 1 : vector<3x110xf32>, vector<3x18xf32> -> vector<3x128xf32>
    %1240 = vector.broadcast %150 : f32 to vector<3x128xf32>
    %1241 = arith.mulf %1240, %1239 : vector<3x128xf32>
    %1242 = arith.addf %1225, %1241 : vector<3x128xf32>
    %1243 = vector.broadcast %151 : f32 to vector<3x128xf32>
    %1244 = arith.mulf %1243, %1239 : vector<3x128xf32>
    %1245 = arith.addf %1228, %1244 : vector<3x128xf32>
    %1246 = vector.broadcast %152 : f32 to vector<3x128xf32>
    %1247 = arith.mulf %1246, %1239 : vector<3x128xf32>
    %1248 = arith.addf %1231, %1247 : vector<3x128xf32>
    %1249 = vector.broadcast %153 : f32 to vector<3x128xf32>
    %1250 = arith.mulf %1249, %1239 : vector<3x128xf32>
    %1251 = arith.addf %1234, %1250 : vector<3x128xf32>
    %c0_577 = arith.constant 0 : index
    %c0_578 = arith.constant 0 : index
    %c18_579 = arith.constant 18 : index
    %1252 = vector.load %arg12[%c0_577, %c0_578, %c18_579] : memref<2x4x128xf32, #tpu.memory_space<vmem>>, vector<1x3x110xf32>
    %1253 = vector.shape_cast %1252 : vector<1x3x110xf32> to vector<3x110xf32>
    %c0_580 = arith.constant 0 : index
    %c1_581 = arith.constant 1 : index
    %c0_582 = arith.constant 0 : index
    %1254 = vector.load %arg12[%c0_580, %c1_581, %c0_582] : memref<2x4x128xf32, #tpu.memory_space<vmem>>, vector<1x3x18xf32>
    %1255 = vector.shape_cast %1254 : vector<1x3x18xf32> to vector<3x18xf32>
    %1256 = tpu.concatenate %1253, %1255 in 1 : vector<3x110xf32>, vector<3x18xf32> -> vector<3x128xf32>
    %1257 = vector.broadcast %222 : f32 to vector<3x128xf32>
    %1258 = arith.mulf %1257, %1256 : vector<3x128xf32>
    %1259 = arith.addf %1174, %1258 : vector<3x128xf32>
    %1260 = vector.broadcast %223 : f32 to vector<3x128xf32>
    %1261 = arith.mulf %1260, %1256 : vector<3x128xf32>
    %1262 = arith.addf %1177, %1261 : vector<3x128xf32>
    %1263 = vector.broadcast %224 : f32 to vector<3x128xf32>
    %1264 = arith.mulf %1263, %1256 : vector<3x128xf32>
    %1265 = arith.addf %1180, %1264 : vector<3x128xf32>
    %1266 = vector.broadcast %225 : f32 to vector<3x128xf32>
    %1267 = arith.mulf %1266, %1256 : vector<3x128xf32>
    %1268 = arith.addf %1183, %1267 : vector<3x128xf32>
    %c1_583 = arith.constant 1 : index
    %c0_584 = arith.constant 0 : index
    %c18_585 = arith.constant 18 : index
    %1269 = vector.load %arg12[%c1_583, %c0_584, %c18_585] : memref<2x4x128xf32, #tpu.memory_space<vmem>>, vector<1x3x110xf32>
    %1270 = vector.shape_cast %1269 : vector<1x3x110xf32> to vector<3x110xf32>
    %c1_586 = arith.constant 1 : index
    %c1_587 = arith.constant 1 : index
    %c0_588 = arith.constant 0 : index
    %1271 = vector.load %arg12[%c1_586, %c1_587, %c0_588] : memref<2x4x128xf32, #tpu.memory_space<vmem>>, vector<1x3x18xf32>
    %1272 = vector.shape_cast %1271 : vector<1x3x18xf32> to vector<3x18xf32>
    %1273 = tpu.concatenate %1270, %1272 in 1 : vector<3x110xf32>, vector<3x18xf32> -> vector<3x128xf32>
    %1274 = vector.broadcast %226 : f32 to vector<3x128xf32>
    %1275 = arith.mulf %1274, %1273 : vector<3x128xf32>
    %1276 = arith.addf %1259, %1275 : vector<3x128xf32>
    %1277 = vector.broadcast %227 : f32 to vector<3x128xf32>
    %1278 = arith.mulf %1277, %1273 : vector<3x128xf32>
    %1279 = arith.addf %1262, %1278 : vector<3x128xf32>
    %1280 = vector.broadcast %228 : f32 to vector<3x128xf32>
    %1281 = arith.mulf %1280, %1273 : vector<3x128xf32>
    %1282 = arith.addf %1265, %1281 : vector<3x128xf32>
    %1283 = vector.broadcast %229 : f32 to vector<3x128xf32>
    %1284 = arith.mulf %1283, %1273 : vector<3x128xf32>
    %1285 = arith.addf %1268, %1284 : vector<3x128xf32>
    %c0_589 = arith.constant 0 : index
    %c0_590 = arith.constant 0 : index
    %c3_591 = arith.constant 3 : index
    %c0_592 = arith.constant 0 : index
    %c0_593 = arith.constant 0 : index
    %1286 = vector.load %arg3[%c0_589, %c0_590, %c3_591, %c0_592, %c0_593] : memref<1x1x4x3x128xbf16, #tpu.memory_space<vmem>>, vector<1x1x1x3x128xbf16>
    %1287 = vector.shape_cast %1286 : vector<1x1x1x3x128xbf16> to vector<3x128xbf16>
    %1288 = arith.extf %1287 : vector<3x128xbf16> to vector<3x128xf32>
    %1289 = vector.broadcast %154 : f32 to vector<3x128xf32>
    %1290 = arith.addf %1242, %1289 : vector<3x128xf32>
    %1291 = vector.broadcast %230 : f32 to vector<3x128xf32>
    %1292 = arith.addf %1276, %1291 : vector<3x128xf32>
    %1293 = arith.subf %1290, %1292 : vector<3x128xf32>
    %1294 = arith.mulf %1288, %1293 : vector<3x128xf32>
    %1295 = arith.addf %1292, %1294 : vector<3x128xf32>
    %c0_594 = arith.constant 0 : index
    %c0_595 = arith.constant 0 : index
    %c12_596 = arith.constant 12 : index
    %c0_597 = arith.constant 0 : index
    %c0_598 = arith.constant 0 : index
    %1296 = vector.load %arg11[%c0_594, %c0_595, %c12_596, %c0_597, %c0_598] : memref<1x1x16x3x128xf32, #tpu.memory_space<vmem>>, vector<1x1x1x3x128xf32>
    %1297 = vector.shape_cast %1296 : vector<1x1x1x3x128xf32> to vector<3x128xf32>
    %1298 = vector.shape_cast %1295 : vector<3x128xf32> to vector<1x1x1x3x128xf32>
    tpu.vector_store %arg11[%c0_594, %c0_595, %c12_596, %c0_597, %c0_598], %1298 {strides = array<i32>} : memref<1x1x16x3x128xf32, #tpu.memory_space<vmem>>, vector<1x1x1x3x128xf32>,
    %1299 = vector.broadcast %155 : f32 to vector<3x128xf32>
    %1300 = arith.addf %1245, %1299 : vector<3x128xf32>
    %1301 = vector.broadcast %231 : f32 to vector<3x128xf32>
    %1302 = arith.addf %1279, %1301 : vector<3x128xf32>
    %1303 = arith.subf %1300, %1302 : vector<3x128xf32>
    %1304 = arith.mulf %1288, %1303 : vector<3x128xf32>
    %1305 = arith.addf %1302, %1304 : vector<3x128xf32>
    %c0_599 = arith.constant 0 : index
    %c0_600 = arith.constant 0 : index
    %c13_601 = arith.constant 13 : index
    %c0_602 = arith.constant 0 : index
    %c0_603 = arith.constant 0 : index
    %1306 = vector.load %arg11[%c0_599, %c0_600, %c13_601, %c0_602, %c0_603] : memref<1x1x16x3x128xf32, #tpu.memory_space<vmem>>, vector<1x1x1x3x128xf32>
    %1307 = vector.shape_cast %1306 : vector<1x1x1x3x128xf32> to vector<3x128xf32>
    %1308 = vector.shape_cast %1305 : vector<3x128xf32> to vector<1x1x1x3x128xf32>
    tpu.vector_store %arg11[%c0_599, %c0_600, %c13_601, %c0_602, %c0_603], %1308 {strides = array<i32>} : memref<1x1x16x3x128xf32, #tpu.memory_space<vmem>>, vector<1x1x1x3x128xf32>,
    %1309 = vector.broadcast %156 : f32 to vector<3x128xf32>
    %1310 = arith.addf %1248, %1309 : vector<3x128xf32>
    %1311 = vector.broadcast %232 : f32 to vector<3x128xf32>
    %1312 = arith.addf %1282, %1311 : vector<3x128xf32>
    %1313 = arith.subf %1310, %1312 : vector<3x128xf32>
    %1314 = arith.mulf %1288, %1313 : vector<3x128xf32>
    %1315 = arith.addf %1312, %1314 : vector<3x128xf32>
    %c0_604 = arith.constant 0 : index
    %c0_605 = arith.constant 0 : index
    %c14_606 = arith.constant 14 : index
    %c0_607 = arith.constant 0 : index
    %c0_608 = arith.constant 0 : index
    %1316 = vector.load %arg11[%c0_604, %c0_605, %c14_606, %c0_607, %c0_608] : memref<1x1x16x3x128xf32, #tpu.memory_space<vmem>>, vector<1x1x1x3x128xf32>
    %1317 = vector.shape_cast %1316 : vector<1x1x1x3x128xf32> to vector<3x128xf32>
    %1318 = vector.shape_cast %1315 : vector<3x128xf32> to vector<1x1x1x3x128xf32>
    tpu.vector_store %arg11[%c0_604, %c0_605, %c14_606, %c0_607, %c0_608], %1318 {strides = array<i32>} : memref<1x1x16x3x128xf32, #tpu.memory_space<vmem>>, vector<1x1x1x3x128xf32>,
    %1319 = vector.broadcast %157 : f32 to vector<3x128xf32>
    %1320 = arith.addf %1251, %1319 : vector<3x128xf32>
    %1321 = vector.broadcast %233 : f32 to vector<3x128xf32>
    %1322 = arith.addf %1285, %1321 : vector<3x128xf32>
    %1323 = arith.subf %1320, %1322 : vector<3x128xf32>
    %1324 = arith.mulf %1288, %1323 : vector<3x128xf32>
    %1325 = arith.addf %1322, %1324 : vector<3x128xf32>
    %c0_609 = arith.constant 0 : index
    %c0_610 = arith.constant 0 : index
    %c15_611 = arith.constant 15 : index
    %c0_612 = arith.constant 0 : index
    %c0_613 = arith.constant 0 : index
    %1326 = vector.load %arg11[%c0_609, %c0_610, %c15_611, %c0_612, %c0_613] : memref<1x1x16x3x128xf32, #tpu.memory_space<vmem>>, vector<1x1x1x3x128xf32>
    %1327 = vector.shape_cast %1326 : vector<1x1x1x3x128xf32> to vector<3x128xf32>
    %1328 = vector.shape_cast %1325 : vector<3x128xf32> to vector<1x1x1x3x128xf32>
    tpu.vector_store %arg11[%c0_609, %c0_610, %c15_611, %c0_612, %c0_613], %1328 {strides = array<i32>} : memref<1x1x16x3x128xf32, #tpu.memory_space<vmem>>, vector<1x1x1x3x128xf32>,
    return
  }
  func.func @transform_0(%arg0: i32, %arg1: i32) -> (i32, i32, i32, i32, i32) {
    %c0_i32 = arith.constant 0 : i32
    %c0_i32_0 = arith.constant 0 : i32
    %c0_i32_1 = arith.constant 0 : i32
    %c0_i32_2 = arith.constant 0 : i32
    return %arg0, %arg1, %c0_i32, %c0_i32_0, %c0_i32_1 : i32, i32, i32, i32, i32
  }
  func.func @transform_1(%arg0: i32, %arg1: i32) -> (i32, i32, i32, i32, i32) {
    %c0_i32 = arith.constant 0 : i32
    %c0_i32_0 = arith.constant 0 : i32
    %c0_i32_1 = arith.constant 0 : i32
    %c0_i32_2 = arith.constant 0 : i32
    return %arg0, %arg1, %c0_i32, %c0_i32_0, %c0_i32_1 : i32, i32, i32, i32, i32
  }
  func.func @transform_2(%arg0: i32, %arg1: i32) -> (i32, i32, i32) {
    %c0_i32 = arith.constant 0 : i32
    %c0_i32_0 = arith.constant 0 : i32
    %c0_i32_1 = arith.constant 0 : i32
    return %arg1, %c0_i32, %c0_i32_0 : i32, i32, i32
  }
  func.func @transform_3(%arg0: i32, %arg1: i32) -> i32 {
    %c0_i32 = arith.constant 0 : i32
    %c0_i32_0 = arith.constant 0 : i32
    return %c0_i32 : i32
  }
  func.func @transform_4(%arg0: i32, %arg1: i32) -> i32 {
    %c0_i32 = arith.constant 0 : i32
    %c0_i32_0 = arith.constant 0 : i32
    return %c0_i32 : i32
  }
  func.func @transform_5(%arg0: i32, %arg1: i32) -> i32 {
    %c0_i32 = arith.constant 0 : i32
    %c0_i32_0 = arith.constant 0 : i32
    return %c0_i32 : i32
  }
  func.func @transform_6(%arg0: i32, %arg1: i32) -> i32 {
    %c0_i32 = arith.constant 0 : i32
    %c0_i32_0 = arith.constant 0 : i32
    return %c0_i32 : i32
  }
  func.func @transform_7(%arg0: i32, %arg1: i32) -> i32 {
    %c0_i32 = arith.constant 0 : i32
    %c0_i32_0 = arith.constant 0 : i32
    return %c0_i32 : i32
  }
  func.func @transform_8(%arg0: i32, %arg1: i32) -> i32 {
    %c0_i32 = arith.constant 0 : i32
    %c0_i32_0 = arith.constant 0 : i32
    return %c0_i32 : i32
  }
  func.func @transform_9(%arg0: i32, %arg1: i32) -> (i32, i32, i32, i32, i32) {
    %c0_i32 = arith.constant 0 : i32
    %c0_i32_0 = arith.constant 0 : i32
    %c0_i32_1 = arith.constant 0 : i32
    %c0_i32_2 = arith.constant 0 : i32
    return %arg0, %arg1, %c0_i32, %c0_i32_0, %c0_i32_1 : i32, i32, i32, i32, i32
  }
}

</mosaic_0001>

<bundles_post_ra>
// kernel: tpu_custom_call.1
= control target key start
LH: loop header
LB: loop body
LE: loop exit
PB: predicated region body
PF: predicated region fallthrough
CT: control target
= control target key end

     0   :  { %s4153_s0 = inlined_call_operand.hbm [shape: f32[2,1,4,4,128], index: 0, kind: input, shape index: {}]   ;;  %s4154_s1 = inlined_call_operand.vmem [shape: bf16[2,1,4,3,128], index: 1, kind: input, shape index: {}]   ;;  %s4155_s2 = inlined_call_operand.vmem [shape: bf16[1,4,128], index: 2, kind: input, shape index: {}]   ;;  %s4156_s3 = inlined_call_operand.vmem [shape: f32[8], index: 3, kind: input, shape index: {}]   ;;  %s4157_s4 = inlined_call_operand.vmem [shape: f32[2], index: 4, kind: input, shape index: {}]   ;;  %s4158_s5 = inlined_call_operand.vmem [shape: f32[144], index: 5, kind: input, shape index: {}]   ;;  %s4159_s6 = inlined_call_operand.vmem [shape: f32[4], index: 6, kind: input, shape index: {}]   ;;  %s4160_s7 = inlined_call_operand.vmem [shape: f32[72], index: 7, kind: input, shape index: {}]   ;;  %s4161_s8 = inlined_call_operand.vmem [shape: f32[4], index: 8, kind: input, shape index: {}]   ;;  %s4162_s9 = inlined_call_operand.vmem [shape: f32[2,1,16,3,128], index: 9, kind: output, shape index: {}]  }
   0x1   :  { %4184 = sst [smem:[#allocation58_spill]] %s4153_s0 }
   0x2   :  { %4185 = sst [smem:[#allocation59_spill]] %s4154_s1 }
   0x3   :  { %4186 = sst [smem:[#allocation60_spill]] %s4155_s2 }
   0x4   :  { %4187 = sst [smem:[#allocation61_spill]] %s4156_s3 }
   0x5   :  { %4188 = sst [smem:[#allocation62_spill]] %s4157_s4 }
   0x6   :  { %4189 = sst [smem:[#allocation63_spill]] %s4158_s5 }
   0x7   :  { %4190 = sst [smem:[#allocation64_spill]] %s4159_s6 }
   0x8   :  { %4191 = sst [smem:[#allocation65_spill]] %s4160_s7 }
   0x9   :  { %4192 = sst [smem:[#allocation66_spill]] %s4161_s8 }
   0xa   :  { %4193 = sst [smem:[#allocation67_spill]] %s4162_s9 }
   0xb   :  { %14 = vsyncpa [#allocation4], 0 }
   0xc   :  { %16 = vsyncpa [#allocation4 + $0x1], 0 }
   0xd   :  { %17 = vsyncpa [#allocation5], 0 }
   0xe   :  { %18 = vsyncpa [#allocation8], 0 }
   0xf   :  { %19 = vsyncpa [#allocation11], 0 }
  0x10   :  { %20 = vsyncpa [#allocation14], 0  ;;  %s2725_s30 = smov 0   ;;  %s2727_s10 = smov 0  }
  0x11   :  { %s2729_s11 = smov 0   ;;  %s2731_s12 = smov 0  }
  0x12   :  { %s2733_s13 = smov 0   ;;  %s2735_s14 = smov 0  }
  0x13 LB: > { %4194 = sst [smem:[#allocation20_spill]] %s2646_s10  ;;  %s2046_s18 = sadd.s32 4294967295, %s2662_s14   ;;  %s2662_s14 = sphi %s2735_s14, %s26_s14   ;;  %s2658_s13 = sphi %s2733_s13, %s4318_s13   ;;  %s2654_s12 = sphi %s2731_s12, %s4317_s12   ;;  %s2650_s11 = sphi %s2729_s11, %s4316_s11   ;;  %s2646_s10 = sphi %s2727_s10, %s4315_s10   ;;  %s2642_s30 = sphi %s2725_s30, %s4314_s30  }
  0x14   : > { %4195 = sst [smem:[#allocation21_spill]] %s2650_s11  ;;  %p2048_p0 = scmp.ge.s32.totalorder %s2662_s14, 1 }
  0x15   : > { %4196 = sst [smem:[#allocation22_spill]] %s2654_s12  ;;  %p2760_p1 = scmp.eq.s32.totalorder %s2046_s18, 0 }
  0x16   : > { %4197 = sst [smem:[#allocation23_spill]] %s2658_s13  ;;  %p279_p2 = scmp.lt.s32.totalorder %s2662_s14, 3 }
  0x17   : > { %4198 = sst [smem:[#allocation24_spill]] %s2662_s14  ;;  %s2664_s16 = smov [#allocation7]  }
  0x18   : > { %s4199_s4 = sld [smem:[#allocation62_spill]]  ;;  %p2765_p3 = pnand %p2048_p0, %p279_p2 }
  0x19   : > { %s4202_s6 = sld [smem:[#allocation64_spill]]  ;;  %s2665_s18 = smov [#allocation10]  }
  0x1a   : > { %p2373_p4 = pneg %p2765_p3  ;;  %s4203_s3 = sld [smem:[#allocation61_spill]] }
  0x1b   : > { %s4205_s5 = sld [smem:[#allocation63_spill]]  ;;  %s2666_s21 = smov [#allocation6]  }
  0x1c   : > { %p2779_p5 = pnand %p2373_p4, %p2760_p1  ;;  %s2667_s22 = smov [#allocation9]  }
  0x1d   : > { %s4206_s7 = sld [smem:[#allocation65_spill]]  ;;  %p54_p7 = scmp.ne.s32.totalorder %s2650_s11, %s2646_s10 }
  0x1e   : > { %s308_s17 = sshll.u32 %s4199_s4, 4  ;;  %s4207_s8 = sld [smem:[#allocation66_spill]]  ;;  %s309_s17 = int_to_ptr.vmem [resolvable:$true] %s308_s17 }
  0x1f   : > { %s328_s23 = sshll.u32 %s4202_s6, 4  ;;  %p55_p8 = scmp.eq.s32.totalorder %s2662_s14, 0  ;;  %s329_s23 = int_to_ptr.vmem [resolvable:$true] %s328_s23 }
  0x20   : > { %s298_s26 = sshll.u32 %s4203_s3, 4  ;;  %p60_p9 = scmp.ne.s32.totalorder %s2646_s10, %s2642_s30  ;;  %s299_s26 = int_to_ptr.vmem [resolvable:$true] %s298_s26 }
  0x21   : > { %s318_s15 = sshll.u32 %s4205_s5, 4  ;;  %p2813_p10 = por %p55_p8, %p54_p7  ;;  %s319_s15 = int_to_ptr.vmem [resolvable:$true] %s318_s15 }
  0x22   : > { %2379 = dma.vmem_to_smem (!%p2779_p5), %s309_s17, 16, %s2664_s16, [#allocation8]  }
  0x23   : > { %2385 = dma.vmem_to_smem (!%p2779_p5), %s329_s23, 16, %s2665_s18, [#allocation11]  }
  0x24   : > { %2376 = dma.vmem_to_smem (!%p2779_p5), %s299_s26, 16, %s2666_s21, [#allocation5]  }
  0x25   : > { %2382 = dma.vmem_to_smem (!%p2779_p5), %s319_s15, 32, %s2667_s22, [#allocation8]  }
  0x26   : > { %s338_s17 = sshll.u32 %s4206_s7, 4  ;;  %s348_s29 = sshll.u32 %s4207_s8, 4  ;;  %s339_s17 = int_to_ptr.vmem [resolvable:$true] %s338_s17  ;;  %s349_s29 = int_to_ptr.vmem [resolvable:$true] %s348_s29 }
  0x27   : > { %s2668_s26 = smov [#allocation12]   ;;  %s2669_s16 = smov [#allocation13]  }
  0x28   : > { %2388 = dma.vmem_to_smem (!%p2779_p5), %s339_s17, 16, %s2668_s26, [#allocation11]  }
  0x29   : > { %2391 = dma.vmem_to_smem (!%p2779_p5), %s349_s29, 16, %s2669_s16, [#allocation14]  }
  0x2a   : > { %s38_s15 = sadd.s32 1, %s2658_s13  ;;  %s47_s18 = sadd.s32 1, %s2650_s11 }
  0x2b   : > { %p40_p6 = scmp.ge.s32.totalorder %s38_s15, 2  ;;  %p2819_p11 = por %p2760_p1, %p60_p9 }
  0x2c   : > { %p2402_p12 = scmp.lt.s32.totalorder %s2662_s14, 2  ;;  %s359_s24 = sand.u32 1, %s2650_s11  }
  0x2d   : > { %s4320_s15 = smov (%p40_p6, %s38_s15), 0  ;;  %s2057_s25 = sshll.u32 %s359_s24, 4 }
  0x2e   : > { %4208 = sst [smem:[#allocation25_spill]] %s4320_s15  ;;  %s42_s22 = ssub.s32 %s2658_s13, %s4320_s15 }
  0x2f   : > { %p45_p13 = scmp.eq.s32.totalorder %s42_s22, 0  ;;  %s2344_s30 = sshll.u32 %s2658_s13, 4 }
  0x30   : > { %s4212_s0 = sld [smem:[#allocation58_spill]]  ;;  %s363_s26 = scalar_lea.vmem [#allocation3], %s2057_s25 }
  0x31   : > { %s2828_s17 = scalar_select %p45_p13, %s2650_s11, %s47_s18  }
  0x32   : > { %s373_s16 = sshll.u32 %s363_s26, 4  ;;  %p2393_p0 = pnand %p2402_p12, %p2813_p10  ;;  %s374_s16 = int_to_ptr.vmem [resolvable:$true] %s373_s16 }
  0x33   : > { %4211 = sst [smem:[#allocation26_spill]] %s2828_s17  ;;  %s360_s4 = scalar_lea.sflag [#allocation4], %s359_s24 }
  0x34   : > { %s2670_s5 = smov 64   ;;  %s2671_s6 = smov 4  }
  0x35   : > { %397 = sbr.rel (%p2765_p3) target bundleno = 408 (0x198), region = 56 }
  0x36   : > { %s370_s29 = scalar_lea.hbm %s4212_s0, %s2344_s30 }
  0x37   : > { %s371_s3 = sshll.u32 %s370_s29, 4  ;;  %s372_s3 = int_to_ptr.hbm [resolvable:$true] %s371_s3 }
  0x38   : > { %2395 = dma.hbm_to_vmem [thread:$0]  (!%p2393_p0), %s372_s3, 256, %s374_s16, %s360_s4, %s2670_s5, %s2670_s5, %s2671_s6  }
  0x3a   : > { %s399_s18 = sand.u32 1, %s2646_s10  }
  0x3b   : > { %s2061_s22 = sshll.u32 %s399_s18, 4  ;;  %s400_s28 = scalar_lea.sflag [#allocation4], %s399_s18 }
  0x3c   : > { %s2839_s30 = scalar_lea.vmem [#allocation3], %s2061_s22 }
  0x3d   : > { %4213 = sst [smem:[#allocation27_spill]] %s2839_s30 }
  0x3e   : > { %2621 = dma.done.wait (%p2819_p11), %s400_s28, 256  }
  0x3f   : > { %2623 = vsyncadd (%p2819_p11), %s400_s28, 4294967040 }
  0x40   : > { %2625 = dma.done.wait (%p2760_p1), [#allocation5], 16  }
  0x41   : > { %2627 = vsyncadd (%p2760_p1), [#allocation5], 4294967280 }
  0x42   : > { %2629 = dma.done.wait (%p2760_p1), [#allocation8], 48  }
  0x43   : > { %2631 = vsyncadd (%p2760_p1), [#allocation8], 4294967248 }
  0x44   : > { %2633 = dma.done.wait (%p2760_p1), [#allocation11], 32  }
  0x45   : > { %2635 = vsyncadd (%p2760_p1), [#allocation11], 4294967264 }
  0x46   : > { %2637 = dma.done.wait (%p2760_p1), [#allocation14], 16  }
  0x47   : > { %2639 = vsyncadd (%p2760_p1), [#allocation14], 4294967280 }
  0x48   : > { %439 = sfence }
  0x49   : > { %v2862_v0 = vld [vmem:[%s2839_s30 + $0x4] sm:$0x7]  ;;  %s4163_s3 = smov 127   ;;  %v2867_v1 = vld [vmem:[%s2839_s30] sm:$0x7]  ;;  %s2075_s4 = sld [smem:[#allocation6 + $0x4]] }
  0x4a   : > { %1001 = vrot.lane.b32.xlu1 %v2862_v0, %s4163_s3  ;;  %978 = vrot.lane.b32.xlu0 %v2867_v1, %s4163_s3  ;;  %v2872_v2 = vld [vmem:[%s2839_s30 + $0x8] sm:$0x7]  ;;  %v2312_v3 = vld [vmem:[%s2839_s30 + $0x5] sm:$0x7]  ;;  %s2076_s5 = sld [smem:[#allocation6 + $0x5]]  ;;  %s4171_s22 = smov 111  }
  0x4b   : > { %1023 = vrot.lane.b32.xlu2 %v2872_v2, %s4163_s3  ;;  %v976_v4 = vld [vmem:[%s2839_s30 + $0x1] sm:$0x7]  ;;  %v2313_v5 = vld [vmem:[%s2839_s30 + $0x9] sm:$0x7]  ;;  %v2314_v6 = vld [vmem:[%s2839_s30 + $0xd] sm:$0x7] }
  0x4c   : > { %s2077_s6 = sld [smem:[#allocation6 + $0x6]]  ;;  %v2884_v7 = vld [vmem:[%s2839_s30 + $0xc] sm:$0x7]  ;;  %v749_v9 = vld [vmem:[%s2839_s30] sm:$0xf]  ;;  %vm985_vm0 = vcmask 1039360  }
  0x4d   : > { %s2078_s19 = sld [smem:[#allocation6 + $0x7]]  ;;  %v2300_v12 = vld [vmem:[%s2839_s30 + $0x4] sm:$0xf]  ;;  %v2301_v16 = vld [vmem:[%s2839_s30 + $0x8] sm:$0xf]  ;;  %vm1227_vm1 = vcmask 908288  }
  0x4e   : > { %s2079_s20 = sld [smem:[#allocation7 + $0x1]]  ;;  %v2302_v21 = vld [vmem:[%s2839_s30 + $0xc] sm:$0xf]  ;;  %v1218_v45 = vld [vmem:[%s2839_s30 + $0x1] sm:$0x7]  ;;  %vm1712_vm2 = vcmask 900096  }
  0x4f   : > { %s4214_s2 = sld [smem:[#allocation60_spill]]  ;;  %v753_v10 = vstv %s2075_s4  ;;  %v2916_v46 = vld [vmem:[%s2839_s30] sm:$0x7]  ;;  %v2927_v48 = vld [vmem:[%s2839_s30 + $0x8] sm:$0x7] }
  0x50   : > { %s509_s24 = sld [smem:[#allocation6]]  ;;  %v761_v13 = vstv %s2076_s5  ;;  %v754_v14 = vmul.f32 %v753_v10, %v749_v9  ;;  %v2323_v49 = vld [vmem:[%s2839_s30 + $0x5] sm:$0x7]  ;;  %v2325_v51 = vld [vmem:[%s2839_s30 + $0xd] sm:$0x7] }
  0x51   : > { %s2072_s25 = sld [smem:[#allocation6 + $0x1]]  ;;  %v762_v19 = vmul.f32 %v2300_v12, %v761_v13  ;;  %v2944_v50 = vld [vmem:[%s2839_s30 + $0x4] sm:$0x7]  ;;  %v2968_v52 = vld [vmem:[%s2839_s30 + $0xc] sm:$0x7] }
  0x52   : > { %1005 = vrot.lane.b32.xlu1 %v2312_v3, %s4163_s3  ;;  %982 = vrot.lane.b32.xlu0 %v976_v4, %s4163_s3  ;;  %s2073_s23 = sld [smem:[#allocation6 + $0x2]]  ;;  %v769_v17 = vstv %s2077_s6  ;;  %4215 = vst [vmem:[#allocation28_spill] sm:$0xff] %v2968_v52  ;;  %v2324_v53 = vld [vmem:[%s2839_s30 + $0x9] sm:$0x7] }
  0x53   : > { %1027 = vrot.lane.b32.xlu2 %v2313_v5, %s4163_s3  ;;  %s2074_s29 = sld [smem:[#allocation6 + $0x3]]  ;;  %v777_v22 = vstv %s2078_s19  ;;  %v770_v24 = vmul.f32 %v2301_v16, %v769_v17  ;;  %v2997_v57 = vld [vmem:[%s2839_s30 + $0x1] sm:$0x7]  ;;  %v3024_v60 = vld [vmem:[%s2839_s30 + $0x8] sm:$0x7] }
  0x54   : > { %s517_s26 = sld [smem:[#allocation7]]  ;;  %v747_v15 = vstv %s2079_s20  ;;  %v778_v28 = vmul.f32 %v2302_v21, %v777_v22  ;;  %v3013_v58 = vld [vmem:[%s2839_s30] sm:$0x7]  ;;  %v3040_v61 = vld [vmem:[%s2839_s30 + $0x5] sm:$0x7] }
  0x55   : > { %v743_v8 = vld [vmem:[%s4214_s2] sm:$0x3]  ;;  %s2906_s16 = sld [smem:[#allocation9 + $0x34]]  ;;  %v3043_v62 = vld [vmem:[%s2839_s30 + $0x4] sm:$0x7] }
  0x56   : > { %v744_v11 = vunpack.c.l.bf16 %v743_v8  ;;  %v750_v20 = vstv %s509_s24  ;;  %s2908_s18 = sld [smem:[#allocation9 + $0x35]]  ;;  %v3054_v63 = vld [vmem:[%s2839_s30 + $0xd] sm:$0x7]  ;;  %v3091_v17 = vld [vmem:[%s2839_s30 + $0x9] sm:$0x7] }
  0x57   : > { %v758_v25 = vstv %s2072_s25  ;;  %v751_v26 = vmul.f32 %v750_v20, %v749_v9  ;;  %s2911_s28 = sld [smem:[#allocation9 + $0x36]] }
  0x58   : > { %v748_v18 = vmul.f32 %v747_v15, %v744_v11  ;;  %v766_v30 = vstv %s2073_s23  ;;  %v759_v32 = vmul.f32 %v2300_v12, %v758_v25  ;;  %s2913_s4 = sld [smem:[#allocation9 + $0x37]] }
  0x59   : > { %v774_v34 = vstv %s2074_s29  ;;  %v767_v36 = vmul.f32 %v2301_v16, %v766_v30  ;;  %s2918_s5 = sld [smem:[#allocation9 + $0x30]]  ;;  %v3088_v16 = vld [vmem:[%s2839_s30 + $0xc] sm:$0x7] }
  0x5a   : > { %1049 = vrot.lane.b32.xlu1 %v2314_v6, %s4163_s3  ;;  %1045 = vrot.lane.b32.xlu0 %v2884_v7, %s4163_s3  ;;  %v755_v23 = vadd.f32 %v754_v14, %v748_v18  ;;  %v745_v29 = vstv %s517_s26  ;;  %v775_v39 = vmul.f32 %v2302_v21, %v774_v34  ;;  %s2920_s6 = sld [smem:[#allocation9 + $0x31]] }
  0x5b   : > { %v746_v31 = vmul.f32 %v745_v29, %v744_v11  ;;  %s2922_s19 = sld [smem:[#allocation9 + $0x32]]  ;;  %v912_v4 = vstv %s2906_s16 }
  0x5c   : > { %v763_v27 = vadd.f32 %v762_v19, %v755_v23  ;;  %s2930_s20 = sld [smem:[#allocation9 + $0x33]]  ;;  %v915_v5 = vstv %s2908_s18  ;;  %v3080_v12 = vmul.f32 %v2862_v0, %v912_v4 }
  0x5d   : > { %v752_v35 = vadd.f32 %v751_v26, %v746_v31  ;;  %s2932_s21 = sld [smem:[#allocation9 + $0x38]]  ;;  %v918_v6 = vstv %s2911_s28  ;;  %v3083_v13 = vmul.f32 %v2862_v0, %v915_v5 }
  0x5e   : > { %v771_v33 = vadd.f32 %v770_v24, %v763_v27  ;;  %s2934_s27 = sld [smem:[#allocation9 + $0x39]]  ;;  %v921_v8 = vstv %s2913_s4  ;;  %v919_v22 = vmul.f32 %v2862_v0, %v918_v6 }
  0x5f   : > { %v760_v38 = vadd.f32 %v759_v32, %v752_v35  ;;  %s2938_s24 = sld [smem:[#allocation9 + $0x3a]]  ;;  %v899_v9 = vstv %s2918_s5  ;;  %v922_v23 = vmul.f32 %v2862_v0, %v921_v8 }
  0x60   : > { %v779_v37 = vadd.f32 %v778_v28, %v771_v33  ;;  %s2940_s25 = sld [smem:[#allocation9 + $0x3b]]  ;;  %v902_v10 = vstv %s2920_s6  ;;  %v900_v24 = vmul.f32 %v899_v9, %v2867_v1 }
  0x61   : > { %v768_v40 = vadd.f32 %v767_v36, %v760_v38  ;;  %s2946_s23 = sld [smem:[#allocation9 + $0x10]]  ;;  %v905_v11 = vstv %s2922_s19  ;;  %v903_v25 = vmul.f32 %v902_v10, %v2867_v1 }
  0x62   : > { %782 = vst [vmem:[#allocation2 + $0x4] sm:$0xf] %v779_v37  ;;  %s2948_s29 = sld [smem:[#allocation9 + $0x11]]  ;;  %v908_v14 = vstv %s2930_s20  ;;  %v906_v26 = vmul.f32 %v905_v11, %v2867_v1  ;;  %v914_v10 = vadd.f32 %v3080_v12, %v900_v24 }
  0x63   : > { %v776_v41 = vadd.f32 %v775_v39, %v768_v40  ;;  %s2950_s26 = sld [smem:[#allocation9 + $0x12]]  ;;  %v925_v15 = vstv %s2932_s21  ;;  %v909_v27 = vmul.f32 %v908_v14, %v2867_v1  ;;  %v917_v11 = vadd.f32 %v3083_v13, %v903_v25 }
  0x64   : > { %s2958_s0 = sld [smem:[#allocation9 + $0x18]]  ;;  %v928_v18 = vstv %s2934_s27  ;;  %v926_v28 = vmul.f32 %v2872_v2, %v925_v15  ;;  %v920_v15 = vadd.f32 %v919_v22, %v906_v26 }
  0x65   : > { %780 = vst [vmem:[#allocation2] sm:$0xf] %v776_v41  ;;  %s2960_s2 = sld [smem:[#allocation9 + $0x19]]  ;;  %v931_v19 = vstv %s2938_s24  ;;  %v929_v30 = vmul.f32 %v2872_v2, %v928_v18  ;;  %v923_v18 = vadd.f32 %v922_v23, %v909_v27 }
  0x66   : > { %s2963_s7 = sld [smem:[#allocation9 + $0x1a]]  ;;  %v934_v20 = vstv %s2940_s25  ;;  %v932_v31 = vmul.f32 %v2872_v2, %v931_v19  ;;  %v927_v19 = vadd.f32 %v926_v28, %v914_v10 }
  0x67   : > { %s2965_s8 = sld [smem:[#allocation9 + $0x1b]]  ;;  %v1141_v21 = vstv %s2946_s23  ;;  %v935_v1 = vmul.f32 %v2872_v2, %v934_v20  ;;  %v930_v20 = vadd.f32 %v929_v30, %v917_v11 }
  0x68   : > { %s2971_s15 = sld [smem:[#allocation9 + $0x14]]  ;;  %v1144_v29 = vstv %s2948_s29  ;;  %v3123_v32 = vmul.f32 %v1141_v21, %v2916_v46  ;;  %v933_v13 = vadd.f32 %v932_v31, %v920_v15 }
  0x69   : > { %v2896_v42 = vld [vmem:[#allocation2 + $0x4] sm:$0x7]  ;;  %s2973_s13 = sld [smem:[#allocation9 + $0x15]]  ;;  %v1147_v33 = vstv %s2950_s26  ;;  %v3134_v37 = vmul.f32 %v1144_v29, %v2916_v46  ;;  %v936_v24 = vadd.f32 %v935_v1, %v923_v18  ;;  %v2303_v18 = vld [vmem:[%s2839_s30 + $0x4] sm:$0x7] }
  0x6a   : > { %1089 = vrot.lane.b32.xlu1 %v2896_v42, %s4163_s3  ;;  %v1087_v47 = vld [vmem:[#allocation2 + $0x5] sm:$0x7]  ;;  %s2977_s17 = sld [smem:[#allocation9 + $0x16]]  ;;  %v1167_v35 = vstv %s2958_s0 }
  0x6b   : > { %v1205_v54 = vld [vmem:[#allocation2 + $0x4] sm:$0x7]  ;;  %s2980_s11 = sld [smem:[#allocation9 + $0x17]]  ;;  %v1170_v36 = vstv %s2960_s2 }
  0x6c   : > { %v1065_v43 = vld [vmem:[#allocation2 + $0x1] sm:$0x7]  ;;  %s2982_s10 = sld [smem:[#allocation9 + $0x58]]  ;;  %v1329_v59 = vld [vmem:[#allocation2 + $0x5] sm:$0x7]  ;;  %v1173_v38 = vstv %s2963_s7 }
  0x6d   : > { %v2900_v44 = vld [vmem:[#allocation2] sm:$0x7]  ;;  %1071 = vrot.lane.b32.xlu0 %v1065_v43, %s4163_s3  ;;  %s2985_s14 = sld [smem:[#allocation9 + $0x59]]  ;;  %v3113_v0 = vld [vmem:[#allocation2 + $0x4] sm:$0x7]  ;;  %v1176_v39 = vstv %s2965_s8 }
  0x6e   : > { %1067 = vrot.lane.b32.xlu2 %v2900_v44, %s4163_s3  ;;  %s2987_s9 = sld [smem:[#allocation9 + $0x5a]]  ;;  %v1307_v55 = vld [vmem:[#allocation2 + $0x1] sm:$0x7]  ;;  %v1154_v40 = vstv %s2971_s15  ;;  %v3224_v28 = vld [vmem:[#allocation2 + $0x5] sm:$0x7] }
  0x6f   : > { %v1192_v56 = vld [vmem:[#allocation2] sm:$0x7]  ;;  %s2989_s1 = sld [smem:[#allocation9 + $0x5b]]  ;;  %v1157_v41 = vstv %s2973_s13  ;;  %v3178_v5 = vmul.f32 %v2944_v50, %v1154_v40 }
  0x70   : > { %4216 = sst [smem:[#allocation29_spill]] %s2977_s17  ;;  %v3181_v6 = vmul.f32 %v2944_v50, %v1157_v41 }
  0x71   : > { %4217 = sst [smem:[#allocation30_spill]] %s2980_s11  ;;  %s4227_s11 = smov 127  }
  0x72   : > { %1224 = vrot.lane.b32.xlu1 %v1218_v45, %s4171_s22  ;;  %4218 = sst [smem:[#allocation31_spill]] %s2982_s10 }
  0x73   : > { %4219 = sst [smem:[#allocation32_spill]] %s2985_s14 }
  0x74   : > { %4220 = sst [smem:[#allocation33_spill]] %s2987_s9 }
  0x75   : > { %1220 = vrot.lane.b32.xlu0 %v2916_v46, %s4171_s22  ;;  %4221 = sst [smem:[#allocation34_spill]] %s2989_s1 }
  0x76   : > { %1093 = vrot.lane.b32.xlu2 %v1087_v47, %s4163_s3  ;;  %s2956_s3 = sld [smem:[#allocation9 + $0x13]]  ;;  %v3149_v47 = vmul.f32 %v1147_v33, %v2916_v46 }
  0x77   : > { %s2991_s12 = sld [smem:[#allocation9 + $0x54]] }
  0x78   : > { %s2993_s17 = sld [smem:[#allocation9 + $0x55]] }
  0x79   : > { %s3000_s10 = sld [smem:[#allocation9 + $0x56]] }
  0x7a   : > { %1265 = vrot.lane.b32.xlu1 %v2927_v48, %s4171_s22  ;;  %s3002_s14 = sld [smem:[#allocation9 + $0x57]] }
  0x7b   : > { %s3004_s9 = sld [smem:[#allocation9 + $0x3c]] }
  0x7c   : > { %s3008_s1 = sld [smem:[#allocation9 + $0x3d]]  ;;  %v1150_v34 = vstv %s2956_s3 }
  0x7d   : > { %1247 = vrot.lane.b32.xlu0 %v2323_v49, %s4171_s22  ;;  %4222 = sst [smem:[#allocation35_spill]] %s2991_s12  ;;  %v3152_v49 = vmul.f32 %v1150_v34, %v2916_v46  ;;  %v3170_v46 = vmul.f32 %v2927_v48, %v1176_v39 }
  0x7e   : > { %1243 = vrot.lane.b32.xlu2 %v2944_v50, %s4171_s22  ;;  %4223 = sst [smem:[#allocation36_spill]] %s2993_s17 }
  0x7f   : > { %4224 = sst [smem:[#allocation37_spill]] %s3000_s10  ;;  %4252 = vst [vmem:[#allocation55_spill] sm:$0xff] %v3170_v46 }
  0x80   : > { %4225 = sst [smem:[#allocation38_spill]] %s3002_s14  ;;  %s4232_s14 = smov 111  }
  0x81   : > { %4226 = sst [smem:[#allocation39_spill]] %s3004_s9 }
  0x82   : > { %1291 = vrot.lane.b32.xlu1 %v2325_v51, %s4171_s22  ;;  %4228 = sst [smem:[#allocation40_spill]] %s3008_s1  ;;  %v3155_v51 = vmul.f32 %v2927_v48, %v1167_v35 }
  0x83   : > { %s3010_s17 = sld [smem:[#allocation9 + $0x3e]] }
  0x84   : > { %s3015_s12 = sld [smem:[#allocation9 + $0x3f]]  ;;  %4246 = vst [vmem:[#allocation52_spill] sm:$0xff] %v3155_v51 }
  0x85   : > { %1287 = vrot.lane.b32.xlu0 %v2968_v52, %s4171_s22  ;;  %s3019_s10 = sld [smem:[#allocation9 + $0x51]] }
  0x86   : > { %1269 = vrot.lane.b32.xlu2 %v2324_v53, %s4171_s22  ;;  %s3027_s1 = sld [smem:[#allocation9 + $0x52]]  ;;  %v3158_v53 = vmul.f32 %v2927_v48, %v1170_v36 }
  0x87   : > { %s3031_s9 = sld [smem:[#allocation9 + $0x40]] }
  0x88   : > { %s3093_s16 = sld [smem:[#allocation9 + $0x4b]]  ;;  %4247 = vst [vmem:[#allocation53_spill] sm:$0xff] %v3158_v53 }
  0x89   : > { %4229 = sst [smem:[#allocation41_spill]] %s3010_s17 }
  0x8a   : > { %1331 = vrot.lane.b32.xlu1 %v1205_v54, %s4171_s22  ;;  %s3029_s17 = sld [smem:[#allocation9 + $0x53]]  ;;  %v3160_v54 = vld [vmem:[#allocation2 + $0x1] sm:$0x7]  ;;  %v947_v27 = vstv %s3015_s12 }
  0x8b   : > { %4231 = sst [smem:[#allocation43_spill]] %s3019_s10  ;;  %v948_v34 = vmul.f32 %v2884_v7, %v947_v27 }
  0x8c   : > { %4233 = sst [smem:[#allocation44_spill]] %s3027_s1 }
  0x8d   : > { %1313 = vrot.lane.b32.xlu0 %v1307_v55, %s4171_s22  ;;  %4235 = sst [smem:[#allocation46_spill]] %s3031_s9  ;;  %v3162_v55 = vld [vmem:[#allocation2] sm:$0x7] }
  0x8e   : > { %1309 = vrot.lane.b32.xlu2 %v1192_v56, %s4171_s22  ;;  %s3017_s22 = sld [smem:[#allocation9 + $0x50]]  ;;  %v3167_v56 = vmul.f32 %v2927_v48, %v1173_v38 }
  0x8f   : > { %s3035_s10 = sld [smem:[#allocation9 + $0x41]] }
  0x90   : > { %4234 = sst [smem:[#allocation45_spill]] %s3029_s17  ;;  %4251 = vst [vmem:[#allocation54_spill] sm:$0xff] %v3167_v56 }
  0x91   : > { %s3045_s1 = sld [smem:[#allocation9 + $0x43]] }
  0x92   : > { %1466 = vrot.lane.b32.xlu1 %v2997_v57, %s4227_s11  ;;  %s3047_s17 = sld [smem:[#allocation9 + $0x44]] }
  0x93   : > { %s3049_s9 = sld [smem:[#allocation9 + $0x45]] }
  0x94   : > { %4230 = sst [smem:[#allocation42_spill]] %s3017_s22 }
  0x95   : > { %1462 = vrot.lane.b32.xlu0 %v3013_v58, %s4227_s11  ;;  %s3037_s22 = sld [smem:[#allocation9 + $0x42]]  ;;  %v787_v11 = vstv %s3035_s10 }
  0x96   : > { %1335 = vrot.lane.b32.xlu2 %v1329_v59, %s4232_s14  ;;  %s3099_s18 = sld [smem:[#allocation9 + $0x4c]] }
  0x97   : > { %4237 = sst [smem:[#allocation48_spill]] %s3045_s1 }
  0x98   : > { %s3062_s1 = sld [smem:[#allocation9 + $0x47]] }
  0x99   : > { %4238 = sst [smem:[#allocation49_spill]] %s3049_s9 }
  0x9a   : > { %1506 = vrot.lane.b32.xlu1 %v3024_v60, %s4227_s11  ;;  %s3066_s9 = sld [smem:[#allocation9 + $0x48]] }
  0x9b   : > { %4236 = sst [smem:[#allocation47_spill]] %s3037_s22 }
  0x9c   : > { %s3058_s22 = sld [smem:[#allocation9 + $0x46]] }
  0x9d   : > { %1488 = vrot.lane.b32.xlu0 %v3040_v61, %s4227_s11  ;;  %s3105_s28 = sld [smem:[#allocation9 + $0x4d]] }
  0x9e   : > { %1484 = vrot.lane.b32.xlu2 %v3043_v62, %s4227_s11  ;;  %4240 = sst [smem:[#allocation51_spill]] %s3062_s1 }
  0x9f   : > { %s3077_s1 = sld [smem:[#allocation9 + $0x4a]] }
  0xa0   : > { %s3117_s4 = sld [smem:[#allocation9 + $0x4e]] }
  0xa1   : > { %s4241_s5 = sld [smem:[#allocation29_spill]] }
  0xa2   : > { %4239 = sst [smem:[#allocation50_spill]] %s3058_s22  ;;  %1532 = vrot.lane.b32.xlu1 %v3054_v63, %s4227_s11 }
  0xa3   : > { %s3071_s22 = sld [smem:[#allocation9 + $0x49]] }
  0xa4   : > { %s3125_s6 = sld [smem:[#allocation9 + $0x4f]] }
  0xa5   : > { %v3060_v3 = vpop.permute.xlu2 %1023  ;;  %1528 = vrot.lane.b32.xlu0 %v3088_v16, %s4227_s11  ;;  %s4242_s19 = sld [smem:[#allocation30_spill]]  ;;  %v816_v52 = vstv %s3077_s1 }
  0xa6   : > { %1510 = vrot.lane.b32.xlu2 %v3091_v17, %s4227_s11  ;;  %s3131_s20 = sld [smem:[#allocation9 + $0x5c]] }
  0xa7   : > { %s3140_s21 = sld [smem:[#allocation9 + $0x5d]]  ;;  %v1160_v43 = vstv %s4241_s5 }
  0xa8   : > { %s4244_s27 = sld [smem:[#allocation31_spill]]  ;;  %v3184_v8 = vmul.f32 %v2944_v50, %v1160_v43 }
  0xa9   : > { %s3146_s0 = sld [smem:[#allocation9 + $0x5e]] }
  0xaa   : > { %1572 = vrot.lane.b32.xlu1 %v3113_v0, %s4227_s11  ;;  %s4248_s2 = sld [smem:[#allocation32_spill]] }
  0xab   : > { %v1163_v45 = vstv %s4242_s19  ;;  %s4249_s7 = sld [smem:[#allocation33_spill]] }
  0xac   : > { %s3164_s8 = sld [smem:[#allocation9 + $0x5f]]  ;;  %v3187_v9 = vmul.f32 %v2944_v50, %v1163_v45 }
  0xad   : > { %v1028_v2 = vpop.permute.xlu2 %1027  ;;  %4243 = sst [smem:[#allocation29_spill]] %s3140_s21  ;;  %1554 = vrot.lane.b32.xlu0 %v3160_v54, %s4227_s11 }
  0xae   : > { %v1030_v59 = vsel %vm985_vm0, %v3060_v3, %v1028_v2  ;;  %s4253_s13 = sld [smem:[#allocation34_spill]]  ;;  %v1031_v4 = vstv %s4244_s27  ;;  %1550 = vrot.lane.b32.xlu2 %v3162_v55, %s4227_s11 }
  0xaf   : > { %4245 = sst [smem:[#allocation30_spill]] %s3146_s0  ;;  %v3201_v50 = vmul.f32 %v1031_v4, %v1030_v59  ;;  %v3254_v4 = vadd.f32 %v948_v34, %v936_v24 }
  0xb0   : > { %s3175_s15 = sld [smem:[#allocation10]]  ;;  %v1034_v48 = vstv %s4248_s2 }
  0xb1   : > { %s4254_s3 = sld [smem:[#allocation39_spill]]  ;;  %v1037_v3 = vstv %s4249_s7  ;;  %v3212_v12 = vmul.f32 %v1034_v48, %v1030_v59  ;;  %v783_v48 = vld [vmem:[%s2839_s30] sm:$0x7] }
  0xb2   : > { %4250 = sst [smem:[#allocation31_spill]] %s3164_s8  ;;  %1595 = vrot.lane.b32.xlu1 %v2997_v57, %s4232_s14  ;;  %v3217_v23 = vmul.f32 %v1037_v3, %v1030_v59 }
  0xb3   : > { %s3189_s24 = sld [smem:[#allocation10 + $0x1]] }
  0xb4   : > { %s4255_s25 = sld [smem:[#allocation40_spill]]  ;;  %v1040_v14 = vstv %s4253_s13 }
  0xb5   : > { %s3199_s23 = sld [smem:[#allocation10 + $0x2]]  ;;  %v3226_v30 = vmul.f32 %v1040_v14, %v1030_v59  ;;  %1592 = vrot.lane.b32.xlu0 %v3013_v58, %s4232_s14 }
  0xb6   : > { %s4256_s29 = sld [smem:[#allocation41_spill]]  ;;  %1576 = vrot.lane.b32.xlu2 %v3224_v28, %s4227_s11 }
  0xb7   : > { %s3204_s26 = sld [smem:[#allocation10 + $0x3]]  ;;  %v938_v21 = vstv %s4254_s3 }
  0xb8   : > { %s4257_s5 = sld [smem:[#allocation35_spill]]  ;;  %v939_v22 = vmul.f32 %v2884_v7, %v938_v21 }
  0xb9   : > { %s3208_s19 = sld [smem:[#allocation12 + $0x18]] }
  0xba   : > { %v941_v29 = vstv %s4255_s25  ;;  %s4259_s27 = sld [smem:[#allocation36_spill]]  ;;  %v3239_v40 = vadd.f32 %v939_v22, %v927_v19  ;;  %v788_v19 = vmul.f32 %v787_v11, %v783_v48  ;;  %1630 = vrot.lane.b32.xlu1 %v3024_v60, %s4232_s14 }
  0xbb   : > { %s4260_s2 = sld [smem:[#allocation37_spill]]  ;;  %v942_v25 = vmul.f32 %v2884_v7, %v941_v29  ;;  %v797_v29 = vstv %s3047_s17 }
  0xbc   : > { %s3215_s7 = sld [smem:[#allocation12 + $0x19]]  ;;  %v944_v26 = vstv %s4256_s29  ;;  %v1002_v31 = vpop.permute.xlu1 %1001  ;;  %v979_v35 = vpop.permute.xlu0 %978  ;;  %v798_v24 = vmul.f32 %v2303_v18, %v797_v29 }
  0xbd   : > { %s4262_s13 = sld [smem:[#allocation38_spill]]  ;;  %v945_v33 = vmul.f32 %v2884_v7, %v944_v26  ;;  %v3250_v45 = vadd.f32 %v942_v25, %v930_v20  ;;  %1614 = vrot.lane.b32.xlu0 %v3040_v61, %s4232_s14 }
  0xbe   : > { %s4263_s3 = sld [smem:[#allocation42_spill]]  ;;  %v1009_v1 = vstv %s4257_s5  ;;  %1611 = vrot.lane.b32.xlu2 %v3043_v62, %s4232_s14 }
  0xbf   : > { %4258 = sst [smem:[#allocation32_spill]] %s3208_s19  ;;  %v3252_v59 = vadd.f32 %v945_v33, %v933_v13  ;;  %v2304_v13 = vld [vmem:[%s2839_s30 + $0x8] sm:$0x7] }
  0xc0   : > { %s4264_s25 = sld [smem:[#allocation43_spill]]  ;;  %v1012_v36 = vstv %s4259_s27 }
  0xc1   : > { %s3222_s19 = sld [smem:[#allocation12 + $0x1a]]  ;;  %v1015_v38 = vstv %s4260_s2 }
  0xc2   : > { %4261 = sst [smem:[#allocation33_spill]] %s3215_s7  ;;  %1652 = vrot.lane.b32.xlu1 %v3054_v63, %s4232_s14 }
  0xc3   : > { %s4266_s8 = sld [smem:[#allocation44_spill]]  ;;  %v1018_v39 = vstv %s4262_s13 }
  0xc4   : > { %s4267_s0 = sld [smem:[#allocation45_spill]]  ;;  %v987_v2 = vstv %s4263_s3  ;;  %v983_v46 = vpop.permute.xlu0 %982 }
  0xc5   : > { %s3231_s7 = sld [smem:[#allocation12 + $0x1b]]  ;;  %1649 = vrot.lane.b32.xlu0 %v3088_v16, %s4232_s14 }
  0xc6   : > { %s4268_s12 = sld [smem:[#allocation46_spill]]  ;;  %v990_v41 = vstv %s4264_s25  ;;  %1633 = vrot.lane.b32.xlu2 %v3091_v17, %s4232_s14 }
  0xc7   : > { %4265 = sst [smem:[#allocation34_spill]] %s3222_s19 }
  0xc8   : > { %s3237_s29 = sld [smem:[#allocation12 + $0x1c]] }
  0xc9   : > { %s4269_s19 = sld [smem:[#allocation47_spill]]  ;;  %v993_v43 = vstv %s4266_s8 }
  0xca   : > { %s4270_s5 = sld [smem:[#allocation48_spill]]  ;;  %v996_v7 = vstv %s4267_s0 }
  0xcb   : > { %s3244_s21 = sld [smem:[#allocation12 + $0x1d]] }
  0xcc   : > { %v784_v3 = vstv %s4268_s12  ;;  %s4271_s8 = sld [smem:[#allocation49_spill]] }
  0xcd   : > { %s3258_s0 = sld [smem:[#allocation12 + $0x1e]]  ;;  %v785_v10 = vmul.f32 %v784_v3, %v783_v48  ;;  %v810_v3 = vstv %s3066_s9  ;;  %1671 = vrot.lane.b32.xlu0 %v3160_v54, %s4232_s14 }
  0xce   : > { %s4272_s27 = sld [smem:[#allocation50_spill]]  ;;  %1668 = vrot.lane.b32.xlu2 %v3162_v55, %s4232_s14 }
  0xcf   : > { %s4273_s2 = sld [smem:[#allocation51_spill]]  ;;  %v790_v14 = vstv %s4269_s19  ;;  %v799_v11 = vadd.f32 %v798_v24, %v785_v10 }
  0xd0   : > { %v793_v15 = vstv %s4270_s5  ;;  %s3264_s11 = sld [smem:[#allocation12 + $0x1f]]  ;;  %v791_v20 = vmul.f32 %v790_v14, %v783_v48  ;;  %v811_v14 = vmul.f32 %v2304_v13, %v810_v3 }
  0xd1   : > { %v794_v21 = vmul.f32 %v793_v15, %v783_v48  ;;  %s3268_s13 = sld [smem:[#allocation12 + $0x28]]  ;;  %v1006_v48 = vpop.permute.xlu1 %1005  ;;  %v813_v15 = vstv %s3071_s22 }
  0xd2   : > { %v800_v22 = vstv %s4271_s8  ;;  %s3275_s10 = sld [smem:[#allocation12 + $0x29]]  ;;  %v1008_v29 = vsel %vm985_vm0, %v1002_v31, %v1006_v48  ;;  %v986_v31 = vsel %vm985_vm0, %v979_v35, %v983_v46  ;;  %v812_v10 = vadd.f32 %v811_v14, %v799_v11 }
  0xd3   : > { %v801_v27 = vmul.f32 %v2303_v18, %v800_v22  ;;  %s3278_s19 = sld [smem:[#allocation12 + $0x2a]]  ;;  %v1013_v22 = vmul.f32 %v1012_v36, %v1008_v29  ;;  %v991_v36 = vmul.f32 %v990_v41, %v986_v31  ;;  %v832_v11 = vstv %s3125_s6 }
  0xd4   : > { %v803_v25 = vstv %s4272_s27  ;;  %s3282_s17 = sld [smem:[#allocation12 + $0x2b]] }
  0xd5   : > { %v806_v26 = vstv %s4273_s2  ;;  %v804_v33 = vmul.f32 %v2303_v18, %v803_v25  ;;  %v802_v56 = vadd.f32 %v801_v27, %v788_v19  ;;  %s3285_s3 = sld [smem:[#allocation12 + $0x20]]  ;;  %v1016_v25 = vmul.f32 %v1015_v38, %v1008_v29  ;;  %1687 = vrot.lane.b32.xlu0 %v3113_v0, %s4232_s14 }
  0xd6   : > { %v807_v34 = vmul.f32 %v2303_v18, %v806_v26  ;;  %v1010_v18 = vmul.f32 %v1009_v1, %v1008_v29  ;;  %v1019_v26 = vmul.f32 %v1018_v39, %v1008_v29  ;;  %s3287_s9 = sld [smem:[#allocation12 + $0x21]]  ;;  %v814_v19 = vmul.f32 %v2304_v13, %v813_v15 }
  0xd7   : > { %v805_v53 = vadd.f32 %v804_v33, %v791_v20  ;;  %v819_v20 = vstv %s3093_s16  ;;  %s3295_s1 = sld [smem:[#allocation12 + $0x22]]  ;;  %v988_v1 = vmul.f32 %v987_v2, %v986_v31  ;;  %v994_v38 = vmul.f32 %v993_v43, %v986_v31 }
  0xd8   : > { %v808_v51 = vadd.f32 %v807_v34, %v794_v21  ;;  %v997_v39 = vmul.f32 %v996_v7, %v986_v31  ;;  %v2305_v21 = vld [vmem:[%s2839_s30 + $0xc] sm:$0x7]  ;;  %s3298_s22 = sld [smem:[#allocation12 + $0x23]]  ;;  %v815_v24 = vadd.f32 %v814_v19, %v802_v56  ;;  %v817_v27 = vmul.f32 %v2304_v13, %v816_v52  ;;  %s2674_s30 = smov 110  }
  0xd9   : > { %v820_v33 = vmul.f32 %v2304_v13, %v819_v20  ;;  %v823_v34 = vstv %s3099_s18  ;;  %s3301_s25 = sld [smem:[#allocation12 + $0x24]]  ;;  %v989_v46 = vadd.f32 %v988_v1, %v3239_v40  ;;  %v992_v35 = vadd.f32 %v991_v36, %v3250_v45  ;;  %1706 = vrot.lane.b32.xlu1 %v3013_v58, %s2674_s30  ;;  %1709 = vrot.lane.b32.xlu2 %v2997_v57, %s2674_s30 }
  0xda   : > { %v995_v2 = vadd.f32 %v994_v38, %v3252_v59  ;;  %v998_v41 = vadd.f32 %v997_v39, %v3254_v4  ;;  %s3309_s16 = sld [smem:[#allocation12 + $0x25]]  ;;  %v818_v52 = vadd.f32 %v817_v27, %v805_v53  ;;  %v824_v43 = vmul.f32 %v2305_v21, %v823_v34  ;;  %v1046_v53 = vpop.permute.xlu0 %1045 }
  0xdb   : > { %v821_v56 = vadd.f32 %v820_v33, %v808_v51  ;;  %v826_v7 = vstv %s3105_s28  ;;  %s3312_s18 = sld [smem:[#allocation12 + $0x26]]  ;;  %v1011_v13 = vadd.f32 %v1010_v18, %v989_v46  ;;  %v1014_v40 = vadd.f32 %v1013_v22, %v992_v35  ;;  %v1050_v51 = vpop.permute.xlu1 %1049 }
  0xdc   : > { %v1017_v3 = vadd.f32 %v1016_v25, %v995_v2  ;;  %v1020_v45 = vadd.f32 %v1019_v26, %v998_v41  ;;  %s3314_s12 = sld [smem:[#allocation12 + $0x27]]  ;;  %v825_v59 = vadd.f32 %v824_v43, %v812_v10  ;;  %v827_v48 = vmul.f32 %v2305_v21, %v826_v7 }
  0xdd   : > { %v829_v4 = vstv %s3117_s4  ;;  %s3318_s5 = sld [smem:[#allocation12 + $0x2c]]  ;;  %v833_v15 = vmul.f32 %v2305_v21, %v832_v11  ;;  %v3321_v29 = vstv %s3175_s15  ;;  %v3324_v18 = vstv %s3189_s24  ;;  %1729 = vrot.lane.b32.xlu0 %v3040_v61, %s2674_s30 }
  0xde   : > { %v830_v14 = vmul.f32 %v2305_v21, %v829_v4  ;;  %s4274_s28 = sld [smem:[#allocation22_spill]]  ;;  %v828_v22 = vadd.f32 %v827_v48, %v815_v24  ;;  %v3333_v25 = vadd.f32 %v3321_v29, %v825_v59  ;;  %v3336_v26 = vstv %s3199_s23  ;;  %v3354_v24 = vpop.permute.xlu2 %1067 }
  0xdf   : > { %s3326_s8 = sld [smem:[#allocation12 + $0x2d]]  ;;  %4276 = vst [vmem:[#allocation56_spill] sm:$0xff] %v3336_v26  ;;  %v3339_v31 = vstv %s3204_s26  ;;  %v834_v19 = vadd.f32 %v833_v15, %v821_v56  ;;  %v1033_v20 = vadd.f32 %v3201_v50, %v1011_v13  ;;  %v1036_v1 = vadd.f32 %v3212_v12, %v1014_v40 }
  0xe0   : > { %4277 = vst [vmem:[#allocation57_spill] sm:$0xff] %v3339_v31  ;;  %s3341_s4 = sld [smem:[#allocation12 + $0x2e]]  ;;  %v831_v10 = vadd.f32 %v830_v14, %v818_v52  ;;  %v3349_v36 = vadd.f32 %v3324_v18, %v828_v22  ;;  %v1039_v38 = vadd.f32 %v3217_v23, %v1017_v3  ;;  %v1042_v39 = vadd.f32 %v3226_v30, %v1020_v45 }
  0xe1   : > { %s4279_s6 = sld [smem:[#allocation29_spill]]  ;;  %v1052_v21 = vsel %vm985_vm0, %v1046_v53, %v1050_v51  ;;  %v3364_v12 = vadd.f32 %v3339_v31, %v834_v19  ;;  %v1053_v23 = vstv %s3131_s20  ;;  %v960_v7 = vstv %s3231_s7  ;;  %1690 = vrot.lane.b32.xlu1 %v3224_v28, %s4232_s14  ;;  %1726 = vrot.lane.b32.xlu2 %v3043_v62, %s2674_s30 }
  0xe2   : > { %s3345_s15 = sld [smem:[#allocation12 + $0x2f]]  ;;  %v3361_v50 = vadd.f32 %v3336_v26, %v831_v10  ;;  %v1054_v27 = vmul.f32 %v1053_v23, %v1052_v21  ;;  %v964_v3 = vstv %s3237_s29  ;;  %v967_v45 = vstv %s3244_s21  ;;  %v1072_v61 = vpop.permute.xlu0 %1071 }
  0xe3   : > { %s4281_s24 = sld [smem:[#allocation30_spill]]  ;;  %v965_v4 = vmul.f32 %v964_v3, %v2896_v42  ;;  %v970_v11 = vstv %s3258_s0  ;;  %v968_v14 = vmul.f32 %v967_v45, %v2896_v42  ;;  %v973_v22 = vstv %s3264_s11  ;;  %v835_v3 = vld [vmem:[#allocation2] sm:$0x7] }
  0xe4   : > { %p487_p1 = scmp.lt.s32.totalorder %s4274_s28, 1  ;;  %s4282_s23 = sld [smem:[#allocation31_spill]]  ;;  %v1055_v52 = vadd.f32 %v1054_v27, %v1033_v20  ;;  %v971_v15 = vmul.f32 %v970_v11, %v2896_v42  ;;  %v961_v27 = vmul.f32 %v960_v7, %v2900_v44 }
  0xe5   : > { %4275 = sst [smem:[#allocation39_spill]] %s3326_s8  ;;  %1783 = vrot.lane.b32.xlu0 %v3162_v55, %s2674_s30 }
  0xe6   : > { %4278 = sst [smem:[#allocation40_spill]] %s3341_s4  ;;  %s4322_s28 = smov (!%p487_p1, %s4274_s28), 1  ;;  %v3392_v59 = vadd.f32 %v1055_v52, %v3321_v29  ;;  %v849_v52 = vstv %s3301_s25 }
  0xe7   : > { %s4283_s26 = sld [smem:[#allocation32_spill]]  ;;  %v1056_v30 = vstv %s4279_s6  ;;  %s2345_s7 = sshll.u32 %s4322_s28, 3 }
  0xe8   : > { %4280 = sst [smem:[#allocation41_spill]] %s3345_s15  ;;  %v1057_v33 = vmul.f32 %v1056_v30, %v1052_v21 }
  0xe9   : > { %s3356_s27 = sld [smem:[#allocation13]]  ;;  %v1059_v34 = vstv %s4281_s24  ;;  %1745 = vrot.lane.b32.xlu1 %v3024_v60, %s2674_s30  ;;  %s2346_s24 = sshll.u32 %s4322_s28, 6  ;;  %1748 = vrot.lane.b32.xlu2 %v3091_v17, %s2674_s30 }
  0xea   : > { %s4284_s2 = sld [smem:[#allocation33_spill]]  ;;  %v1062_v46 = vstv %s4282_s23  ;;  %v1060_v58 = vmul.f32 %v1059_v34, %v1052_v21  ;;  %v1058_v56 = vadd.f32 %v1057_v33, %v1036_v1  ;;  %v3418_v1 = vpop.permute.xlu2 %1093  ;;  %v836_v33 = vstv %s3285_s3 }
  0xeb   : > { %s4285_s15 = sld [smem:[#allocation34_spill]]  ;;  %v1063_v35 = vmul.f32 %v1062_v46, %v1052_v21  ;;  %v839_v34 = vstv %s3287_s9  ;;  %v848_v46 = vld [vmem:[#allocation2 + $0x4] sm:$0x7] }
  0xec   : > { %s3368_s4 = sld [smem:[#allocation13 + $0x1]]  ;;  %v1061_v13 = vadd.f32 %v1060_v58, %v1039_v38  ;;  %v3395_v48 = vadd.f32 %v1058_v56, %v3324_v18  ;;  %v974_v38 = vmul.f32 %v973_v22, %v2896_v42  ;;  %v852_v56 = vstv %s3309_s16 }
  0xed   : > { %s3372_s8 = sld [smem:[#allocation13 + $0x2]]  ;;  %v951_v2 = vstv %s4283_s26  ;;  %v1064_v40 = vadd.f32 %v1063_v35, %v1042_v39  ;;  %v842_v35 = vstv %s3295_s1  ;;  %v853_v7 = vmul.f32 %v852_v56, %v848_v46  ;;  %1767 = vrot.lane.b32.xlu0 %v3054_v63, %s2674_s30 }
  0xee   : > { %s3383_s20 = sld [smem:[#allocation13 + $0x3]]  ;;  %v3404_v51 = vadd.f32 %v1061_v13, %v3336_v26  ;;  %v952_v21 = vmul.f32 %v951_v2, %v2900_v44  ;;  %v855_v13 = vstv %s3312_s18  ;;  %v840_v56 = vmul.f32 %v839_v34, %v835_v3 }
  0xef   : > { %s3387_s6 = sld [smem:[#allocation9 + $0x1c]]  ;;  %v3407_v53 = vadd.f32 %v1064_v40, %v3339_v31  ;;  %v858_v40 = vstv %s3314_s12  ;;  %v856_v11 = vmul.f32 %v855_v13, %v848_v46  ;;  %v843_v57 = vmul.f32 %v842_v35, %v835_v3  ;;  %v1090_v31 = vpop.permute.xlu1 %1089 }
  0xf0   : > { %v954_v41 = vstv %s4284_s2  ;;  %s3401_s21 = sld [smem:[#allocation9 + $0x1d]]  ;;  %v3441_v42 = vadd.f32 %v965_v4, %v952_v21  ;;  %v854_v10 = vadd.f32 %v853_v7, %v840_v56  ;;  %v1159_v34 = vadd.f32 %v3181_v6, %v3134_v37 }
  0xf1   : > { %v957_v43 = vstv %s4285_s15  ;;  %s3412_s29 = sld [smem:[#allocation9 + $0x1e]]  ;;  %v955_v23 = vmul.f32 %v954_v41, %v2900_v44  ;;  %v3451_v41 = vadd.f32 %v974_v38, %v961_v27  ;;  %v857_v26 = vadd.f32 %v856_v11, %v843_v57  ;;  %1786 = vrot.lane.b32.xlu1 %v3160_v54, %s2674_s30  ;;  %1764 = vrot.lane.b32.xlu2 %v3088_v16, %s2674_s30 }
  0xf2   : > { %s3420_s0 = sld [smem:[#allocation9 + $0x1f]]  ;;  %v958_v30 = vmul.f32 %v957_v43, %v2900_v44  ;;  %v845_v44 = vstv %s3298_s22  ;;  %v850_v43 = vmul.f32 %v849_v52, %v848_v46  ;;  %v3467_v22 = vstv %s3368_s4  ;;  %v3485_v13 = vpop.permute.xlu2 %1243 }
  0xf3   : > { %s3428_s11 = sld [smem:[#allocation9 + $0x70]]  ;;  %v3443_v58 = vadd.f32 %v968_v14, %v955_v23  ;;  %v859_v14 = vmul.f32 %v858_v40, %v848_v46  ;;  %v3474_v38 = vstv %s3372_s8  ;;  %v1097_v23 = vstv %s3318_s5 }
  0xf4   : > { %s4286_s23 = sld [smem:[#allocation59_spill]]  ;;  %v3449_v2 = vadd.f32 %v971_v15, %v958_v30  ;;  %v3464_v15 = vstv %s3356_s27  ;;  %v3477_v21 = vstv %s3383_s20  ;;  %v837_v46 = vmul.f32 %v836_v33, %v835_v3 }
  0xf5   : > { %s3439_s2 = sld [smem:[#allocation9 + $0x71]]  ;;  %v846_v40 = vmul.f32 %v845_v44, %v835_v3  ;;  %v1156_v33 = vadd.f32 %v3178_v5, %v3123_v32  ;;  %v1162_v35 = vadd.f32 %v3184_v8, %v3149_v47  ;;  %v1165_v44 = vadd.f32 %v3187_v9, %v3152_v49  ;;  %v4291_v5 = vld [vmem:[#allocation52_spill] sm:$0xff] }
  0xf6   : > { %s3447_s3 = sld [smem:[#allocation9 + $0x72]]  ;;  %v851_v19 = vadd.f32 %v850_v43, %v837_v46  ;;  %v874_v32 = vadd.f32 %v3467_v22, %v854_v10  ;;  %v1096_v37 = vsel %vm985_vm0, %v1090_v31, %v3418_v1  ;;  %v883_v7 = vadd.f32 %v3474_v38, %v857_v26  ;;  %v4292_v1 = vld [vmem:[#allocation53_spill] sm:$0xff] }
  0xf7   : > { %s3455_s9 = sld [smem:[#allocation9 + $0x73]]  ;;  %v860_v60 = vadd.f32 %v859_v14, %v846_v40  ;;  %v1169_v6 = vadd.f32 %v4291_v5, %v1156_v33  ;;  %v1098_v8 = vmul.f32 %v1097_v23, %v1096_v37  ;;  %v1180_v14 = vstv %s3387_s6  ;;  %v1225_v5 = vpop.permute.xlu1 %1224 }
  0xf8   : > { %s4289_s1 = sld [smem:[#allocation40_spill]]  ;;  %v866_v43 = vadd.f32 %v3464_v15, %v851_v19  ;;  %v875_v9 = vsub.f32 %v3349_v36, %v874_v32  ;;  %v884_v26 = vsub.f32 %v3361_v50, %v883_v7  ;;  %v4294_v50 = vld [vmem:[#allocation55_spill] sm:$0xff]  ;;  %v4296_v56 = vstv %s3268_s13 }
  0xf9   : > { %s4290_s22 = sld [smem:[#allocation41_spill]]  ;;  %v892_v47 = vadd.f32 %v3477_v21, %v860_v60  ;;  %v4297_v40 = vstv %s3275_s10  ;;  %1802 = vrot.lane.b32.xlu1 %v3113_v0, %s2674_s30  ;;  %1805 = vrot.lane.b32.xlu2 %v3224_v28, %s2674_s30 }
  0xfa   : > { %s3437_s26 = scalar_lea.vmem %s4286_s23, %s2345_s7  ;;  %s4288_s7 = sld [smem:[#allocation39_spill]]  ;;  %v867_v49 = vsub.f32 %v3333_v25, %v866_v43  ;;  %v3538_v23 = vpop.permute.xlu2 %1269 }
  0xfb   : > { %4287 = sst [smem:[#allocation35_spill]] %s3437_s26  ;;  %v861_v45 = vld [vmem:[%s3437_s26] sm:$0x3]  ;;  %v2315_v4 = vld [vmem:[%s3437_s26 + $0x2] sm:$0x3]  ;;  %v893_v19 = vsub.f32 %v3364_v12, %v892_v47  ;;  %v1178_v12 = vadd.f32 %v4294_v50, %v1165_v44  ;;  %v1229_v50 = vstv %s3428_s11 }
  0xfc   : > { %s3471_s25 = sld [smem:[#allocation9 + $0x74]]  ;;  %v862_v39 = vunpack.c.l.bf16 %v861_v45  ;;  %v3491_v20 = vunpack.c.l.bf16 %v2315_v4  ;;  %v3527_v45 = vadd.f32 %v4292_v1, %v1159_v34  ;;  %v4293_v4 = vld [vmem:[#allocation54_spill] sm:$0xff]  ;;  %v4298_v34 = vstv %s3278_s19 }
  0xfd   : > { %s3481_s16 = sld [smem:[#allocation9 + $0x75]]  ;;  %v3530_v11 = vadd.f32 %v4293_v4, %v1162_v35  ;;  %v4299_v35 = vstv %s3282_s17 }
  0xfe   : > { %v1103_v27 = vstv %s4289_s1  ;;  %s3487_s14 = sld [smem:[#allocation9 + $0x76]]  ;;  %v868_v25 = vmul.f32 %v867_v49, %v862_v39  ;;  %v876_v36 = vmul.f32 %v875_v9, %v862_v39  ;;  %v885_v62 = vmul.f32 %v884_v26, %v862_v39 }
  0xff   : > { %v1106_v52 = vstv %s4290_s22  ;;  %s3493_s18 = sld [smem:[#allocation9 + $0x77]]  ;;  %v1104_v31 = vmul.f32 %v1103_v27, %v1096_v37  ;;  %v894_v27 = vmul.f32 %v893_v19, %v862_v39 }
 0x100   : > { %v1100_v30 = vstv %s4288_s7  ;;  %s3499_s12 = sld [smem:[#allocation9 + $0x78]]  ;;  %v1107_v10 = vmul.f32 %v1106_v52, %v1096_v37  ;;  %v4295_v52 = vld [vmem:[#allocation28_spill] sm:$0xff]  ;;  %v877_v39 = vadd.f32 %v876_v36, %v874_v32  ;;  %v886_v54 = vadd.f32 %v885_v62, %v883_v7 }
 0x101   : > { %s3505_s5 = sld [smem:[#allocation9 + $0x79]]  ;;  %v1101_v3 = vmul.f32 %v1100_v30, %v1096_v37  ;;  %v1074_v30 = vsel %vm985_vm0, %v3354_v24, %v1072_v61  ;;  %v1181_v46 = vmul.f32 %v4295_v52, %v1180_v14  ;;  %v869_v24 = vadd.f32 %v868_v25, %v866_v43 }
 0x102   : > { %s3512_s8 = sld [smem:[#allocation9 + $0x7a]]  ;;  %v1076_v57 = vmul.f32 %v4296_v56, %v1074_v30  ;;  %v1079_v33 = vmul.f32 %v4297_v40, %v1074_v30  ;;  %v1082_v60 = vmul.f32 %v4298_v34, %v1074_v30  ;;  %v1085_v44 = vmul.f32 %v4299_v35, %v1074_v30  ;;  %v3597_v61 = vpop.permute.xlu2 %1309 }
 0x103   : > { %s3516_s4 = sld [smem:[#allocation9 + $0x7b]]  ;;  %v895_v37 = vadd.f32 %v894_v27, %v892_v47  ;;  %v1182_v43 = vadd.f32 %v1181_v46, %v1169_v6  ;;  %v1183_v32 = vstv %s3401_s21  ;;  %v1189_v7 = vstv %s3420_s0  ;;  %v1266_v46 = vpop.permute.xlu1 %1265 }
 0x104   : > { %s3522_s27 = sld [smem:[#allocation9 + $0x7c]]  ;;  %v1077_v49 = vadd.f32 %v1076_v57, %v3441_v42  ;;  %v1080_v9 = vadd.f32 %v1079_v33, %v3443_v58  ;;  %v1083_v26 = vadd.f32 %v1082_v60, %v3449_v2  ;;  %v1086_v19 = vadd.f32 %v1085_v44, %v3451_v41 }
 0x105   : > { %s3534_s20 = sld [smem:[#allocation9 + $0x7d]]  ;;  %v1186_v42 = vstv %s3412_s29  ;;  %v1184_v1 = vmul.f32 %v4295_v52, %v1183_v32  ;;  %v1190_v4 = vmul.f32 %v4295_v52, %v1189_v7  ;;  %v1260_v63 = vstv %s3493_s18 }
 0x106   : > { %s3540_s15 = sld [smem:[#allocation9 + $0x7e]]  ;;  %v1099_v58 = vadd.f32 %v1098_v8, %v1077_v49  ;;  %v1102_v2 = vadd.f32 %v1101_v3, %v1080_v9  ;;  %v1105_v41 = vadd.f32 %v1104_v31, %v1083_v26  ;;  %v1108_v47 = vadd.f32 %v1107_v10, %v1086_v19  ;;  %v1221_v10 = vpop.permute.xlu0 %1220 }
 0x107   : > { %s3548_s23 = sld [smem:[#allocation9 + $0x7f]]  ;;  %v1187_v6 = vmul.f32 %v4295_v52, %v1186_v42  ;;  %v1185_v17 = vadd.f32 %v1184_v1, %v3527_v45  ;;  %v1191_v36 = vadd.f32 %v1190_v4, %v1178_v12  ;;  %v1232_v45 = vstv %s3439_s2 }
 0x108   : > { %s3558_s6 = sld [smem:[#allocation12 + $0x8]]  ;;  %v1113_v8 = vadd.f32 %v1099_v58, %v3464_v15  ;;  %v1120_v3 = vadd.f32 %v1102_v2, %v3467_v22  ;;  %v1127_v55 = vadd.f32 %v1105_v41, %v3474_v38  ;;  %v1134_v31 = vadd.f32 %v1108_v47, %v3477_v21 }
 0x109   : > { %s3560_s28 = sld [smem:[#allocation12 + $0x9]]  ;;  %v1188_v25 = vadd.f32 %v1187_v6, %v3530_v11  ;;  %v1235_v52 = vstv %s3447_s3  ;;  %v1238_v11 = vstv %s3455_s9  ;;  %v1228_v12 = vsel %vm1227_vm1, %v1221_v10, %v1225_v5 }
 0x10a   : > { %s4300_s19 = sld [smem:[#allocation67_spill]]  ;;  %v1114_v14 = vsub.f32 %v3392_v59, %v1113_v8  ;;  %v1121_v30 = vsub.f32 %v3395_v48, %v1120_v3  ;;  %v1128_v62 = vsub.f32 %v3404_v51, %v1127_v55  ;;  %v1135_v27 = vsub.f32 %v3407_v53, %v1134_v31  ;;  %v3642_v26 = vpop.permute.xlu2 %1335 }
 0x10b   : > { %s3571_s7 = sld [smem:[#allocation12 + $0xa]]  ;;  %v1230_v53 = vmul.f32 %v1229_v50, %v1228_v12  ;;  %v1233_v56 = vmul.f32 %v1232_v45, %v1228_v12  ;;  %v1236_v57 = vmul.f32 %v1235_v52, %v1228_v12  ;;  %v1239_v40 = vmul.f32 %v1238_v11, %v1228_v12  ;;  %v2468_v52 = vld [vmem:[#allocation2] sm:$0x7] }
 0x10c   : > { %s3577_s1 = sld [smem:[#allocation12 + $0xb]]  ;;  %v1115_v0 = vmul.f32 %v1114_v14, %v3491_v20  ;;  %v1122_v59 = vmul.f32 %v1121_v30, %v3491_v20  ;;  %v1129_v48 = vmul.f32 %v1128_v62, %v3491_v20  ;;  %v1136_v51 = vmul.f32 %v1135_v27, %v3491_v20 }
 0x10d   : > { %s3580_s22 = sld [smem:[#allocation12 + $0xc]]  ;;  %v1231_v20 = vadd.f32 %v1230_v53, %v1182_v43  ;;  %v1234_v44 = vadd.f32 %v1233_v56, %v1185_v17  ;;  %v1257_v5 = vstv %s3487_s14  ;;  %v1272_v9 = vsel %vm1227_vm1, %v1266_v46, %v3538_v23 }
 0x10e   : > { %s3590_s21 = sld [smem:[#allocation12 + $0xd]]  ;;  %v1116_v33 = vadd.f32 %v1115_v0, %v1113_v8  ;;  %v1123_v34 = vadd.f32 %v1122_v59, %v1120_v3  ;;  %v1130_v60 = vadd.f32 %v1129_v48, %v1127_v55  ;;  %v1137_v35 = vadd.f32 %v1136_v51, %v1134_v31  ;;  %v1248_v49 = vpop.permute.xlu0 %1247 }
 0x10f   : > { %s3599_s29 = sld [smem:[#allocation12 + $0xe]]  ;;  %v1250_v19 = vsel %vm1227_vm1, %v3485_v13, %v1248_v49  ;;  %v1273_v43 = vstv %s3499_s12  ;;  %v1276_v32 = vstv %s3505_s5  ;;  %v1279_v2 = vstv %s3512_s8  ;;  %v1292_v13 = vpop.permute.xlu1 %1291 }
 0x110   : > { %s3569_s17 = scalar_lea.vmem %s4300_s19, %s2346_s24  ;;  %s3606_s0 = sld [smem:[#allocation12 + $0xf]]  ;;  %v1258_v58 = vmul.f32 %v1257_v5, %v1250_v19  ;;  %v1261_v23 = vmul.f32 %v1260_v63, %v1250_v19  ;;  %v1282_v41 = vstv %s3516_s4  ;;  %v1274_v47 = vmul.f32 %v1273_v43, %v1272_v9 }
 0x111   : > { %4301 = sst [smem:[#allocation36_spill]] %s3569_s17  ;;  %870 = vst [vmem:[%s3569_s17] sm:$0x7] %v869_v24  ;;  %v1237_v24 = vadd.f32 %v1236_v57, %v1188_v25  ;;  %v1277_v1 = vmul.f32 %v1276_v32, %v1272_v9  ;;  %v1280_v55 = vmul.f32 %v1279_v2, %v1272_v9  ;;  %v1283_v31 = vmul.f32 %v1282_v41, %v1272_v9 }
 0x112   : > { %2306 = vst [vmem:[%s3569_s17 + $0x4] sm:$0x7] %v877_v39  ;;  %s3612_s24 = sld [smem:[#allocation12 + $0x38]]  ;;  %v1240_v39 = vadd.f32 %v1239_v40, %v1191_v36  ;;  %v1295_v10 = vstv %s3522_s27  ;;  %v1298_v17 = vstv %s3534_s20  ;;  %v1301_v36 = vstv %s3540_s15  ;;  %v3680_v59 = vpop.permute.xlu2 %1484 }
 0x113   : > { %2307 = vst [vmem:[%s3569_s17 + $0x8] sm:$0x7] %v886_v54  ;;  %s3618_s11 = sld [smem:[#allocation12 + $0x39]]  ;;  %v1251_v54 = vstv %s3471_s25  ;;  %v1259_v8 = vadd.f32 %v1258_v58, %v1237_v24  ;;  %v1304_v50 = vstv %s3548_s23  ;;  %v1193_v62 = vstv %s3558_s6  ;;  %v4303_v58 = vld [vmem:[#allocation57_spill] sm:$0xff] }
 0x114   : > { %2308 = vst [vmem:[%s3569_s17 + $0xc] sm:$0x7] %v895_v37  ;;  %s3624_s13 = sld [smem:[#allocation12 + $0x3a]]  ;;  %v1254_v37 = vstv %s3481_s16  ;;  %v1252_v42 = vmul.f32 %v1251_v54, %v1250_v19  ;;  %v1262_v3 = vadd.f32 %v1261_v23, %v1240_v39  ;;  %v1196_v27 = vstv %s3560_s28 }
 0x115   : > { %s3626_s2 = sld [smem:[#allocation12 + $0x3b]]  ;;  %2316 = vst [vmem:[%s3569_s17 + $0x10] sm:$0x7] %v1116_v33  ;;  %v1255_v7 = vmul.f32 %v1254_v37, %v1250_v19  ;;  %v1281_v14 = vadd.f32 %v1280_v55, %v1259_v8  ;;  %v1194_v11 = vmul.f32 %v2468_v52, %v1193_v62  ;;  %v1197_v12 = vmul.f32 %v2468_v52, %v1196_v27 }
 0x116   : > { %s3628_s3 = sld [smem:[#allocation12 + $0x3c]]  ;;  %2317 = vst [vmem:[%s3569_s17 + $0x14] sm:$0x7] %v1123_v34  ;;  %v1253_v6 = vadd.f32 %v1252_v42, %v1231_v20  ;;  %v1284_v30 = vadd.f32 %v1283_v31, %v1262_v3  ;;  %v1288_v45 = vpop.permute.xlu0 %1287  ;;  %v1199_v46 = vstv %s3571_s7  ;;  %v1202_v0 = vstv %s3577_s1  ;;  %v4302_v42 = vld [vmem:[#allocation56_spill] sm:$0xff] }
 0x117   : > { %s3632_s9 = sld [smem:[#allocation12 + $0x3d]]  ;;  %2318 = vst [vmem:[%s3569_s17 + $0x18] sm:$0x7] %v1130_v60  ;;  %v1256_v4 = vadd.f32 %v1255_v7, %v1234_v44  ;;  %v1294_v48 = vsel %vm1227_vm1, %v1288_v45, %v1292_v13  ;;  %v1200_v51 = vmul.f32 %v2468_v52, %v1199_v46  ;;  %v1203_v53 = vmul.f32 %v2468_v52, %v1202_v0  ;;  %v1332_v60 = vpop.permute.xlu1 %1331  ;;  %v2326_v13 = vld [vmem:[%s3437_s26 + $0x4] sm:$0x3] }
 0x118   : > { %s3640_s10 = sld [smem:[#allocation12 + $0x3e]]  ;;  %2319 = vst [vmem:[%s3569_s17 + $0x1c] sm:$0x7] %v1137_v35  ;;  %v1275_v25 = vadd.f32 %v1274_v47, %v1253_v6  ;;  %v1206_v56 = vstv %s3580_s22  ;;  %v1296_v57 = vmul.f32 %v1295_v10, %v1294_v48  ;;  %v1299_v40 = vmul.f32 %v1298_v17, %v1294_v48  ;;  %v2469_v35 = vld [vmem:[#allocation2 + $0x4] sm:$0x7] }
 0x119   : > { %s3650_s25 = sld [smem:[#allocation12 + $0x3f]]  ;;  %v1278_v16 = vadd.f32 %v1277_v1, %v1256_v4  ;;  %v1302_v33 = vmul.f32 %v1301_v36, %v1294_v48  ;;  %v1305_v34 = vmul.f32 %v1304_v50, %v1294_v48  ;;  %v1207_v20 = vmul.f32 %v2469_v35, %v1206_v56 }
 0x11a   : > { %s3653_s16 = sld [smem:[#allocation9]]  ;;  %v1209_v44 = vstv %s3590_s21  ;;  %v1212_v24 = vstv %s3599_s29  ;;  %v1215_v39 = vstv %s3606_s0  ;;  %v1297_v54 = vadd.f32 %v1296_v57, %v1275_v25  ;;  %v3723_v31 = vpop.permute.xlu2 %1510 }
 0x11b   : > { %s3660_s14 = sld [smem:[#allocation9 + $0x1]]  ;;  %v1300_v37 = vadd.f32 %v1299_v40, %v1278_v16  ;;  %v1303_v5 = vadd.f32 %v1302_v33, %v1281_v14  ;;  %v1306_v49 = vadd.f32 %v1305_v34, %v1284_v30  ;;  %v1208_v9 = vadd.f32 %v1207_v20, %v1194_v11 }
 0x11c   : > { %s3662_s18 = sld [smem:[#allocation9 + $0x2]]  ;;  %v1210_v63 = vmul.f32 %v2469_v35, %v1209_v44  ;;  %v1213_v19 = vmul.f32 %v2469_v35, %v1212_v24  ;;  %v1216_v43 = vmul.f32 %v2469_v35, %v1215_v39  ;;  %v3700_v28 = vadd.f32 %v1297_v54, %v3321_v29 }
 0x11d   : > { %s3666_s12 = sld [smem:[#allocation9 + $0x3]]  ;;  %v3703_v32 = vadd.f32 %v1300_v37, %v3324_v18  ;;  %v3706_v7 = vadd.f32 %v1303_v5, %v4302_v42  ;;  %v3709_v23 = vadd.f32 %v1306_v49, %v4303_v58  ;;  %v1317_v1 = vstv %s3612_s24 }
 0x11e   : > { %s3670_s5 = sld [smem:[#allocation9 + $0x4]]  ;;  %v1211_v2 = vadd.f32 %v1210_v63, %v1197_v12  ;;  %v1214_v41 = vadd.f32 %v1213_v19, %v1200_v51  ;;  %v1217_v47 = vadd.f32 %v1216_v43, %v1203_v53  ;;  %v1320_v6 = vstv %s3618_s11  ;;  %v1314_v3 = vpop.permute.xlu0 %1313 }
 0x11f   : > { %s3674_s8 = sld [smem:[#allocation9 + $0x5]]  ;;  %v1323_v4 = vstv %s3624_s13  ;;  %v1326_v8 = vstv %s3626_s2  ;;  %v1339_v55 = vstv %s3628_s3  ;;  %v1316_v10 = vsel %vm1227_vm1, %v3597_v61, %v1314_v3  ;;  %v3736_v45 = vpop.permute.xlu1 %1466 }
 0x120   : > { %s3678_s4 = sld [smem:[#allocation9 + $0x6]]  ;;  %v1342_v17 = vstv %s3632_s9  ;;  %v1345_v25 = vstv %s3640_s10  ;;  %v1348_v16 = vstv %s3650_s25  ;;  %v1318_v36 = vmul.f32 %v1317_v1, %v1316_v10 }
 0x121   : > { %s3684_s27 = sld [smem:[#allocation9 + $0x7]]  ;;  %v1321_v50 = vmul.f32 %v1320_v6, %v1316_v10  ;;  %v1324_v14 = vmul.f32 %v1323_v4, %v1316_v10  ;;  %v1327_v30 = vmul.f32 %v1326_v8, %v1316_v10  ;;  %v1338_v62 = vsel %vm1227_vm1, %v1332_v60, %v3642_v26 }
 0x122   : > { %s3686_s20 = sld [smem:[#allocation9 + $0x8]]  ;;  %v1353_v27 = vunpack.c.l.bf16 %v2326_v13  ;;  %v1383_v61 = vstv %s3653_s16  ;;  %v1386_v52 = vstv %s3660_s14  ;;  %v1319_v11 = vadd.f32 %v1318_v36, %v1208_v9  ;;  %v3759_v49 = vpop.permute.xlu2 %1550 }
 0x123   : > { %s3693_s15 = sld [smem:[#allocation9 + $0x9]]  ;;  %v1322_v12 = vadd.f32 %v1321_v50, %v1211_v2  ;;  %v1325_v46 = vadd.f32 %v1324_v14, %v1214_v41  ;;  %v1328_v0 = vadd.f32 %v1327_v30, %v1217_v47  ;;  %v1340_v48 = vmul.f32 %v1339_v55, %v1338_v62 }
 0x124   : > { %s3695_s23 = sld [smem:[#allocation9 + $0xa]]  ;;  %v1343_v51 = vmul.f32 %v1342_v17, %v1338_v62  ;;  %v1346_v53 = vmul.f32 %v1345_v25, %v1338_v62  ;;  %v1349_v26 = vmul.f32 %v1348_v16, %v1338_v62  ;;  %v1389_v33 = vstv %s3662_s18 }
 0x125   : > { %s3697_s6 = sld [smem:[#allocation9 + $0xb]]  ;;  %v1392_v34 = vstv %s3666_s12  ;;  %v1341_v60 = vadd.f32 %v1340_v48, %v1319_v11  ;;  %v1396_v54 = vstv %s3670_s5  ;;  %v1399_v37 = vstv %s3674_s8 }
 0x126   : > { %s3711_s30 = sld [smem:[#allocation9 + $0xc]]  ;;  %v1344_v35 = vadd.f32 %v1343_v51, %v1322_v12  ;;  %v1347_v20 = vadd.f32 %v1346_v53, %v1325_v46  ;;  %v1350_v44 = vadd.f32 %v1349_v26, %v1328_v0  ;;  %v3755_v5 = vpop.permute.xlu0 %1462  ;;  %v1402_v1 = vstv %s3678_s4 }
 0x127   : > { %s3715_s28 = sld [smem:[#allocation9 + $0xd]]  ;;  %v1355_v9 = vadd.f32 %v1341_v60, %v3464_v15  ;;  %v1405_v13 = vstv %s3684_s27  ;;  %v3776_v55 = vpop.permute.xlu1 %1506 }
 0x128   : > { %s3721_s19 = sld [smem:[#allocation9 + $0xe]]  ;;  %v1362_v63 = vadd.f32 %v1344_v35, %v3467_v22  ;;  %v1369_v19 = vadd.f32 %v1347_v20, %v3474_v38  ;;  %v1376_v43 = vadd.f32 %v1350_v44, %v3477_v21  ;;  %v1409_v14 = vstv %s3686_s20 }
 0x129   : > { %s3730_s7 = sld [smem:[#allocation9 + $0xf]]  ;;  %v1356_v6 = vsub.f32 %v3700_v28, %v1355_v9  ;;  %v1412_v30 = vstv %s3693_s15 }
 0x12a   : > { %s3732_s1 = sld [smem:[#allocation9 + $0x20]]  ;;  %v1363_v4 = vsub.f32 %v3703_v32, %v1362_v63  ;;  %v1370_v8 = vsub.f32 %v3706_v7, %v1369_v19  ;;  %v1377_v3 = vsub.f32 %v3709_v23, %v1376_v43  ;;  %v1415_v0 = vstv %s3695_s23  ;;  %v3795_v53 = vpop.permute.xlu2 %1576 }
 0x12b   : > { %s4304_s22 = sld [smem:[#allocation27_spill]]  ;;  %v1357_v28 = vmul.f32 %v1356_v6, %v1353_v27  ;;  %v1418_v48 = vstv %s3697_s6 }
 0x12c   : > { %s3738_s21 = sld [smem:[#allocation9 + $0x21]]  ;;  %v1364_v36 = vmul.f32 %v1363_v4, %v1353_v27  ;;  %v1371_v32 = vmul.f32 %v1370_v8, %v1353_v27  ;;  %v1378_v7 = vmul.f32 %v1377_v3, %v1353_v27  ;;  %v1469_v4 = vsel %vm985_vm0, %v3755_v5, %v3736_v45 }
 0x12d   : > { %s3742_s29 = sld [smem:[#allocation9 + $0x22]]  ;;  %v1358_v62 = vadd.f32 %v1357_v28, %v1355_v9 }
 0x12e   : > { %s3744_s0 = sld [smem:[#allocation9 + $0x23]]  ;;  %v1379_v11 = vadd.f32 %v1378_v7, %v1376_v43  ;;  %v1489_v51 = vpop.permute.xlu0 %1488 }
 0x12f   : > { %s3749_s24 = sld [smem:[#allocation9 + $0x24]]  ;;  %2327 = vst [vmem:[%s3569_s17 + $0x20] sm:$0x7] %v1358_v62 }
 0x130   : > { %s3751_s11 = sld [smem:[#allocation9 + $0x25]]  ;;  %2330 = vst [vmem:[%s3569_s17 + $0x2c] sm:$0x7] %v1379_v11 }
 0x131   : > { %v2470_v56 = vld [vmem:[%s4304_s22] sm:$0x7]  ;;  %s3757_s13 = sld [smem:[#allocation9 + $0x26]]  ;;  %v2471_v2 = vld [vmem:[%s4304_s22 + $0x4] sm:$0x7] }
 0x132   : > { %v1384_v57 = vmul.f32 %v2470_v56, %v1383_v61  ;;  %v1387_v40 = vmul.f32 %v2470_v56, %v1386_v52  ;;  %v1390_v24 = vmul.f32 %v2470_v56, %v1389_v33  ;;  %v1393_v39 = vmul.f32 %v2470_v56, %v1392_v34  ;;  %s3765_s2 = sld [smem:[#allocation9 + $0x27]]  ;;  %v2472_v27 = vld [vmem:[%s4304_s22 + $0x8] sm:$0x7]  ;;  %v2473_v60 = vld [vmem:[%s4304_s22 + $0xc] sm:$0x7] }
 0x133   : > { %v1397_v41 = vmul.f32 %v2471_v2, %v1396_v54  ;;  %v1400_v47 = vmul.f32 %v2471_v2, %v1399_v37  ;;  %s3770_s3 = sld [smem:[#allocation9 + $0x28]]  ;;  %v1403_v25 = vmul.f32 %v2471_v2, %v1402_v1  ;;  %v1406_v16 = vmul.f32 %v2471_v2, %v1405_v13  ;;  %v3809_v37 = vpop.permute.xlu1 %1532 }
 0x134   : > { %s3778_s9 = sld [smem:[#allocation9 + $0x29]]  ;;  %v1365_v61 = vadd.f32 %v1364_v36, %v1362_v63  ;;  %v1372_v52 = vadd.f32 %v1371_v32, %v1369_v19  ;;  %v1410_v12 = vmul.f32 %v2472_v27, %v1409_v14  ;;  %v1413_v46 = vmul.f32 %v2472_v27, %v1412_v30 }
 0x135   : > { %v1398_v10 = vadd.f32 %v1397_v41, %v1384_v57  ;;  %v1401_v17 = vadd.f32 %v1400_v47, %v1387_v40  ;;  %s3780_s10 = sld [smem:[#allocation9 + $0x2a]]  ;;  %v1404_v23 = vadd.f32 %v1403_v25, %v1390_v24  ;;  %v1407_v50 = vadd.f32 %v1406_v16, %v1393_v39 }
 0x136   : > { %s3782_s25 = sld [smem:[#allocation9 + $0x2b]]  ;;  %v1416_v26 = vmul.f32 %v2472_v27, %v1415_v0  ;;  %v1419_v56 = vmul.f32 %v2472_v27, %v1418_v48  ;;  %v1422_v57 = vstv %s3711_s30  ;;  %v1425_v40 = vstv %s3715_s28  ;;  %2328 = vst [vmem:[%s3569_s17 + $0x24] sm:$0x7] %v1365_v61  ;;  %v1529_v7 = vpop.permute.xlu0 %1528 }
 0x137   : > { %s3786_s16 = sld [smem:[#allocation9 + $0x2c]]  ;;  %v1411_v33 = vadd.f32 %v1410_v12, %v1398_v10  ;;  %v1414_v34 = vadd.f32 %v1413_v46, %v1401_v17  ;;  %v1423_v35 = vmul.f32 %v2473_v60, %v1422_v57  ;;  %v1426_v20 = vmul.f32 %v2473_v60, %v1425_v40  ;;  %2329 = vst [vmem:[%s3569_s17 + $0x28] sm:$0x7] %v1372_v52 }
 0x138   : > { %s3788_s14 = sld [smem:[#allocation9 + $0x2d]]  ;;  %v1417_v44 = vadd.f32 %v1416_v26, %v1404_v23  ;;  %v1420_v24 = vadd.f32 %v1419_v56, %v1407_v50  ;;  %v1428_v39 = vstv %s3721_s19  ;;  %v1431_v54 = vstv %s3730_s7  ;;  %v3837_v23 = vpop.permute.xlu2 %1611 }
 0x139   : > { %s3793_s18 = sld [smem:[#allocation9 + $0x2e]]  ;;  %v1424_v9 = vadd.f32 %v1423_v35, %v1411_v33  ;;  %v1427_v63 = vadd.f32 %v1426_v20, %v1414_v34  ;;  %v1429_v19 = vmul.f32 %v2473_v60, %v1428_v39  ;;  %v1432_v43 = vmul.f32 %v2473_v60, %v1431_v54 }
 0x13a   : > { %s3800_s12 = sld [smem:[#allocation9 + $0x2f]]  ;;  %v1470_v2 = vstv %s3732_s1  ;;  %v1473_v41 = vstv %s3738_s21  ;;  %v1476_v47 = vstv %s3742_s29  ;;  %v1479_v1 = vstv %s3744_s0 }
 0x13b   : > { %s3804_s5 = sld [smem:[#allocation12]]  ;;  %v1430_v13 = vadd.f32 %v1429_v19, %v1417_v44  ;;  %v1433_v6 = vadd.f32 %v1432_v43, %v1420_v24  ;;  %v1492_v8 = vstv %s3749_s24  ;;  %v1471_v3 = vmul.f32 %v1470_v2, %v1469_v4  ;;  %v3843_v11 = vpop.permute.xlu1 %1572 }
 0x13c   : > { %s3811_s8 = sld [smem:[#allocation12 + $0x1]]  ;;  %v1474_v10 = vmul.f32 %v1473_v41, %v1469_v4  ;;  %v1477_v17 = vmul.f32 %v1476_v47, %v1469_v4  ;;  %v1480_v25 = vmul.f32 %v1479_v1, %v1469_v4  ;;  %v1495_v16 = vstv %s3751_s11 }
 0x13d   : > { %s3814_s4 = sld [smem:[#allocation12 + $0x2]]  ;;  %v1498_v28 = vstv %s3757_s13  ;;  %v1501_v36 = vstv %s3765_s2  ;;  %v1491_v32 = vsel %vm985_vm0, %v3680_v59, %v1489_v51  ;;  %v1472_v45 = vadd.f32 %v1471_v3, %v1424_v9 }
 0x13e   : > { %s3820_s27 = sld [smem:[#allocation12 + $0x3]]  ;;  %v1475_v5 = vadd.f32 %v1474_v10, %v1427_v63  ;;  %v1478_v50 = vadd.f32 %v1477_v17, %v1430_v13  ;;  %v1481_v14 = vadd.f32 %v1480_v25, %v1433_v6  ;;  %v1493_v30 = vmul.f32 %v1492_v8, %v1491_v32  ;;  %v3861_v0 = vpop.permute.xlu0 %1554  ;;  %v2474_v10 = vld [vmem:[#allocation2] sm:$0x7] }
 0x13f   : > { %s3826_s20 = sld [smem:[#allocation12 + $0x4]]  ;;  %v1496_v62 = vmul.f32 %v1495_v16, %v1491_v32  ;;  %v1499_v61 = vmul.f32 %v1498_v28, %v1491_v32  ;;  %v1502_v52 = vmul.f32 %v1501_v36, %v1491_v32  ;;  %v1514_v57 = vstv %s3770_s3  ;;  %v2475_v32 = vld [vmem:[#allocation2 + $0x4] sm:$0x7] }
 0x140   : > { %s3828_s15 = sld [smem:[#allocation12 + $0x5]]  ;;  %v1494_v59 = vadd.f32 %v1493_v30, %v1472_v45  ;;  %v3865_v48 = vpop.permute.xlu2 %1633  ;;  %v1517_v40 = vstv %s3778_s9  ;;  %v1520_v33 = vstv %s3780_s10  ;;  %v1513_v34 = vsel %vm985_vm0, %v3776_v55, %v3723_v31 }
 0x141   : > { %s3835_s23 = sld [smem:[#allocation12 + $0x6]]  ;;  %v3847_v27 = vadd.f32 %v1496_v62, %v1475_v5  ;;  %v3849_v12 = vadd.f32 %v1499_v61, %v1478_v50  ;;  %v3851_v46 = vadd.f32 %v1502_v52, %v1481_v14  ;;  %v1523_v60 = vstv %s3782_s25 }
 0x142   : > { %s3839_s6 = sld [smem:[#allocation12 + $0x7]]  ;;  %v1536_v20 = vstv %s3786_s16  ;;  %v1539_v44 = vstv %s3788_s14  ;;  %v1542_v24 = vstv %s3793_s18  ;;  %v1515_v39 = vmul.f32 %v1514_v57, %v1513_v34 }
 0x143   : > { %s3841_s30 = sld [smem:[#allocation12 + $0x10]]  ;;  %v3871_v51 = vpop.permute.xlu1 %1595  ;;  %v1518_v31 = vmul.f32 %v1517_v40, %v1513_v34  ;;  %v1521_v55 = vmul.f32 %v1520_v33, %v1513_v34  ;;  %v1535_v54 = vsel %vm985_vm0, %v1529_v7, %v3809_v37  ;;  %v1524_v9 = vmul.f32 %v1523_v60, %v1513_v34 }
 0x144   : > { %s3845_s28 = sld [smem:[#allocation12 + $0x11]]  ;;  %v1435_v63 = vstv %s3804_s5  ;;  %v1438_v19 = vstv %s3811_s8  ;;  %v1441_v43 = vstv %s3814_s4  ;;  %v1444_v2 = vstv %s3820_s27 }
 0x145   : > { %s3853_s19 = sld [smem:[#allocation12 + $0x12]]  ;;  %v1448_v41 = vstv %s3826_s20  ;;  %v1516_v13 = vadd.f32 %v1515_v39, %v1494_v59  ;;  %v1545_v6 = vstv %s3800_s12  ;;  %v1537_v4 = vmul.f32 %v1536_v20, %v1535_v54 }
 0x146   : > { %s3855_s7 = sld [smem:[#allocation12 + $0x13]]  ;;  %v3883_v26 = vpop.permute.xlu0 %1592  ;;  %v1451_v47 = vstv %s3828_s15  ;;  %v1540_v37 = vmul.f32 %v1539_v44, %v1535_v54  ;;  %v1436_v17 = vmul.f32 %v2474_v10, %v1435_v63  ;;  %v1439_v25 = vmul.f32 %v2474_v10, %v1438_v19 }
 0x147   : > { %s3857_s1 = sld [smem:[#allocation12 + $0x14]]  ;;  %v1454_v1 = vstv %s3835_s23  ;;  %v1442_v16 = vmul.f32 %v2474_v10, %v1441_v43  ;;  %v1445_v36 = vmul.f32 %v2474_v10, %v1444_v2  ;;  %v1449_v7 = vmul.f32 %v2475_v32, %v1448_v41 }
 0x148   : > { %s3859_s22 = sld [smem:[#allocation12 + $0x15]]  ;;  %v3887_v56 = vpop.permute.xlu2 %1668  ;;  %v1457_v8 = vstv %s3839_s6  ;;  %v1452_v45 = vmul.f32 %v2475_v32, %v1451_v47  ;;  %v1455_v5 = vmul.f32 %v2475_v32, %v1454_v1  ;;  %v1557_v62 = vsel %vm985_vm0, %v3759_v49, %v3861_v0 }
 0x149   : > { %s3863_s21 = sld [smem:[#allocation12 + $0x16]]  ;;  %v1458_v50 = vmul.f32 %v2475_v32, %v1457_v8  ;;  %v1558_v14 = vstv %s3841_s30  ;;  %v1543_v52 = vmul.f32 %v1542_v24, %v1535_v54  ;;  %v1546_v59 = vmul.f32 %v1545_v6, %v1535_v54 }
 0x14a   : > { %s3867_s29 = sld [smem:[#allocation12 + $0x17]]  ;;  %v1561_v30 = vstv %s3845_s28  ;;  %v1519_v33 = vadd.f32 %v1518_v31, %v3847_v27  ;;  %v1522_v34 = vadd.f32 %v1521_v55, %v3849_v12  ;;  %v1525_v60 = vadd.f32 %v1524_v9, %v3851_v46 }
 0x14b   : > { %s3869_s0 = sld [smem:[#allocation9 + $0x60]]  ;;  %v3900_v35 = vpop.permute.xlu1 %1630  ;;  %v1564_v57 = vstv %s3853_s19  ;;  %v1538_v20 = vadd.f32 %v1537_v4, %v1516_v13  ;;  %v1450_v49 = vadd.f32 %v1449_v7, %v1436_v17  ;;  %v1453_v0 = vadd.f32 %v1452_v45, %v1439_v25 }
 0x14c   : > { %s3873_s24 = sld [smem:[#allocation9 + $0x61]]  ;;  %v1567_v40 = vstv %s3855_s7  ;;  %v1559_v44 = vmul.f32 %v1558_v14, %v1557_v62  ;;  %v1562_v24 = vmul.f32 %v1561_v30, %v1557_v62  ;;  %v1456_v39 = vadd.f32 %v1455_v5, %v1442_v16 }
 0x14d   : > { %s3875_s11 = sld [smem:[#allocation9 + $0x62]]  ;;  %v1459_v54 = vadd.f32 %v1458_v50, %v1445_v36  ;;  %v1565_v27 = vmul.f32 %v1564_v57, %v1557_v62  ;;  %v1568_v12 = vmul.f32 %v1567_v40, %v1557_v62  ;;  %v1541_v46 = vadd.f32 %v1540_v37, %v1519_v33 }
 0x14e   : > { %s3877_s13 = sld [smem:[#allocation9 + $0x63]]  ;;  %v3926_v3 = vpop.permute.xlu0 %1614  ;;  %v1544_v31 = vadd.f32 %v1543_v52, %v1522_v34  ;;  %v1547_v55 = vadd.f32 %v1546_v59, %v1525_v60  ;;  %v1580_v9 = vstv %s3857_s1  ;;  %v1583_v19 = vstv %s3859_s22 }
 0x14f   : > { %s3879_s2 = sld [smem:[#allocation9 + $0x64]]  ;;  %v1586_v43 = vstv %s3863_s21  ;;  %v1579_v41 = vsel %vm985_vm0, %v3843_v11, %v3795_v53  ;;  %v1560_v47 = vadd.f32 %v1559_v44, %v1450_v49  ;;  %v1563_v1 = vadd.f32 %v1562_v24, %v1453_v0 }
 0x150   : > { %s3881_s17 = sld [smem:[#allocation9 + $0x65]]  ;;  %v3932_v28 = vpop.permute.xlu2 %1709  ;;  %v1589_v2 = vstv %s3867_s29  ;;  %v1598_v6 = vsel %vm1227_vm1, %v3883_v26, %v3871_v51  ;;  %v1566_v4 = vadd.f32 %v1565_v27, %v1456_v39  ;;  %v1569_v8 = vadd.f32 %v1568_v12, %v1459_v54 }
 0x151   : > { %4305 = sst [smem:[#allocation37_spill]] %s3869_s0  ;;  %v1581_v11 = vmul.f32 %v1580_v9, %v1579_v41  ;;  %v1617_v51 = vsel %vm1227_vm1, %v3837_v23, %v3926_v3  ;;  %v1584_v26 = vmul.f32 %v1583_v19, %v1579_v41  ;;  %v1587_v45 = vmul.f32 %v1586_v43, %v1579_v41 }
 0x152   : > { %s3885_s26 = sld [smem:[#allocation9 + $0x66]]  ;;  %v1602_v37 = vstv %s3873_s24  ;;  %v1590_v62 = vmul.f32 %v1589_v2, %v1579_v41  ;;  %v1636_v54 = vsel %vm1227_vm1, %v3900_v35, %v3865_v48 }
 0x153   : > { %s3889_s0 = sld [smem:[#allocation9 + $0x67]]  ;;  %v3941_v61 = vpop.permute.xlu1 %1652  ;;  %v1605_v10 = vstv %s3875_s11  ;;  %v1603_v5 = vmul.f32 %v1602_v37, %v1598_v6  ;;  %v3999_v30 = vadd.f32 %v1581_v11, %v1560_v47  ;;  %v4003_v3 = vadd.f32 %v1584_v26, %v1563_v1 }
 0x154   : > { %s3907_s3 = sld [smem:[#allocation9 + $0x6a]]  ;;  %v1608_v25 = vstv %s3877_s13  ;;  %v1606_v50 = vmul.f32 %v1605_v10, %v1598_v6  ;;  %v4005_v59 = vadd.f32 %v1587_v45, %v1566_v4  ;;  %v4011_v34 = vadd.f32 %v1590_v62, %v1569_v8 }
 0x155   : > { %4306 = sst [smem:[#allocation38_spill]] %s3879_s2  ;;  %v1609_v52 = vmul.f32 %v1608_v25, %v1598_v6  ;;  %v1604_v44 = vadd.f32 %v1603_v5, %v1541_v46 }
 0x156   : > { %s3897_s2 = sld [smem:[#allocation9 + $0x68]]  ;;  %v3959_v63 = vpop.permute.xlu0 %1649  ;;  %v1621_v32 = vstv %s3881_s17  ;;  %v1607_v24 = vadd.f32 %v1606_v50, %v1544_v31 }
 0x157   : > { %s3911_s9 = sld [smem:[#allocation9 + $0x6b]]  ;;  %v1622_v57 = vmul.f32 %v1621_v32, %v1617_v51  ;;  %v1610_v27 = vadd.f32 %v1609_v52, %v1547_v55  ;;  %v1655_v2 = vsel %vm1227_vm1, %v3959_v63, %v3941_v61 }
 0x158   : > { %4307 = sst [smem:[#allocation42_spill]] %s3885_s26  ;;  %v3983_v53 = vpop.permute.xlu2 %1726 }
 0x159   : > { %s3902_s26 = sld [smem:[#allocation9 + $0x69]]  ;;  %v1627_v14 = vstv %s3889_s0  ;;  %v1623_v46 = vadd.f32 %v1622_v57, %v1604_v44 }
 0x15a   : > { %s3916_s10 = sld [smem:[#allocation9 + $0x6c]]  ;;  %v1628_v49 = vmul.f32 %v1627_v14, %v1617_v51  ;;  %v1643_v9 = vstv %s3907_s3 }
 0x15b   : > { %s3922_s25 = sld [smem:[#allocation9 + $0x6d]]  ;;  %v3979_v17 = vpop.permute.xlu1 %1706  ;;  %v1644_v1 = vmul.f32 %v1643_v9, %v1636_v54 }
 0x15c   : > { %s3928_s16 = sld [smem:[#allocation9 + $0x6e]]  ;;  %v1637_v0 = vstv %s3897_s2  ;;  %v1629_v48 = vadd.f32 %v1628_v49, %v1610_v27  ;;  %v1713_v25 = vsel %vm1712_vm2, %v3979_v17, %v3932_v28 }
 0x15d   : > { %s3930_s14 = sld [smem:[#allocation9 + $0x6f]]  ;;  %v1646_v19 = vstv %s3911_s9  ;;  %v1638_v35 = vmul.f32 %v1637_v0, %v1636_v54 }
 0x15e   : > { %s3934_s18 = sld [smem:[#allocation12 + $0x30]]  ;;  %v4007_v33 = vpop.permute.xlu0 %1671  ;;  %v1647_v63 = vmul.f32 %v1646_v19, %v1636_v54 }
 0x15f   : > { %s3943_s12 = sld [smem:[#allocation12 + $0x31]]  ;;  %v1640_v39 = vstv %s3902_s26  ;;  %v1674_v57 = vsel %vm1227_vm1, %v3887_v56, %v4007_v33 }
 0x160   : > { %s3947_s5 = sld [smem:[#allocation12 + $0x32]]  ;;  %v1656_v43 = vstv %s3916_s10  ;;  %v4037_v41 = vpop.permute.xlu2 %1748  ;;  %v1641_v47 = vmul.f32 %v1640_v39, %v1636_v54  ;;  %v1648_v45 = vadd.f32 %v1647_v63, %v1629_v48 }
 0x161   : > { %s3952_s8 = sld [smem:[#allocation12 + $0x33]]  ;;  %v1659_v55 = vstv %s3922_s25  ;;  %v1657_v4 = vmul.f32 %v1656_v43, %v1655_v2 }
 0x162   : > { %s3954_s4 = sld [smem:[#allocation9 + $0x80]]  ;;  %v1642_v37 = vadd.f32 %v1641_v47, %v1623_v46  ;;  %v1660_v10 = vmul.f32 %v1659_v55, %v1655_v2 }
 0x163   : > { %s4308_s27 = sld [smem:[#allocation37_spill]] }
 0x164   : > { %s3956_s20 = sld [smem:[#allocation9 + $0x81]]  ;;  %v1675_v8 = vstv %s3934_s18 }
 0x165   : > { %s3961_s15 = sld [smem:[#allocation9 + $0x82]]  ;;  %v1678_v5 = vstv %s3943_s12  ;;  %v1676_v56 = vmul.f32 %v1675_v8, %v1674_v57 }
 0x166   : > { %s4309_s23 = sld [smem:[#allocation38_spill]]  ;;  %v1681_v62 = vstv %s3947_s5  ;;  %v1679_v33 = vmul.f32 %v1678_v5, %v1674_v57 }
 0x167   : > { %s3969_s6 = sld [smem:[#allocation9 + $0x83]]  ;;  %v1684_v28 = vstv %s3952_s8  ;;  %v1677_v8 = vadd.f32 %v1676_v56, %v3999_v30 }
 0x168   : > { %s3975_s30 = sld [smem:[#allocation12 + $0x34]]  ;;  %v1714_v11 = vstv %s3954_s4  ;;  %v4081_v46 = vpop.permute.xlu2 %1764  ;;  %v1685_v43 = vmul.f32 %v1684_v28, %v1674_v57 }
 0x169   : > { %v1599_v13 = vstv %s4308_s27  ;;  %s4310_s28 = sld [smem:[#allocation42_spill]]  ;;  %v1715_v17 = vmul.f32 %v1714_v11, %v1713_v25 }
 0x16a   : > { %s3981_s19 = sld [smem:[#allocation12 + $0x35]]  ;;  %v1600_v36 = vmul.f32 %v1599_v13, %v1598_v6  ;;  %v1662_v13 = vstv %s3928_s16  ;;  %v1665_v6 = vstv %s3930_s14 }
 0x16b   : > { %s3990_s7 = sld [smem:[#allocation12 + $0x36]]  ;;  %v1666_v26 = vmul.f32 %v1665_v6, %v1655_v2  ;;  %v1720_v32 = vstv %s3961_s15 }
 0x16c   : > { %v1618_v16 = vstv %s4309_s23  ;;  %s3994_s1 = sld [smem:[#allocation12 + $0x37]]  ;;  %v1601_v60 = vadd.f32 %v1600_v36, %v1538_v20  ;;  %v4024_v20 = vpop.permute.xlu1 %1690  ;;  %v1717_v36 = vstv %s3956_s20 }
 0x16d   : > { %s3997_s22 = sld [smem:[#allocation9 + $0x84]]  ;;  %v1619_v23 = vmul.f32 %v1618_v16, %v1617_v51  ;;  %v1688_v16 = vpop.permute.xlu0 %1687  ;;  %v1723_v50 = vstv %s3969_s6  ;;  %v1667_v0 = vadd.f32 %v1666_v26, %v1648_v45 }
 0x16e   : > { %s4001_s21 = sld [smem:[#allocation9 + $0x85]]  ;;  %v1724_v44 = vmul.f32 %v1723_v50, %v1713_v25  ;;  %v1693_v6 = vsel %vm1227_vm1, %v1688_v16, %v4024_v20  ;;  %v1686_v16 = vadd.f32 %v1685_v43, %v4011_v34 }
 0x16f   : > { %v1624_v7 = vstv %s4310_s28  ;;  %s4009_s17 = sld [smem:[#allocation9 + $0x86]]  ;;  %v1620_v12 = vadd.f32 %v1619_v23, %v1601_v60  ;;  %v1661_v23 = vadd.f32 %v1660_v10, %v1642_v37  ;;  %v1721_v60 = vmul.f32 %v1720_v32, %v1713_v25 }
 0x170   : > { %v1625_v40 = vmul.f32 %v1624_v7, %v1617_v51  ;;  %s4014_s29 = sld [smem:[#allocation9 + $0x87]]  ;;  %v1663_v51 = vmul.f32 %v1662_v13, %v1655_v2  ;;  %v1697_v39 = vstv %s3981_s19  ;;  %v1725_v55 = vadd.f32 %v1724_v44, %v1667_v0  ;;  %v1806_v44 = vpop.permute.xlu2 %1805 }
 0x171   : > { %s4020_s0 = sld [smem:[#allocation9 + $0x88]]  ;;  %v1639_v61 = vadd.f32 %v1638_v35, %v1620_v12  ;;  %v1700_v54 = vstv %s3990_s7  ;;  %v1680_v37 = vadd.f32 %v1679_v33, %v4003_v3 }
 0x172   : > { %s4026_s24 = sld [smem:[#allocation9 + $0x89]]  ;;  %v1626_v31 = vadd.f32 %v1625_v40, %v1607_v24  ;;  %v1718_v40 = vmul.f32 %v1717_v36, %v1713_v25  ;;  %v1694_v24 = vstv %s3975_s30  ;;  %v1703_v27 = vstv %s3994_s1 }
 0x173   : > { %s4032_s26 = sld [smem:[#allocation9 + $0x8a]]  ;;  %v1658_v14 = vadd.f32 %v1657_v4, %v1639_v61  ;;  %v1733_v12 = vstv %s3997_s22  ;;  %v1695_v30 = vmul.f32 %v1694_v24, %v1693_v6  ;;  %v1698_v36 = vmul.f32 %v1697_v39, %v1693_v6 }
 0x174   : > { %s4035_s11 = sld [smem:[#allocation9 + $0x8b]]  ;;  %v1645_v7 = vadd.f32 %v1644_v1, %v1626_v31  ;;  %v4062_v52 = vpop.permute.xlu1 %1745  ;;  %v1736_v19 = vstv %s4001_s21  ;;  %v1682_v31 = vmul.f32 %v1681_v62, %v1674_v57  ;;  %v1719_v2 = vadd.f32 %v1718_v40, %v1661_v23 }
 0x175   : > { %s4041_s13 = sld [smem:[#allocation12 + $0x40]]  ;;  %v1716_v9 = vadd.f32 %v1715_v17, %v1658_v14  ;;  %v1730_v35 = vpop.permute.xlu0 %1729  ;;  %v1739_v47 = vstv %s4009_s17  ;;  %v1701_v32 = vmul.f32 %v1700_v54, %v1693_v6  ;;  %v1696_v57 = vadd.f32 %v1695_v30, %v1677_v8 }
 0x176   : > { %s4044_s2 = sld [smem:[#allocation12 + $0x41]]  ;;  %v1664_v49 = vadd.f32 %v1663_v51, %v1645_v7  ;;  %v1742_v1 = vstv %s4014_s29  ;;  %v1732_v10 = vsel %vm1712_vm2, %v3983_v53, %v1730_v35  ;;  %v1683_v20 = vadd.f32 %v1682_v31, %v4005_v59 }
 0x177   : > { %s4050_s3 = sld [smem:[#allocation12 + $0x42]]  ;;  %v1752_v13 = vstv %s4020_s0  ;;  %v1704_v7 = vmul.f32 %v1703_v27, %v1693_v6  ;;  %v1734_v45 = vmul.f32 %v1733_v12, %v1732_v10  ;;  %v1737_v17 = vmul.f32 %v1736_v19, %v1732_v10 }
 0x178   : > { %s4054_s9 = sld [smem:[#allocation12 + $0x43]]  ;;  %v1722_v48 = vadd.f32 %v1721_v60, %v1664_v49  ;;  %v1755_v61 = vstv %s4026_s24  ;;  %v1740_v59 = vmul.f32 %v1739_v47, %v1732_v10  ;;  %v1743_v23 = vmul.f32 %v1742_v1, %v1732_v10 }
 0x179   : > { %s4058_s10 = sld [smem:[#allocation9 + $0x8c]]  ;;  %v1758_v63 = vstv %s4032_s26  ;;  %v1699_v40 = vadd.f32 %v1698_v36, %v1680_v37  ;;  %v1702_v60 = vadd.f32 %v1701_v32, %v1683_v20  ;;  %v1705_v24 = vadd.f32 %v1704_v7, %v1686_v16 }
 0x17a   : > { %s4064_s25 = sld [smem:[#allocation9 + $0x8d]]  ;;  %v1761_v4 = vstv %s4035_s11  ;;  %v1735_v39 = vadd.f32 %v1734_v45, %v1716_v9  ;;  %v1751_v54 = vsel %vm1712_vm2, %v4062_v52, %v4037_v41  ;;  %v1738_v43 = vadd.f32 %v1737_v17, %v1719_v2 }
 0x17b   : > { %s4069_s16 = sld [smem:[#allocation9 + $0x8e]]  ;;  %v1790_v25 = vstv %s4041_s13  ;;  %v1741_v35 = vadd.f32 %v1740_v59, %v1722_v48  ;;  %v1744_v47 = vadd.f32 %v1743_v23, %v1725_v55  ;;  %v1753_v52 = vmul.f32 %v1752_v13, %v1751_v54 }
 0x17c   : > { %s4072_s14 = sld [smem:[#allocation9 + $0x8f]]  ;;  %v1787_v11 = vpop.permute.xlu1 %1786  ;;  %v1793_v51 = vstv %s4044_s2 }
 0x17d   : > { %s4078_s18 = sld [smem:[#allocation12 + $0x44]]  ;;  %v1796_v26 = vstv %s4050_s3  ;;  %v1784_v49 = vpop.permute.xlu0 %1783  ;;  %v1754_v55 = vadd.f32 %v1753_v52, %v1735_v39 }
 0x17e   : > { %s4083_s12 = sld [smem:[#allocation12 + $0x45]]  ;;  %v1799_v3 = vstv %s4054_s9  ;;  %v1789_v27 = vsel %vm1712_vm2, %v1784_v49, %v1787_v11  ;;  %v1756_v11 = vmul.f32 %v1755_v61, %v1751_v54 }
 0x17f   : > { %s4085_s5 = sld [smem:[#allocation12 + $0x46]]  ;;  %v1771_v53 = vstv %s4058_s10  ;;  %v1791_v12 = vmul.f32 %v1790_v25, %v1789_v27  ;;  %v1794_v56 = vmul.f32 %v1793_v51, %v1789_v27  ;;  %v1797_v33 = vmul.f32 %v1796_v26, %v1789_v27 }
 0x180   : > { %s4090_s8 = sld [smem:[#allocation12 + $0x47]]  ;;  %v1774_v5 = vstv %s4064_s25  ;;  %v1800_v19 = vmul.f32 %v1799_v3, %v1789_v27  ;;  %v1759_v25 = vmul.f32 %v1758_v63, %v1751_v54  ;;  %v1762_v51 = vmul.f32 %v1761_v4, %v1751_v54 }
 0x181   : > { %v1777_v50 = vstv %s4069_s16  ;;  %v1792_v6 = vadd.f32 %v1791_v12, %v1696_v57  ;;  %v1795_v8 = vadd.f32 %v1794_v56, %v1699_v40  ;;  %v1798_v37 = vadd.f32 %v1797_v33, %v1702_v60  ;;  %s4311_s4 = sld [smem:[#allocation35_spill]] }
 0x182   : > { %v1780_v14 = vstv %s4072_s14  ;;  %v1801_v9 = vadd.f32 %v1800_v19, %v1705_v24  ;;  %v1757_v32 = vadd.f32 %v1756_v11, %v1738_v43  ;;  %v1760_v3 = vadd.f32 %v1759_v25, %v1741_v35  ;;  %s4312_s27 = sld [smem:[#allocation36_spill]] }
 0x183   : > { %v1809_v62 = vstv %s4078_s18  ;;  %v1763_v7 = vadd.f32 %v1762_v51, %v1744_v47 }
 0x184   : > { %v1812_v28 = vstv %s4083_s12  ;;  %v1803_v31 = vpop.permute.xlu1 %1802 }
 0x185   : > { %v1815_v34 = vstv %s4085_s5  ;;  %v1808_v1 = vsel %vm1712_vm2, %v1803_v31, %v1806_v44  ;;  %v1768_v36 = vpop.permute.xlu0 %1767 }
 0x186   : > { %v1818_v0 = vstv %s4090_s8  ;;  %v1810_v10 = vmul.f32 %v1809_v62, %v1808_v1  ;;  %v1813_v20 = vmul.f32 %v1812_v28, %v1808_v1  ;;  %v1816_v16 = vmul.f32 %v1815_v34, %v1808_v1 }
 0x187   : > { %v1819_v41 = vmul.f32 %v1818_v0, %v1808_v1  ;;  %v1770_v45 = vsel %vm1712_vm2, %v4081_v46, %v1768_v36  ;;  %v2337_v61 = vld [vmem:[%s4311_s4 + $0x6] sm:$0x3] }
 0x188   : > { %v1811_v26 = vadd.f32 %v1810_v10, %v1792_v6  ;;  %v1814_v30 = vadd.f32 %v1813_v20, %v1795_v8  ;;  %v1817_v2 = vadd.f32 %v1816_v16, %v1798_v37  ;;  %v1772_v62 = vmul.f32 %v1771_v53, %v1770_v45 }
 0x189   : > { %v1820_v48 = vadd.f32 %v1819_v41, %v1801_v9  ;;  %v1775_v28 = vmul.f32 %v1774_v5, %v1770_v45  ;;  %v1778_v17 = vmul.f32 %v1777_v50, %v1770_v45  ;;  %v1781_v13 = vmul.f32 %v1780_v14, %v1770_v45 }
 0x18a   : > { %v1825_v63 = vadd.f32 %v1811_v26, %v3464_v15  ;;  %v1832_v4 = vadd.f32 %v1814_v30, %v3467_v22  ;;  %v1839_v59 = vadd.f32 %v1817_v2, %v3474_v38  ;;  %v1773_v34 = vadd.f32 %v1772_v62, %v1754_v55 }
 0x18b   : > { %v1846_v23 = vadd.f32 %v1820_v48, %v3477_v21  ;;  %v1776_v57 = vadd.f32 %v1775_v28, %v1757_v32  ;;  %v1779_v40 = vadd.f32 %v1778_v17, %v1760_v3  ;;  %v1782_v60 = vadd.f32 %v1781_v13, %v1763_v7 }
 0x18c   : > { %v1823_v49 = vunpack.c.l.bf16 %v2337_v61  ;;  %v1824_v46 = vadd.f32 %v1773_v34, %v3321_v29 }
 0x18d   : > { %v1831_v53 = vadd.f32 %v1776_v57, %v3324_v18  ;;  %v1838_v5 = vadd.f32 %v1779_v40, %v4302_v42  ;;  %v1845_v15 = vadd.f32 %v1782_v60, %v4303_v58 }
 0x18e   : > { %v1826_v22 = vsub.f32 %v1824_v46, %v1825_v63 }
 0x18f   : > { %v1833_v38 = vsub.f32 %v1831_v53, %v1832_v4  ;;  %v1840_v21 = vsub.f32 %v1838_v5, %v1839_v59  ;;  %v1847_v50 = vsub.f32 %v1845_v15, %v1846_v23 }
 0x190   : > { %v1827_v14 = vmul.f32 %v1826_v22, %v1823_v49 }
 0x191   : > { %v1834_v0 = vmul.f32 %v1833_v38, %v1823_v49  ;;  %v1841_v44 = vmul.f32 %v1840_v21, %v1823_v49  ;;  %v1848_v24 = vmul.f32 %v1847_v50, %v1823_v49 }
 0x192   : > { %v1828_v39 = vadd.f32 %v1827_v14, %v1825_v63 }
 0x193   : > { %v1835_v29 = vadd.f32 %v1834_v0, %v1832_v4  ;;  %v1842_v54 = vadd.f32 %v1841_v44, %v1839_v59  ;;  %v1849_v27 = vadd.f32 %v1848_v24, %v1846_v23 }
 0x194   : > { %2338 = vst [vmem:[%s4312_s27 + $0x30] sm:$0x7] %v1828_v39 }
 0x195   : > { %2339 = vst [vmem:[%s4312_s27 + $0x34] sm:$0x7] %v1835_v29 }
 0x196   : > { %2340 = vst [vmem:[%s4312_s27 + $0x38] sm:$0x7] %v1842_v54 }
 0x197   : > { %2341 = vst [vmem:[%s4312_s27 + $0x3c] sm:$0x7] %v1849_v27 }
 0x198 PF: > { %s4313_s20 = sld [smem:[#allocation24_spill]] }
 0x199   : > { %s4314_s30 = sld [smem:[#allocation20_spill]] }
 0x19a   : > { %s4315_s10 = sld [smem:[#allocation21_spill]] }
 0x19b   : > { %s4316_s11 = sld [smem:[#allocation26_spill]] }
 0x19c   : > { %s4317_s12 = sld [smem:[#allocation23_spill]] }
 0x19d   : > { %s4318_s13 = sld [smem:[#allocation25_spill]] }
 0x19e   : > { %s26_s14 = sadd.s32 1, %s4313_s20  }
 0x19f   : > { %p23_p2 = scmp.ge.s32.totalorder %s26_s14, 4  }
 0x1a1   :  { %25 = sbr.rel (!%p23_p2) target bundleno = 19 (0x13), region = 149 }
 0x1a6   :  { %1881 = vsyncpa [#allocation4], 1 }
 0x1a7   :  { %1883 = vsyncpa [#allocation4 + $0x1], 1 }
 0x1a8   :  { %1884 = vsyncpa [#allocation5], 1 }
 0x1a9   :  { %1886 = vsyncpa [#allocation5 + $0x1], 1 }
 0x1aa   :  { %1887 = vsyncpa [#allocation8], 1 }
 0x1ab   :  { %1888 = vsyncpa [#allocation11], 1 }
 0x1ac   :  { %1889 = vsyncpa [#allocation14], 1 }

</bundles_post_ra>
